<compile_context>
chip_gen: v5e
topology: v5e:2x2
jax: 0.10.0
libtpu: 0.0.40
codegen_flags: <defaults>
</compile_context>

<pallas_src>
import functools

import numpy as np

import jax
import jax.numpy as jnp
from jax.experimental import pallas as pl
from jax.experimental.pallas import tpu as pltpu


# --------------------------- wrapper-side constant prep ---------------------------

def _conv_toeplitz(w_oihw, w_in, w_out, dtype):
    """Expand a (Cout, Cin, KH, KW) conv kernel into KH matrices (w_in*Cin, w_out*Cout)
    so that, in the (H, W*C) activation layout (channel fastest in lanes),
        conv_out[ho, wo*Cout + co] = sum_kh  x[ho+kh, :] @ mats[kh]   (valid conv)."""
    cout, cin, kh, kw = w_oihw.shape
    khg, kwg, cing, cog, wog = np.meshgrid(
        np.arange(kh), np.arange(kw), np.arange(cin), np.arange(cout),
        np.arange(w_out), indexing="ij")
    rows = (wog + kwg) * cin + cing          # (wo+kw)*Cin + cin
    cols = wog * cout + cog                  # wo*Cout + co
    vals = jnp.broadcast_to(
        jnp.transpose(w_oihw, (2, 3, 1, 0))[..., None],
        (kh, kw, cin, cout, w_out)).astype(jnp.float32)
    mats = jnp.zeros((kh, w_in * cin, w_out * cout), jnp.float32)
    return mats.at[khg, rows, cols].set(vals).astype(dtype)


def _pool_col_selectors(w_out, c, n_pad=128):
    """(2, 2*w_out*c, n_pad) 0/1 matrices picking even/odd width positions
    (channel-fastest lane packing); output lanes zero-padded to n_pad (lane-dense)."""
    sel = np.zeros((2, 2 * w_out * c, n_pad), np.float32)
    for parity in range(2):
        for wo in range(w_out):
            for ch in range(c):
                sel[parity, (2 * wo + parity) * c + ch, wo * c + ch] = 1.0
    return sel


# ----------------------------------- the kernel ------------------------------------

def _lenet_kernel(x_ref, c1m_ref, c1b_ref, p1c_ref,
                  c2m_ref, c2b_ref, p2c_ref,
                  fc1w_ref, fc1b_ref, fc2w_ref, fc2b_ref, fc3w_ref, fc3b_ref,
                  out_ref, s1_ref, s2_ref, s3_ref, s4_ref, *, tb, num_class):
    f32, bf16 = jnp.float32, jnp.bfloat16

    def mm(a, b):  # bf16 MXU matmul, f32 accumulation
        return jnp.dot(a, b, preferred_element_type=f32)

    # Slab layout: every activation keeps one fixed-height block per sample, stacked
    # along sublanes.  Rows beyond the "valid" per-sample height are garbage rows that
    # are never consumed by valid output rows (matmuls / elementwise ops are row-local).
    R0 = tb * 32          # input slab rows     (32 rows / sample)
    M1 = R0 - 4           # conv1 output rows   (rows h < 28 of each sample are valid)
    R1 = tb * 16          # pool1 slab rows     (16 rows / sample, h < 14 valid)
    M2 = R1 - 4           # conv2 output rows   (h < 10 valid)
    R2 = tb * 8           # pool2 slab rows     (8 rows / sample, h < 5 valid)

    # ---- conv1 (5x5, 3->6) + bias + ReLU: 5 row-shifted batched matmuls ----
    acc = mm(x_ref[pl.ds(0, M1), :], c1m_ref[0])
    for kh in range(1, 5):
        acc = acc + mm(x_ref[pl.ds(kh, M1), :], c1m_ref[kh])
    y1 = jnp.maximum(acc + c1b_ref[...], 0.0).astype(bf16)              # (M1, 168)

    # ---- maxpool1 (2x2): width via 0/1 selector matmuls, height via stride-2 max ----
    s1_ref[pl.ds(0, M1), :] = jnp.maximum(mm(y1, p1c_ref[0]), mm(y1, p1c_ref[1]))
    s1_ref[pl.ds(M1, 4), :] = jnp.zeros((4, 128), f32)                  # tail hygiene
    p1 = jnp.maximum(s1_ref[pl.ds(0, R1, stride=2), :],
                     s1_ref[pl.ds(1, R1, stride=2), :])                 # (R1, 128)
    s2_ref[...] = p1.astype(bf16)

    # ---- conv2 (5x5, 6->16) + bias + ReLU ----
    acc2 = mm(s2_ref[pl.ds(0, M2), :], c2m_ref[0])
    for kh in range(1, 5):
        acc2 = acc2 + mm(s2_ref[pl.ds(kh, M2), :], c2m_ref[kh])
    y2 = jnp.maximum(acc2 + c2b_ref[...], 0.0).astype(bf16)             # (M2, 160)

    # ---- maxpool2 (2x2) ----
    s3_ref[pl.ds(0, M2), :] = jnp.maximum(mm(y2, p2c_ref[0]), mm(y2, p2c_ref[1]))
    s3_ref[pl.ds(M2, 4), :] = jnp.zeros((4, 128), f32)
    s4_ref[...] = jnp.maximum(s3_ref[pl.ds(0, R2, stride=2), :],
                              s3_ref[pl.ds(1, R2, stride=2), :])        # (R2, 128)

    # ---- fc stage: NCHW flatten folded into fc1 as 5 K-blocks (stride-8 row gathers) ----
    h1 = mm(s4_ref[pl.ds(0, tb, stride=8), :].astype(bf16), fc1w_ref[0:128, :])
    for h in range(1, 5):
        h1 = h1 + mm(s4_ref[pl.ds(h, tb, stride=8), :].astype(bf16),
                     fc1w_ref[h * 128:(h + 1) * 128, :])
    h1 = jnp.maximum(h1 + fc1b_ref[...], 0.0)                           # (tb, 128)

    h2 = jnp.maximum(mm(h1.astype(bf16), fc2w_ref[...]) + fc2b_ref[...], 0.0)
    logits = mm(h2.astype(bf16), fc3w_ref[...]) + fc3b_ref[...]         # (tb, 128)

    # mask padded class columns, then numerically-stable log_softmax
    col = jax.lax.broadcasted_iota(jnp.int32, logits.shape, 1)
    logits = jnp.where(col < num_class, logits, -1e30)
    m = jnp.max(logits, axis=-1, keepdims=True)
    s = logits - m
    lse = jnp.log(jnp.sum(jnp.exp(s), axis=-1, keepdims=True))
    out_ref[...] = (s - lse).astype(out_ref.dtype)


# --------------------------------- public forward ----------------------------------

def _round_up(v, m):
    return ((v + m - 1) // m) * m


def classifier_forward(params, x_nchw, num_class=10, block_b=128):
    """Forward pass matching the PyTorch Classifier. x_nchw: (B, 3, 32, 32) float32.
    Returns (B, num_class) log-probabilities."""
    assert num_class <= 128
    B = x_nchw.shape[0]
    C0, H0, W0 = 3, 32, 32
    assert x_nchw.shape[1:] == (C0, H0, W0), x_nchw.shape
    f32, bf16 = jnp.float32, jnp.bfloat16

    # Batch tile: multiple of 8, capped at block_b, and (when B allows it) at least two
    # grid steps so both TensorCores on v7x get work. On v5e/v6e this is a no-op.
    tb = max(8, min(block_b, _round_up(max(-(-B // 2), 1), 8)))
    n_tiles = -(-B // tb)
    bp = n_tiles * tb

    # NCHW -> per-sample (H, W*C) rows (channel fastest), stacked into one (bp*32, 96) slab
    x = jnp.transpose(x_nchw.astype(f32), (0, 2, 3, 1)).reshape(B, H0, W0 * C0)
    if bp != B:
        x = jnp.pad(x, ((0, bp - B), (0, 0), (0, 0)))
    x = x.reshape(bp * H0, W0 * C0).astype(bf16)

    # conv weights as width-Toeplitz matrices; conv2's K padded 84 -> 128 (dense lanes)
    c1m = _conv_toeplitz(params["conv1_w"], W0, 28, bf16)               # (5, 96, 168)
    c1b = jnp.tile(params["conv1_b"].astype(f32), 28)[None, :]          # (1, 168)
    c2m = _conv_toeplitz(params["conv2_w"], 14, 10, bf16)               # (5, 84, 160)
    c2m = jnp.pad(c2m, ((0, 0), (0, 128 - 84), (0, 0)))                 # (5, 128, 160)
    c2b = jnp.tile(params["conv2_b"].astype(f32), 10)[None, :]          # (1, 160)

    # 2x2 width-pool selection matrices, output lanes zero-padded to 128
    p1c = jnp.asarray(_pool_col_selectors(14, 6, 128), bf16)            # (2, 168, 128)
    p2c = jnp.asarray(_pool_col_selectors(5, 16, 128), bf16)            # (2, 160, 128)

    # fc weights as (K, N); NCHW flatten folded into fc1 as 5 row blocks of 128
    perm = np.array([c * 25 + h * 5 + w
                     for h in range(5) for w in range(5) for c in range(16)])
    w1 = params["fc1_w"].astype(f32).T[perm]                            # (400, 120)
    fc1w = jnp.zeros((5 * 128, 128), f32)
    for h in range(5):
        fc1w = fc1w.at[h * 128:h * 128 + 80, :120].set(w1[h * 80:(h + 1) * 80])
    fc1w = fc1w.astype(bf16)                                            # (640, 128)
    fc1b = jnp.zeros((1, 128), f32).at[0, :120].set(params["fc1_b"])
    fc2w = jnp.zeros((128, 128), f32).at[:120, :84].set(params["fc2_w"].T).astype(bf16)
    fc2b = jnp.zeros((1, 128), f32).at[0, :84].set(params["fc2_b"])
    fc3w = jnp.zeros((128, 128), f32).at[:84, :num_class].set(params["fc3_w"].T).astype(bf16)
    fc3b = jnp.zeros((1, 128), f32).at[0, :num_class].set(params["fc3_b"])

    def resident(arr):   # same block every grid step -> single-buffered, fetched once
        nd = arr.ndim
        return pl.BlockSpec(arr.shape, lambda i, _nd=nd: (0,) * _nd,
                            pipeline_mode=pl.Buffered(1))

    weights = (c1m, c1b, p1c, c2m, c2b, p2c,
               fc1w, fc1b, fc2w, fc2b, fc3w, fc3b)

    out = pl.pallas_call(
        functools.partial(_lenet_kernel, tb=tb, num_class=num_class),
        out_shape=jax.ShapeDtypeStruct((bp, 128), f32),
        grid=(n_tiles,),
        in_specs=[pl.BlockSpec((tb * H0, W0 * C0), lambda i: (i, 0))]
                 + [resident(w) for w in weights],
        out_specs=pl.BlockSpec((tb, 128), lambda i: (i, 0)),
        scratch_shapes=[pltpu.VMEM((tb * 32, 128), f32),    # width-pooled conv1 slab
                        pltpu.VMEM((tb * 16, 128), bf16),   # pool1 output (conv2 LHS)
                        pltpu.VMEM((tb * 16, 128), f32),    # width-pooled conv2 slab
                        pltpu.VMEM((tb * 8, 128), f32)],    # pool2 output (fc features)
        compiler_params=pltpu.CompilerParams(
            dimension_semantics=("parallel",),
            vmem_limit_bytes=48 * 1024 * 1024),
    )(x, *weights)

    return out[:B, :num_class]


# ----------------------------- reference & parameters ------------------------------

def _reference_forward(params, x_nchw):
    """Plain-JAX (XLA) f32 reference of the same PyTorch module, for validation."""
    f32 = jnp.float32
    y = jax.lax.conv_general_dilated(
        x_nchw.astype(f32), params["conv1_w"].astype(f32), (1, 1), "VALID",
        dimension_numbers=("NCHW", "OIHW", "NCHW"))
    y = jax.nn.relu(y + params["conv1_b"][None, :, None, None])
    y = jax.lax.reduce_window(y, -jnp.inf, jax.lax.max,
                              (1, 1, 2, 2), (1, 1, 2, 2), "VALID")
    y = jax.lax.conv_general_dilated(
        y, params["conv2_w"].astype(f32), (1, 1), "VALID",
        dimension_numbers=("NCHW", "OIHW", "NCHW"))
    y = jax.nn.relu(y + params["conv2_b"][None, :, None, None])
    y = jax.lax.reduce_window(y, -jnp.inf, jax.lax.max,
                              (1, 1, 2, 2), (1, 1, 2, 2), "VALID")
    y = y.reshape(y.shape[0], -1)                        # torch.flatten(NCHW, 1)
    y = jax.nn.relu(y @ params["fc1_w"].T + params["fc1_b"])
    y = jax.nn.relu(y @ params["fc2_w"].T + params["fc2_b"])
    y = y @ params["fc3_w"].T + params["fc3_b"]
    return jax.nn.log_softmax(y, axis=-1)


def init_params(key, num_class=10):
    # Deterministic synthetic init (PyTorch-default-like uniform(-1/sqrt(fan_in), ...)).
    ks = jax.random.split(key, 10)

    def u(k, shape, fan_in):
        bound = 1.0 / jnp.sqrt(jnp.float32(fan_in))
        return jax.random.uniform(k, shape, jnp.float32, -bound, bound)

    return {
        "conv1_w": u(ks[0], (6, 3, 5, 5), 3 * 5 * 5),
        "conv1_b": u(ks[1], (6,), 3 * 5 * 5),
        "conv2_w": u(ks[2], (16, 6, 5, 5), 6 * 5 * 5),
        "conv2_b": u(ks[3], (16,), 6 * 5 * 5),
        "fc1_w": u(ks[4], (120, 16 * 5 * 5), 16 * 5 * 5),
        "fc1_b": u(ks[5], (120,), 16 * 5 * 5),
        "fc2_w": u(ks[6], (84, 120), 120),
        "fc2_b": u(ks[7], (84,), 120),
        "fc3_w": u(ks[8], (num_class, 84), 84),
        "fc3_b": u(ks[9], (num_class,), 84),
    }


if __name__ == "__main__":
    key = jax.random.PRNGKey(0)
    pkey, xkey = jax.random.split(key)
    num_class = 10
    params = init_params(pkey, num_class=num_class)
    # Input must be 32x32 spatial so that 16*5*5 feeds fc1 (as the module implies).
    x = jax.random.normal(xkey, (2, 3, 32, 32), jnp.float32)

    fwd = jax.jit(functools.partial(classifier_forward, num_class=num_class))
    out = jax.block_until_ready(fwd(params, x))

    assert out.shape == (2, num_class), out.shape
    assert bool(jnp.all(jnp.isfinite(out))), "non-finite outputs"
    # rows must be valid log-probabilities
    assert bool(jnp.all(jnp.abs(jnp.sum(jnp.exp(out), axis=-1) - 1.0) < 1e-3))

    # cross-check against the plain-JAX f32 reference (bf16 MXU operands -> loose tol)
    ref = jax.block_until_ready(jax.jit(_reference_forward)(params, x))
    err = float(jnp.max(jnp.abs(out - ref)))
    assert err < 0.2, f"max |kernel - reference| too large: {err}"

    print("KERNEL_OK")
</pallas_src>

<mosaic_0001>
module attributes {stable_mosaic.version = 11 : i64} {
  func.func @_lenet_kernel(%arg0: i32, %arg1: memref<256x96xbf16, #tpu.memory_space<vmem>>, %arg2: memref<5x96x168xbf16, #tpu.memory_space<vmem>>, %arg3: memref<1x168xf32, #tpu.memory_space<vmem>>, %arg4: memref<2x168x128xbf16, #tpu.memory_space<vmem>>, %arg5: memref<5x128x160xbf16, #tpu.memory_space<vmem>>, %arg6: memref<1x160xf32, #tpu.memory_space<vmem>>, %arg7: memref<2x160x128xbf16, #tpu.memory_space<vmem>>, %arg8: memref<640x128xbf16, #tpu.memory_space<vmem>>, %arg9: memref<1x128xf32, #tpu.memory_space<vmem>>, %arg10: memref<128x128xbf16, #tpu.memory_space<vmem>>, %arg11: memref<1x128xf32, #tpu.memory_space<vmem>>, %arg12: memref<128x128xbf16, #tpu.memory_space<vmem>>, %arg13: memref<1x128xf32, #tpu.memory_space<vmem>>, %arg14: memref<8x128xf32, #tpu.memory_space<vmem>>, %arg15: memref<256x128xf32, #tpu.memory_space<vmem>>, %arg16: memref<128x128xbf16, #tpu.memory_space<vmem>>, %arg17: memref<128x128xf32, #tpu.memory_space<vmem>>, %arg18: memref<64x128xf32, #tpu.memory_space<vmem>>) attributes {dimension_semantics = [#tpu.dimension_semantics<parallel>], iteration_bounds = array<i64: 1>, scalar_prefetch = 0 : i64, scratch_operands = 4 : i64, tpu.core_type = #tpu.core_type<tc>, window_params = [{transform_indices = @transform_0, window_bounds = array<i64: 256, 96>}, {pipeline_mode = #tpu.pipeline_mode<synchronous>, transform_indices = @transform_1, window_bounds = array<i64: 5, 96, 168>}, {pipeline_mode = #tpu.pipeline_mode<synchronous>, transform_indices = @transform_2, window_bounds = array<i64: 1, 168>}, {pipeline_mode = #tpu.pipeline_mode<synchronous>, transform_indices = @transform_3, window_bounds = array<i64: 2, 168, 128>}, {pipeline_mode = #tpu.pipeline_mode<synchronous>, transform_indices = @transform_4, window_bounds = array<i64: 5, 128, 160>}, {pipeline_mode = #tpu.pipeline_mode<synchronous>, transform_indices = @transform_5, window_bounds = array<i64: 1, 160>}, {pipeline_mode = #tpu.pipeline_mode<synchronous>, transform_indices = @transform_6, window_bounds = array<i64: 2, 160, 128>}, {pipeline_mode = #tpu.pipeline_mode<synchronous>, transform_indices = @transform_7, window_bounds = array<i64: 640, 128>}, {pipeline_mode = #tpu.pipeline_mode<synchronous>, transform_indices = @transform_8, window_bounds = array<i64: 1, 128>}, {pipeline_mode = #tpu.pipeline_mode<synchronous>, transform_indices = @transform_9, window_bounds = array<i64: 128, 128>}, {pipeline_mode = #tpu.pipeline_mode<synchronous>, transform_indices = @transform_10, window_bounds = array<i64: 1, 128>}, {pipeline_mode = #tpu.pipeline_mode<synchronous>, transform_indices = @transform_11, window_bounds = array<i64: 128, 128>}, {pipeline_mode = #tpu.pipeline_mode<synchronous>, transform_indices = @transform_12, window_bounds = array<i64: 1, 128>}, {transform_indices = @transform_13, window_bounds = array<i64: 8, 128>}]} {
    %c0 = arith.constant 0 : index
    %c0_0 = arith.constant 0 : index
    %0 = vector.load %arg1[%c0, %c0_0] : memref<256x96xbf16, #tpu.memory_space<vmem>>, vector<252x96xbf16>
    %c0_1 = arith.constant 0 : index
    %c0_2 = arith.constant 0 : index
    %c0_3 = arith.constant 0 : index
    %1 = vector.load %arg2[%c0_1, %c0_2, %c0_3] : memref<5x96x168xbf16, #tpu.memory_space<vmem>>, vector<1x96x168xbf16>
    %2 = vector.shape_cast %1 : vector<1x96x168xbf16> to vector<96x168xbf16>
    %cst = arith.constant dense<0.000000e+00> : vector<252x168xf32>
    %3 = tpu.matmul %0, %2, %cst {dimension_numbers = #tpu.dot_dimension_numbers<[1], [0], [0], [1], [0, 0, 1, 1], [], []>} : vector<252x96xbf16>, vector<96x168xbf16>, vector<252x168xf32> -> vector<252x168xf32>
    %c1 = arith.constant 1 : index
    %c0_4 = arith.constant 0 : index
    %4 = vector.load %arg1[%c1, %c0_4] : memref<256x96xbf16, #tpu.memory_space<vmem>>, vector<252x96xbf16>
    %c1_5 = arith.constant 1 : index
    %c0_6 = arith.constant 0 : index
    %c0_7 = arith.constant 0 : index
    %5 = vector.load %arg2[%c1_5, %c0_6, %c0_7] : memref<5x96x168xbf16, #tpu.memory_space<vmem>>, vector<1x96x168xbf16>
    %6 = vector.shape_cast %5 : vector<1x96x168xbf16> to vector<96x168xbf16>
    %cst_8 = arith.constant dense<0.000000e+00> : vector<252x168xf32>
    %7 = tpu.matmul %4, %6, %cst_8 {dimension_numbers = #tpu.dot_dimension_numbers<[1], [0], [0], [1], [0, 0, 1, 1], [], []>} : vector<252x96xbf16>, vector<96x168xbf16>, vector<252x168xf32> -> vector<252x168xf32>
    %8 = arith.addf %3, %7 : vector<252x168xf32>
    %c2 = arith.constant 2 : index
    %c0_9 = arith.constant 0 : index
    %9 = vector.load %arg1[%c2, %c0_9] : memref<256x96xbf16, #tpu.memory_space<vmem>>, vector<252x96xbf16>
    %c2_10 = arith.constant 2 : index
    %c0_11 = arith.constant 0 : index
    %c0_12 = arith.constant 0 : index
    %10 = vector.load %arg2[%c2_10, %c0_11, %c0_12] : memref<5x96x168xbf16, #tpu.memory_space<vmem>>, vector<1x96x168xbf16>
    %11 = vector.shape_cast %10 : vector<1x96x168xbf16> to vector<96x168xbf16>
    %cst_13 = arith.constant dense<0.000000e+00> : vector<252x168xf32>
    %12 = tpu.matmul %9, %11, %cst_13 {dimension_numbers = #tpu.dot_dimension_numbers<[1], [0], [0], [1], [0, 0, 1, 1], [], []>} : vector<252x96xbf16>, vector<96x168xbf16>, vector<252x168xf32> -> vector<252x168xf32>
    %13 = arith.addf %8, %12 : vector<252x168xf32>
    %c3 = arith.constant 3 : index
    %c0_14 = arith.constant 0 : index
    %14 = vector.load %arg1[%c3, %c0_14] : memref<256x96xbf16, #tpu.memory_space<vmem>>, vector<252x96xbf16>
    %c3_15 = arith.constant 3 : index
    %c0_16 = arith.constant 0 : index
    %c0_17 = arith.constant 0 : index
    %15 = vector.load %arg2[%c3_15, %c0_16, %c0_17] : memref<5x96x168xbf16, #tpu.memory_space<vmem>>, vector<1x96x168xbf16>
    %16 = vector.shape_cast %15 : vector<1x96x168xbf16> to vector<96x168xbf16>
    %cst_18 = arith.constant dense<0.000000e+00> : vector<252x168xf32>
    %17 = tpu.matmul %14, %16, %cst_18 {dimension_numbers = #tpu.dot_dimension_numbers<[1], [0], [0], [1], [0, 0, 1, 1], [], []>} : vector<252x96xbf16>, vector<96x168xbf16>, vector<252x168xf32> -> vector<252x168xf32>
    %18 = arith.addf %13, %17 : vector<252x168xf32>
    %c4 = arith.constant 4 : index
    %c0_19 = arith.constant 0 : index
    %19 = vector.load %arg1[%c4, %c0_19] : memref<256x96xbf16, #tpu.memory_space<vmem>>, vector<252x96xbf16>
    %c4_20 = arith.constant 4 : index
    %c0_21 = arith.constant 0 : index
    %c0_22 = arith.constant 0 : index
    %20 = vector.load %arg2[%c4_20, %c0_21, %c0_22] : memref<5x96x168xbf16, #tpu.memory_space<vmem>>, vector<1x96x168xbf16>
    %21 = vector.shape_cast %20 : vector<1x96x168xbf16> to vector<96x168xbf16>
    %cst_23 = arith.constant dense<0.000000e+00> : vector<252x168xf32>
    %22 = tpu.matmul %19, %21, %cst_23 {dimension_numbers = #tpu.dot_dimension_numbers<[1], [0], [0], [1], [0, 0, 1, 1], [], []>} : vector<252x96xbf16>, vector<96x168xbf16>, vector<252x168xf32> -> vector<252x168xf32>
    %23 = arith.addf %18, %22 : vector<252x168xf32>
    %c0_24 = arith.constant 0 : index
    %c0_25 = arith.constant 0 : index
    %24 = vector.load %arg3[%c0_24, %c0_25] : memref<1x168xf32, #tpu.memory_space<vmem>>, vector<1x168xf32>
    %25 = vector.broadcast %24 : vector<1x168xf32> to vector<252x168xf32>
    %26 = arith.addf %23, %25 : vector<252x168xf32>
    %cst_26 = arith.constant 0.000000e+00 : f32
    %27 = vector.broadcast %cst_26 : f32 to vector<252x168xf32>
    %28 = arith.maximumf %26, %27 : vector<252x168xf32>
    %29 = arith.truncf %28 : vector<252x168xf32> to vector<252x168xbf16>
    %c0_27 = arith.constant 0 : index
    %c0_28 = arith.constant 0 : index
    %c0_29 = arith.constant 0 : index
    %30 = vector.load %arg4[%c0_27, %c0_28, %c0_29] : memref<2x168x128xbf16, #tpu.memory_space<vmem>>, vector<1x168x128xbf16>
    %31 = vector.shape_cast %30 : vector<1x168x128xbf16> to vector<168x128xbf16>
    %cst_30 = arith.constant dense<0.000000e+00> : vector<252x128xf32>
    %32 = tpu.matmul %29, %31, %cst_30 {dimension_numbers = #tpu.dot_dimension_numbers<[1], [0], [0], [1], [0, 0, 1, 1], [], []>} : vector<252x168xbf16>, vector<168x128xbf16>, vector<252x128xf32> -> vector<252x128xf32>
    %c1_31 = arith.constant 1 : index
    %c0_32 = arith.constant 0 : index
    %c0_33 = arith.constant 0 : index
    %33 = vector.load %arg4[%c1_31, %c0_32, %c0_33] : memref<2x168x128xbf16, #tpu.memory_space<vmem>>, vector<1x168x128xbf16>
    %34 = vector.shape_cast %33 : vector<1x168x128xbf16> to vector<168x128xbf16>
    %cst_34 = arith.constant dense<0.000000e+00> : vector<252x128xf32>
    %35 = tpu.matmul %29, %34, %cst_34 {dimension_numbers = #tpu.dot_dimension_numbers<[1], [0], [0], [1], [0, 0, 1, 1], [], []>} : vector<252x168xbf16>, vector<168x128xbf16>, vector<252x128xf32> -> vector<252x128xf32>
    %36 = arith.maximumf %32, %35 : vector<252x128xf32>
    %c0_35 = arith.constant 0 : index
    %c0_36 = arith.constant 0 : index
    %37 = vector.load %arg15[%c0_35, %c0_36] : memref<256x128xf32, #tpu.memory_space<vmem>>, vector<252x128xf32>
    tpu.vector_store %arg15[%c0_35, %c0_36], %36 {strides = array<i32>} : memref<256x128xf32, #tpu.memory_space<vmem>>, vector<252x128xf32>,
    %cst_37 = arith.constant 0.000000e+00 : f32
    %38 = vector.broadcast %cst_37 : f32 to vector<4x128xf32>
    %c252 = arith.constant 252 : index
    %c0_38 = arith.constant 0 : index
    %39 = vector.load %arg15[%c252, %c0_38] : memref<256x128xf32, #tpu.memory_space<vmem>>, vector<4x128xf32>
    tpu.vector_store %arg15[%c252, %c0_38], %38 {strides = array<i32>} : memref<256x128xf32, #tpu.memory_space<vmem>>, vector<4x128xf32>,
    %c0_39 = arith.constant 0 : index
    %c0_40 = arith.constant 0 : index
    %40 = tpu.strided_load %arg15[%c0_39, %c0_40] {strides = array<i32: 2, 1>} : memref<256x128xf32, #tpu.memory_space<vmem>>, vector<128x128xf32>
    %c1_41 = arith.constant 1 : index
    %c0_42 = arith.constant 0 : index
    %41 = tpu.strided_load %arg15[%c1_41, %c0_42] {strides = array<i32: 2, 1>} : memref<256x128xf32, #tpu.memory_space<vmem>>, vector<128x128xf32>
    %42 = arith.maximumf %40, %41 : vector<128x128xf32>
    %43 = arith.truncf %42 : vector<128x128xf32> to vector<128x128xbf16>
    %c0_43 = arith.constant 0 : index
    %c0_44 = arith.constant 0 : index
    %44 = vector.load %arg16[%c0_43, %c0_44] : memref<128x128xbf16, #tpu.memory_space<vmem>>, vector<128x128xbf16>
    tpu.vector_store %arg16[%c0_43, %c0_44], %43 {strides = array<i32>} : memref<128x128xbf16, #tpu.memory_space<vmem>>, vector<128x128xbf16>,
    %c0_45 = arith.constant 0 : index
    %c0_46 = arith.constant 0 : index
    %45 = vector.load %arg16[%c0_45, %c0_46] : memref<128x128xbf16, #tpu.memory_space<vmem>>, vector<124x128xbf16>
    %c0_47 = arith.constant 0 : index
    %c0_48 = arith.constant 0 : index
    %c0_49 = arith.constant 0 : index
    %46 = vector.load %arg5[%c0_47, %c0_48, %c0_49] : memref<5x128x160xbf16, #tpu.memory_space<vmem>>, vector<1x128x160xbf16>
    %47 = vector.shape_cast %46 : vector<1x128x160xbf16> to vector<128x160xbf16>
    %cst_50 = arith.constant dense<0.000000e+00> : vector<124x160xf32>
    %48 = tpu.matmul %45, %47, %cst_50 {dimension_numbers = #tpu.dot_dimension_numbers<[1], [0], [0], [1], [0, 0, 1, 1], [], []>} : vector<124x128xbf16>, vector<128x160xbf16>, vector<124x160xf32> -> vector<124x160xf32>
    %c1_51 = arith.constant 1 : index
    %c0_52 = arith.constant 0 : index
    %49 = vector.load %arg16[%c1_51, %c0_52] : memref<128x128xbf16, #tpu.memory_space<vmem>>, vector<124x128xbf16>
    %c1_53 = arith.constant 1 : index
    %c0_54 = arith.constant 0 : index
    %c0_55 = arith.constant 0 : index
    %50 = vector.load %arg5[%c1_53, %c0_54, %c0_55] : memref<5x128x160xbf16, #tpu.memory_space<vmem>>, vector<1x128x160xbf16>
    %51 = vector.shape_cast %50 : vector<1x128x160xbf16> to vector<128x160xbf16>
    %cst_56 = arith.constant dense<0.000000e+00> : vector<124x160xf32>
    %52 = tpu.matmul %49, %51, %cst_56 {dimension_numbers = #tpu.dot_dimension_numbers<[1], [0], [0], [1], [0, 0, 1, 1], [], []>} : vector<124x128xbf16>, vector<128x160xbf16>, vector<124x160xf32> -> vector<124x160xf32>
    %53 = arith.addf %48, %52 : vector<124x160xf32>
    %c2_57 = arith.constant 2 : index
    %c0_58 = arith.constant 0 : index
    %54 = vector.load %arg16[%c2_57, %c0_58] : memref<128x128xbf16, #tpu.memory_space<vmem>>, vector<124x128xbf16>
    %c2_59 = arith.constant 2 : index
    %c0_60 = arith.constant 0 : index
    %c0_61 = arith.constant 0 : index
    %55 = vector.load %arg5[%c2_59, %c0_60, %c0_61] : memref<5x128x160xbf16, #tpu.memory_space<vmem>>, vector<1x128x160xbf16>
    %56 = vector.shape_cast %55 : vector<1x128x160xbf16> to vector<128x160xbf16>
    %cst_62 = arith.constant dense<0.000000e+00> : vector<124x160xf32>
    %57 = tpu.matmul %54, %56, %cst_62 {dimension_numbers = #tpu.dot_dimension_numbers<[1], [0], [0], [1], [0, 0, 1, 1], [], []>} : vector<124x128xbf16>, vector<128x160xbf16>, vector<124x160xf32> -> vector<124x160xf32>
    %58 = arith.addf %53, %57 : vector<124x160xf32>
    %c3_63 = arith.constant 3 : index
    %c0_64 = arith.constant 0 : index
    %59 = vector.load %arg16[%c3_63, %c0_64] : memref<128x128xbf16, #tpu.memory_space<vmem>>, vector<124x128xbf16>
    %c3_65 = arith.constant 3 : index
    %c0_66 = arith.constant 0 : index
    %c0_67 = arith.constant 0 : index
    %60 = vector.load %arg5[%c3_65, %c0_66, %c0_67] : memref<5x128x160xbf16, #tpu.memory_space<vmem>>, vector<1x128x160xbf16>
    %61 = vector.shape_cast %60 : vector<1x128x160xbf16> to vector<128x160xbf16>
    %cst_68 = arith.constant dense<0.000000e+00> : vector<124x160xf32>
    %62 = tpu.matmul %59, %61, %cst_68 {dimension_numbers = #tpu.dot_dimension_numbers<[1], [0], [0], [1], [0, 0, 1, 1], [], []>} : vector<124x128xbf16>, vector<128x160xbf16>, vector<124x160xf32> -> vector<124x160xf32>
    %63 = arith.addf %58, %62 : vector<124x160xf32>
    %c4_69 = arith.constant 4 : index
    %c0_70 = arith.constant 0 : index
    %64 = vector.load %arg16[%c4_69, %c0_70] : memref<128x128xbf16, #tpu.memory_space<vmem>>, vector<124x128xbf16>
    %c4_71 = arith.constant 4 : index
    %c0_72 = arith.constant 0 : index
    %c0_73 = arith.constant 0 : index
    %65 = vector.load %arg5[%c4_71, %c0_72, %c0_73] : memref<5x128x160xbf16, #tpu.memory_space<vmem>>, vector<1x128x160xbf16>
    %66 = vector.shape_cast %65 : vector<1x128x160xbf16> to vector<128x160xbf16>
    %cst_74 = arith.constant dense<0.000000e+00> : vector<124x160xf32>
    %67 = tpu.matmul %64, %66, %cst_74 {dimension_numbers = #tpu.dot_dimension_numbers<[1], [0], [0], [1], [0, 0, 1, 1], [], []>} : vector<124x128xbf16>, vector<128x160xbf16>, vector<124x160xf32> -> vector<124x160xf32>
    %68 = arith.addf %63, %67 : vector<124x160xf32>
    %c0_75 = arith.constant 0 : index
    %c0_76 = arith.constant 0 : index
    %69 = vector.load %arg6[%c0_75, %c0_76] : memref<1x160xf32, #tpu.memory_space<vmem>>, vector<1x160xf32>
    %70 = vector.broadcast %69 : vector<1x160xf32> to vector<124x160xf32>
    %71 = arith.addf %68, %70 : vector<124x160xf32>
    %cst_77 = arith.constant 0.000000e+00 : f32
    %72 = vector.broadcast %cst_77 : f32 to vector<124x160xf32>
    %73 = arith.maximumf %71, %72 : vector<124x160xf32>
    %74 = arith.truncf %73 : vector<124x160xf32> to vector<124x160xbf16>
    %c0_78 = arith.constant 0 : index
    %c0_79 = arith.constant 0 : index
    %c0_80 = arith.constant 0 : index
    %75 = vector.load %arg7[%c0_78, %c0_79, %c0_80] : memref<2x160x128xbf16, #tpu.memory_space<vmem>>, vector<1x160x128xbf16>
    %76 = vector.shape_cast %75 : vector<1x160x128xbf16> to vector<160x128xbf16>
    %cst_81 = arith.constant dense<0.000000e+00> : vector<124x128xf32>
    %77 = tpu.matmul %74, %76, %cst_81 {dimension_numbers = #tpu.dot_dimension_numbers<[1], [0], [0], [1], [0, 0, 1, 1], [], []>} : vector<124x160xbf16>, vector<160x128xbf16>, vector<124x128xf32> -> vector<124x128xf32>
    %c1_82 = arith.constant 1 : index
    %c0_83 = arith.constant 0 : index
    %c0_84 = arith.constant 0 : index
    %78 = vector.load %arg7[%c1_82, %c0_83, %c0_84] : memref<2x160x128xbf16, #tpu.memory_space<vmem>>, vector<1x160x128xbf16>
    %79 = vector.shape_cast %78 : vector<1x160x128xbf16> to vector<160x128xbf16>
    %cst_85 = arith.constant dense<0.000000e+00> : vector<124x128xf32>
    %80 = tpu.matmul %74, %79, %cst_85 {dimension_numbers = #tpu.dot_dimension_numbers<[1], [0], [0], [1], [0, 0, 1, 1], [], []>} : vector<124x160xbf16>, vector<160x128xbf16>, vector<124x128xf32> -> vector<124x128xf32>
    %81 = arith.maximumf %77, %80 : vector<124x128xf32>
    %c0_86 = arith.constant 0 : index
    %c0_87 = arith.constant 0 : index
    %82 = vector.load %arg17[%c0_86, %c0_87] : memref<128x128xf32, #tpu.memory_space<vmem>>, vector<124x128xf32>
    tpu.vector_store %arg17[%c0_86, %c0_87], %81 {strides = array<i32>} : memref<128x128xf32, #tpu.memory_space<vmem>>, vector<124x128xf32>,
    %cst_88 = arith.constant 0.000000e+00 : f32
    %83 = vector.broadcast %cst_88 : f32 to vector<4x128xf32>
    %c124 = arith.constant 124 : index
    %c0_89 = arith.constant 0 : index
    %84 = vector.load %arg17[%c124, %c0_89] : memref<128x128xf32, #tpu.memory_space<vmem>>, vector<4x128xf32>
    tpu.vector_store %arg17[%c124, %c0_89], %83 {strides = array<i32>} : memref<128x128xf32, #tpu.memory_space<vmem>>, vector<4x128xf32>,
    %c0_90 = arith.constant 0 : index
    %c0_91 = arith.constant 0 : index
    %85 = tpu.strided_load %arg17[%c0_90, %c0_91] {strides = array<i32: 2, 1>} : memref<128x128xf32, #tpu.memory_space<vmem>>, vector<64x128xf32>
    %c1_92 = arith.constant 1 : index
    %c0_93 = arith.constant 0 : index
    %86 = tpu.strided_load %arg17[%c1_92, %c0_93] {strides = array<i32: 2, 1>} : memref<128x128xf32, #tpu.memory_space<vmem>>, vector<64x128xf32>
    %87 = arith.maximumf %85, %86 : vector<64x128xf32>
    %c0_94 = arith.constant 0 : index
    %c0_95 = arith.constant 0 : index
    %88 = vector.load %arg18[%c0_94, %c0_95] : memref<64x128xf32, #tpu.memory_space<vmem>>, vector<64x128xf32>
    tpu.vector_store %arg18[%c0_94, %c0_95], %87 {strides = array<i32>} : memref<64x128xf32, #tpu.memory_space<vmem>>, vector<64x128xf32>,
    %c0_96 = arith.constant 0 : index
    %c0_97 = arith.constant 0 : index
    %89 = tpu.strided_load %arg18[%c0_96, %c0_97] {strides = array<i32: 8, 1>} : memref<64x128xf32, #tpu.memory_space<vmem>>, vector<8x128xf32>
    %90 = arith.truncf %89 : vector<8x128xf32> to vector<8x128xbf16>
    %c0_98 = arith.constant 0 : index
    %c0_99 = arith.constant 0 : index
    %91 = vector.load %arg8[%c0_98, %c0_99] : memref<640x128xbf16, #tpu.memory_space<vmem>>, vector<128x128xbf16>
    %cst_100 = arith.constant dense<0.000000e+00> : vector<8x128xf32>
    %92 = tpu.matmul %90, %91, %cst_100 {dimension_numbers = #tpu.dot_dimension_numbers<[1], [0], [0], [1], [0, 0, 1, 1], [], []>} : vector<8x128xbf16>, vector<128x128xbf16>, vector<8x128xf32> -> vector<8x128xf32>
    %c1_101 = arith.constant 1 : index
    %c0_102 = arith.constant 0 : index
    %93 = tpu.strided_load %arg18[%c1_101, %c0_102] {strides = array<i32: 8, 1>} : memref<64x128xf32, #tpu.memory_space<vmem>>, vector<8x128xf32>
    %94 = arith.truncf %93 : vector<8x128xf32> to vector<8x128xbf16>
    %c128 = arith.constant 128 : index
    %c0_103 = arith.constant 0 : index
    %95 = vector.load %arg8[%c128, %c0_103] : memref<640x128xbf16, #tpu.memory_space<vmem>>, vector<128x128xbf16>
    %cst_104 = arith.constant dense<0.000000e+00> : vector<8x128xf32>
    %96 = tpu.matmul %94, %95, %cst_104 {dimension_numbers = #tpu.dot_dimension_numbers<[1], [0], [0], [1], [0, 0, 1, 1], [], []>} : vector<8x128xbf16>, vector<128x128xbf16>, vector<8x128xf32> -> vector<8x128xf32>
    %97 = arith.addf %92, %96 : vector<8x128xf32>
    %c2_105 = arith.constant 2 : index
    %c0_106 = arith.constant 0 : index
    %98 = tpu.strided_load %arg18[%c2_105, %c0_106] {strides = array<i32: 8, 1>} : memref<64x128xf32, #tpu.memory_space<vmem>>, vector<8x128xf32>
    %99 = arith.truncf %98 : vector<8x128xf32> to vector<8x128xbf16>
    %c256 = arith.constant 256 : index
    %c0_107 = arith.constant 0 : index
    %100 = vector.load %arg8[%c256, %c0_107] : memref<640x128xbf16, #tpu.memory_space<vmem>>, vector<128x128xbf16>
    %cst_108 = arith.constant dense<0.000000e+00> : vector<8x128xf32>
    %101 = tpu.matmul %99, %100, %cst_108 {dimension_numbers = #tpu.dot_dimension_numbers<[1], [0], [0], [1], [0, 0, 1, 1], [], []>} : vector<8x128xbf16>, vector<128x128xbf16>, vector<8x128xf32> -> vector<8x128xf32>
    %102 = arith.addf %97, %101 : vector<8x128xf32>
    %c3_109 = arith.constant 3 : index
    %c0_110 = arith.constant 0 : index
    %103 = tpu.strided_load %arg18[%c3_109, %c0_110] {strides = array<i32: 8, 1>} : memref<64x128xf32, #tpu.memory_space<vmem>>, vector<8x128xf32>
    %104 = arith.truncf %103 : vector<8x128xf32> to vector<8x128xbf16>
    %c384 = arith.constant 384 : index
    %c0_111 = arith.constant 0 : index
    %105 = vector.load %arg8[%c384, %c0_111] : memref<640x128xbf16, #tpu.memory_space<vmem>>, vector<128x128xbf16>
    %cst_112 = arith.constant dense<0.000000e+00> : vector<8x128xf32>
    %106 = tpu.matmul %104, %105, %cst_112 {dimension_numbers = #tpu.dot_dimension_numbers<[1], [0], [0], [1], [0, 0, 1, 1], [], []>} : vector<8x128xbf16>, vector<128x128xbf16>, vector<8x128xf32> -> vector<8x128xf32>
    %107 = arith.addf %102, %106 : vector<8x128xf32>
    %c4_113 = arith.constant 4 : index
    %c0_114 = arith.constant 0 : index
    %108 = tpu.strided_load %arg18[%c4_113, %c0_114] {strides = array<i32: 8, 1>} : memref<64x128xf32, #tpu.memory_space<vmem>>, vector<8x128xf32>
    %109 = arith.truncf %108 : vector<8x128xf32> to vector<8x128xbf16>
    %c512 = arith.constant 512 : index
    %c0_115 = arith.constant 0 : index
    %110 = vector.load %arg8[%c512, %c0_115] : memref<640x128xbf16, #tpu.memory_space<vmem>>, vector<128x128xbf16>
    %cst_116 = arith.constant dense<0.000000e+00> : vector<8x128xf32>
    %111 = tpu.matmul %109, %110, %cst_116 {dimension_numbers = #tpu.dot_dimension_numbers<[1], [0], [0], [1], [0, 0, 1, 1], [], []>} : vector<8x128xbf16>, vector<128x128xbf16>, vector<8x128xf32> -> vector<8x128xf32>
    %112 = arith.addf %107, %111 : vector<8x128xf32>
    %c0_117 = arith.constant 0 : index
    %c0_118 = arith.constant 0 : index
    %113 = vector.load %arg9[%c0_117, %c0_118] : memref<1x128xf32, #tpu.memory_space<vmem>>, vector<1x128xf32>
    %114 = vector.broadcast %113 : vector<1x128xf32> to vector<8x128xf32>
    %115 = arith.addf %112, %114 : vector<8x128xf32>
    %cst_119 = arith.constant 0.000000e+00 : f32
    %116 = vector.broadcast %cst_119 : f32 to vector<8x128xf32>
    %117 = arith.maximumf %115, %116 : vector<8x128xf32>
    %118 = arith.truncf %117 : vector<8x128xf32> to vector<8x128xbf16>
    %c0_120 = arith.constant 0 : index
    %c0_121 = arith.constant 0 : index
    %119 = vector.load %arg10[%c0_120, %c0_121] : memref<128x128xbf16, #tpu.memory_space<vmem>>, vector<128x128xbf16>
    %cst_122 = arith.constant dense<0.000000e+00> : vector<8x128xf32>
    %120 = tpu.matmul %118, %119, %cst_122 {dimension_numbers = #tpu.dot_dimension_numbers<[1], [0], [0], [1], [0, 0, 1, 1], [], []>} : vector<8x128xbf16>, vector<128x128xbf16>, vector<8x128xf32> -> vector<8x128xf32>
    %c0_123 = arith.constant 0 : index
    %c0_124 = arith.constant 0 : index
    %121 = vector.load %arg11[%c0_123, %c0_124] : memref<1x128xf32, #tpu.memory_space<vmem>>, vector<1x128xf32>
    %122 = vector.broadcast %121 : vector<1x128xf32> to vector<8x128xf32>
    %123 = arith.addf %120, %122 : vector<8x128xf32>
    %cst_125 = arith.constant 0.000000e+00 : f32
    %124 = vector.broadcast %cst_125 : f32 to vector<8x128xf32>
    %125 = arith.maximumf %123, %124 : vector<8x128xf32>
    %126 = arith.truncf %125 : vector<8x128xf32> to vector<8x128xbf16>
    %c0_126 = arith.constant 0 : index
    %c0_127 = arith.constant 0 : index
    %127 = vector.load %arg12[%c0_126, %c0_127] : memref<128x128xbf16, #tpu.memory_space<vmem>>, vector<128x128xbf16>
    %cst_128 = arith.constant dense<0.000000e+00> : vector<8x128xf32>
    %128 = tpu.matmul %126, %127, %cst_128 {dimension_numbers = #tpu.dot_dimension_numbers<[1], [0], [0], [1], [0, 0, 1, 1], [], []>} : vector<8x128xbf16>, vector<128x128xbf16>, vector<8x128xf32> -> vector<8x128xf32>
    %c0_129 = arith.constant 0 : index
    %c0_130 = arith.constant 0 : index
    %129 = vector.load %arg13[%c0_129, %c0_130] : memref<1x128xf32, #tpu.memory_space<vmem>>, vector<1x128xf32>
    %130 = vector.broadcast %129 : vector<1x128xf32> to vector<8x128xf32>
    %131 = arith.addf %128, %130 : vector<8x128xf32>
    %132 = tpu.iota {dimensions = array<i32: 1>} : vector<8x128xi32>
    %c10_i32 = arith.constant 10 : i32
    %133 = vector.broadcast %c10_i32 : i32 to vector<8x128xi32>
    %134 = arith.cmpi slt, %132, %133 : vector<8x128xi32>
    %cst_131 = arith.constant -1.000000e+30 : f32
    %135 = vector.broadcast %cst_131 : f32 to vector<8x128xf32>
    %136 = arith.select %134, %131, %135 : vector<8x128xi1>, vector<8x128xf32>
    %cst_132 = arith.constant dense<0xFF800000> : vector<8xf32>
    %137 = vector.multi_reduction <maximumf>, %136, %cst_132 [1] : vector<8x128xf32> to vector<8xf32>
    %138 = vector.shape_cast %137 : vector<8xf32> to vector<8x1xf32>
    %139 = vector.broadcast %138 : vector<8x1xf32> to vector<8x128xf32>
    %140 = arith.subf %136, %139 : vector<8x128xf32>
    %141 = math.exp %140 : vector<8x128xf32>
    %cst_133 = arith.constant dense<0.000000e+00> : vector<8xf32>
    %142 = vector.multi_reduction <add>, %141, %cst_133 [1] : vector<8x128xf32> to vector<8xf32>
    %143 = vector.shape_cast %142 : vector<8xf32> to vector<8x1xf32>
    %144 = math.log %143 : vector<8x1xf32>
    %145 = vector.broadcast %144 : vector<8x1xf32> to vector<8x128xf32>
    %146 = arith.subf %140, %145 : vector<8x128xf32>
    %c0_134 = arith.constant 0 : index
    %c0_135 = arith.constant 0 : index
    %147 = vector.load %arg14[%c0_134, %c0_135] : memref<8x128xf32, #tpu.memory_space<vmem>>, vector<8x128xf32>
    tpu.vector_store %arg14[%c0_134, %c0_135], %146 {strides = array<i32>} : memref<8x128xf32, #tpu.memory_space<vmem>>, vector<8x128xf32>,
    return
  }
  func.func @transform_0(%arg0: i32) -> (i32, i32) {
    %c0_i32 = arith.constant 0 : i32
    %c0_i32_0 = arith.constant 0 : i32
    return %arg0, %c0_i32 : i32, i32
  }
  func.func @transform_1(%arg0: i32) -> (i32, i32, i32) {
    %c0_i32 = arith.constant 0 : i32
    %c0_i32_0 = arith.constant 0 : i32
    %c0_i32_1 = arith.constant 0 : i32
    %c0_i32_2 = arith.constant 0 : i32
    return %c0_i32, %c0_i32_0, %c0_i32_1 : i32, i32, i32
  }
  func.func @transform_2(%arg0: i32) -> (i32, i32) {
    %c0_i32 = arith.constant 0 : i32
    %c0_i32_0 = arith.constant 0 : i32
    %c0_i32_1 = arith.constant 0 : i32
    return %c0_i32, %c0_i32_0 : i32, i32
  }
  func.func @transform_3(%arg0: i32) -> (i32, i32, i32) {
    %c0_i32 = arith.constant 0 : i32
    %c0_i32_0 = arith.constant 0 : i32
    %c0_i32_1 = arith.constant 0 : i32
    %c0_i32_2 = arith.constant 0 : i32
    return %c0_i32, %c0_i32_0, %c0_i32_1 : i32, i32, i32
  }
  func.func @transform_4(%arg0: i32) -> (i32, i32, i32) {
    %c0_i32 = arith.constant 0 : i32
    %c0_i32_0 = arith.constant 0 : i32
    %c0_i32_1 = arith.constant 0 : i32
    %c0_i32_2 = arith.constant 0 : i32
    return %c0_i32, %c0_i32_0, %c0_i32_1 : i32, i32, i32
  }
  func.func @transform_5(%arg0: i32) -> (i32, i32) {
    %c0_i32 = arith.constant 0 : i32
    %c0_i32_0 = arith.constant 0 : i32
    %c0_i32_1 = arith.constant 0 : i32
    return %c0_i32, %c0_i32_0 : i32, i32
  }
  func.func @transform_6(%arg0: i32) -> (i32, i32, i32) {
    %c0_i32 = arith.constant 0 : i32
    %c0_i32_0 = arith.constant 0 : i32
    %c0_i32_1 = arith.constant 0 : i32
    %c0_i32_2 = arith.constant 0 : i32
    return %c0_i32, %c0_i32_0, %c0_i32_1 : i32, i32, i32
  }
  func.func @transform_7(%arg0: i32) -> (i32, i32) {
    %c0_i32 = arith.constant 0 : i32
    %c0_i32_0 = arith.constant 0 : i32
    %c0_i32_1 = arith.constant 0 : i32
    return %c0_i32, %c0_i32_0 : i32, i32
  }
  func.func @transform_8(%arg0: i32) -> (i32, i32) {
    %c0_i32 = arith.constant 0 : i32
    %c0_i32_0 = arith.constant 0 : i32
    %c0_i32_1 = arith.constant 0 : i32
    return %c0_i32, %c0_i32_0 : i32, i32
  }
  func.func @transform_9(%arg0: i32) -> (i32, i32) {
    %c0_i32 = arith.constant 0 : i32
    %c0_i32_0 = arith.constant 0 : i32
    %c0_i32_1 = arith.constant 0 : i32
    return %c0_i32, %c0_i32_0 : i32, i32
  }
  func.func @transform_10(%arg0: i32) -> (i32, i32) {
    %c0_i32 = arith.constant 0 : i32
    %c0_i32_0 = arith.constant 0 : i32
    %c0_i32_1 = arith.constant 0 : i32
    return %c0_i32, %c0_i32_0 : i32, i32
  }
  func.func @transform_11(%arg0: i32) -> (i32, i32) {
    %c0_i32 = arith.constant 0 : i32
    %c0_i32_0 = arith.constant 0 : i32
    %c0_i32_1 = arith.constant 0 : i32
    return %c0_i32, %c0_i32_0 : i32, i32
  }
  func.func @transform_12(%arg0: i32) -> (i32, i32) {
    %c0_i32 = arith.constant 0 : i32
    %c0_i32_0 = arith.constant 0 : i32
    %c0_i32_1 = arith.constant 0 : i32
    return %c0_i32, %c0_i32_0 : i32, i32
  }
  func.func @transform_13(%arg0: i32) -> (i32, i32) {
    %c0_i32 = arith.constant 0 : i32
    %c0_i32_0 = arith.constant 0 : i32
    return %arg0, %c0_i32 : i32, i32
  }
}

</mosaic_0001>

<bundles_post_ra>
// kernel: tile.13
= control target key start
LH: loop header
LB: loop body
LE: loop exit
PB: predicated region body
PF: predicated region fallthrough
CT: control target
= control target key end

     0   :  { %s40_s0 = inlined_call_operand.vmem [shape: f32[6], index: 0, kind: input, shape index: {}]   ;;  %s41_s1 = inlined_call_operand.vmem [shape: f32[28,6], index: 1, kind: output, shape index: {}]  }
   0x1   :  { %v4_v0 = vld [vmem:[%s40_s0] ss:$0 sm:$0xff] }
   0x2   :  { %5 = vst [vmem:[%s41_s1] sm:$0xff] %v4_v0 }
   0x3   :  { %12 = vst [vmem:[%s41_s1 + $0x8] sm:$0xff] %v4_v0 }
   0x4   :  { %13 = vst [vmem:[%s41_s1 + $0x10] sm:$0xff] %v4_v0 }
   0x5   :  { %14 = vst [vmem:[%s41_s1 + $0x18] sm:$0xff] %v4_v0 }

// kernel: tile.14
= control target key start
LH: loop header
LB: loop body
LE: loop exit
PB: predicated region body
PF: predicated region fallthrough
CT: control target
= control target key end

     0   :  { %vm9_vm0 = vcmask 15360   ;;  %s248_s12 = smov 126   ;;  %s249_s13 = smov 114   ;;  %vm3_vm1 = vcmask 48128   ;;  %vm13_vm2 = vcmask 31744   ;;  %vm16_vm3 = vcmask 1048560   ;;  %s378_s0 = inlined_call_operand.vmem [shape: f32[28,6], index: 0, kind: input, shape index: {}]   ;;  %s379_s1 = inlined_call_operand.vmem [shape: f32[1,168], index: 1, kind: output, shape index: {}]  }
   0x1   :  { %v192_v0 = vld [vmem:[%s378_s0 + $0x15] sm:$0x1]   ;;  %v195_v3 = vld [vmem:[%s378_s0 + $0x13] sm:$0x1]   ;;  %v197_v4 = vld [vmem:[%s378_s0 + $0x11] sm:$0x1]  }
   0x2   :  { %v193_v1 = vld [vmem:[%s378_s0 + $0x15] sm:$0x1]   ;;  %26 = vrot.lane.b32.xlu1 %v195_v3, %s249_s13  ;;  %s250_s16 = smov 102   ;;  %v194_v5 = vld [vmem:[%s378_s0 + $0x14] sm:$0x1]   ;;  %s251_s21 = smov 120  }
   0x3   :  { %v10_v2 = vsel %vm9_vm0, %v193_v1, %v192_v0  ;;  %38 = vrot.lane.b32.xlu2 %v197_v4, %s250_s16  ;;  %v196_v6 = vld [vmem:[%s378_s0 + $0x12] sm:$0x1]   ;;  %s252_s22 = smov 108   ;;  %v198_v7 = vld [vmem:[%s378_s0 + $0x10] sm:$0x1]   ;;  %s253_s25 = smov 96  }
   0x4   :  { %11 = vrot.lane.b32.xlu0 %v10_v2, %s248_s12  ;;  %v199_v8 = vld [vmem:[%s378_s0 + $0xf] sm:$0x1]   ;;  %v200_v9 = vld [vmem:[%s378_s0 + $0xe] sm:$0x1]   ;;  %s254_s30 = smov 90   ;;  %s255_s2 = smov 84  }
   0x5   :  { %v201_v10 = vld [vmem:[%s378_s0 + $0xd] sm:$0x1]   ;;  %s256_s5 = smov 78   ;;  %v202_v11 = vld [vmem:[%s378_s0 + $0xc] sm:$0x1]   ;;  %s257_s10 = smov 72  }
   0x6   :  { %v203_v12 = vld [vmem:[%s378_s0 + $0xb] sm:$0x1]   ;;  %s258_s11 = smov 66   ;;  %v204_v13 = vld [vmem:[%s378_s0 + $0xa] sm:$0x1]   ;;  %s259_s14 = smov 60  }
   0x7   :  { %v205_v14 = vld [vmem:[%s378_s0 + $0x9] sm:$0x1]   ;;  %v206_v15 = vld [vmem:[%s378_s0 + $0x8] sm:$0x1]   ;;  %s260_s19 = smov 54   ;;  %s261_s20 = smov 48  }
   0x8   :  { %v207_v16 = vld [vmem:[%s378_s0 + $0x7] sm:$0x1]   ;;  %s262_s23 = smov 42   ;;  %v208_v17 = vld [vmem:[%s378_s0 + $0x6] sm:$0x1]   ;;  %s263_s28 = smov 36  }
   0x9   :  { %v209_v18 = vld [vmem:[%s378_s0 + $0x1b] sm:$0x1]   ;;  %s264_s29 = smov 34   ;;  %v210_v19 = vld [vmem:[%s378_s0 + $0x5] sm:$0x1]   ;;  %s265_s3 = smov 30  }
   0xa   :  { %32 = vrot.lane.b32.xlu1 %v196_v6, %s252_s22  ;;  %v211_v20 = vld [vmem:[%s378_s0 + $0x1a] sm:$0x1]   ;;  %v212_v21 = vld [vmem:[%s378_s0 + $0x4] sm:$0x1]   ;;  %s266_s8 = smov 28   ;;  %s267_s9 = smov 24  }
   0xb   :  { %44 = vrot.lane.b32.xlu2 %v198_v7, %s253_s25  ;;  %v213_v22 = vld [vmem:[%s378_s0 + $0x19] sm:$0x1]   ;;  %s268_s12 = smov 22   ;;  %v214_v23 = vld [vmem:[%s378_s0 + $0x3] sm:$0x1]   ;;  %s269_s17 = smov 18  }
   0xc   :  { %20 = vrot.lane.b32.xlu0 %v194_v5, %s251_s21  ;;  %v215_v24 = vld [vmem:[%s378_s0 + $0x18] sm:$0x1]   ;;  %s270_s18 = smov 16   ;;  %v216_v25 = vld [vmem:[%s378_s0 + $0x2] sm:$0x1]   ;;  %s271_s21 = smov 12  }
   0xd   :  { %v217_v26 = vld [vmem:[%s378_s0 + $0x17] sm:$0x1]   ;;  %v218_v27 = vld [vmem:[%s378_s0 + $0x1] sm:$0x1]   ;;  %s272_s26 = smov 10   ;;  %s273_s27 = smov 6  }
   0xe   :  { %v219_v28 = vld [vmem:[%s378_s0 + $0x16] sm:$0x1]   ;;  %v2_v29 = vld [vmem:[%s378_s0] sm:$0x1]   ;;  %vm22_vm4 = vcmask 1032128   ;;  %vm28_vm5 = vcmask 982928  }
   0xf   :  { %4 = vst.msk [vmem:[#allocation0] sm:$0x1] %vm3_vm1, %v2_v29   ;;  %vm34_vm6 = vcmask 933728   ;;  %vm40_vm7 = vcmask 884528   ;;  %vm46_vm8 = vcmask 835328   ;;  %vm52_vm9 = vcmask 786128  }
  0x10   :  { %vm58_vm10 = vcmask 736928   ;;  %vm64_vm11 = vcmask 687728   ;;  %vm70_vm12 = vcmask 638528   ;;  %vm76_vm13 = vcmask 589328  }
  0x11   :  { %vm82_vm14 = vcmask 540128   ;;  %vm88_vm15 = vcmask 490928   ;;  %vm94_vm0 = vcmask 441728   ;;  %vm100_vm1 = vcmask 392528  }
  0x12   :  { %56 = vrot.lane.b32.xlu1 %v200_v9, %s255_s2 }
  0x13   :  { %62 = vrot.lane.b32.xlu2 %v201_v10, %s256_s5 }
  0x14   :  { %50 = vrot.lane.b32.xlu0 %v199_v8, %s254_s30  ;;  %s274_s30 = smov 4  }
  0x1a   :  { %74 = vrot.lane.b32.xlu1 %v203_v12, %s258_s11 }
  0x1b   :  { %80 = vrot.lane.b32.xlu2 %v204_v13, %s259_s14 }
  0x1c   :  { %68 = vrot.lane.b32.xlu0 %v202_v11, %s257_s10 }
  0x22   :  { %92 = vrot.lane.b32.xlu1 %v206_v15, %s261_s20 }
  0x23   :  { %98 = vrot.lane.b32.xlu2 %v207_v16, %s262_s23 }
  0x24   :  { %86 = vrot.lane.b32.xlu0 %v205_v14, %s260_s19 }
  0x2a   :  { %110 = vrot.lane.b32.xlu1 %v209_v18, %s264_s29 }
  0x2b   :  { %117 = vrot.lane.b32.xlu2 %v210_v19, %s265_s3 }
  0x2c   :  { %104 = vrot.lane.b32.xlu0 %v208_v17, %s263_s28 }
  0x32   :  { %130 = vrot.lane.b32.xlu1 %v212_v21, %s267_s9 }
  0x33   :  { %136 = vrot.lane.b32.xlu2 %v213_v22, %s268_s12 }
  0x34   :  { %123 = vrot.lane.b32.xlu0 %v211_v20, %s266_s8 }
  0x3a   :  { %149 = vrot.lane.b32.xlu1 %v215_v24, %s270_s18 }
  0x3b   :  { %156 = vrot.lane.b32.xlu2 %v216_v25, %s271_s21 }
  0x3c   :  { %143 = vrot.lane.b32.xlu0 %v214_v23, %s269_s17 }
  0x42   :  { %169 = vrot.lane.b32.xlu1 %v218_v27, %s273_s27 }
  0x43   :  { %175 = vrot.lane.b32.xlu2 %v219_v28, %s274_s30 }
  0x44   :  { %162 = vrot.lane.b32.xlu0 %v217_v26, %s272_s26 }
  0x5d   :  { %v39_v30 = vpop.permute.xlu2 %38  }
  0x65   :  { %v45_v31 = vpop.permute.xlu2 %44  }
  0x6d   :  { %v63_v32 = vpop.permute.xlu2 %62  }
  0x74   :  { %v27_v34 = vpop.permute.xlu1 %26  }
  0x75   :  { %v81_v35 = vpop.permute.xlu2 %80  }
  0x76   :  { %v12_v33 = vpop.permute.xlu0 %11  }
  0x77   :  { %15 = vst.msk [vmem:[#allocation0 + $0x8] sm:$0x1] %vm13_vm2, %v12_v33   ;;  %vm106_vm2 = vcmask 343328  }
  0x78   :  { %17 = vst.msk [vmem:[#allocation0] sm:$0x1] %vm16_vm3, %v12_v33   ;;  %vm119_vm3 = vcmask 294128  }
  0x7c   :  { %v33_v37 = vpop.permute.xlu1 %32  }
  0x7d   :  { %v99_v38 = vpop.permute.xlu2 %98  }
  0x7e   :  { %v21_v36 = vpop.permute.xlu0 %20  }
  0x7f   :  { %23 = vst.msk [vmem:[#allocation0] sm:$0x1] %vm22_vm4, %v21_v36   ;;  %vm112_vm4 = vcmask 326928  }
  0x80   :  { %29 = vst.msk [vmem:[#allocation0] sm:$0x1] %vm28_vm5, %v27_v34   ;;  %vm125_vm5 = vcmask 277728  }
  0x81   :  { %35 = vst.msk [vmem:[#allocation0] sm:$0x1] %vm34_vm6, %v33_v37   ;;  %vm138_vm6 = vcmask 228528  }
  0x82   :  { %41 = vst.msk [vmem:[#allocation0] sm:$0x1] %vm40_vm7, %v39_v30   ;;  %vm132_vm7 = vcmask 244928  }
  0x83   :  { %47 = vst.msk [vmem:[#allocation0] sm:$0x1] %vm46_vm8, %v45_v31   ;;  %vm145_vm8 = vcmask 195728  }
  0x84   :  { %v57_v40 = vpop.permute.xlu1 %56  }
  0x85   :  { %v118_v41 = vpop.permute.xlu2 %117  }
  0x86   :  { %v51_v39 = vpop.permute.xlu0 %50  }
  0x87   :  { %53 = vst.msk [vmem:[#allocation0] sm:$0x1] %vm52_vm9, %v51_v39   ;;  %vm158_vm9 = vcmask 146528  }
  0x88   :  { %59 = vst.msk [vmem:[#allocation0] sm:$0x1] %vm58_vm10, %v57_v40   ;;  %vm151_vm10 = vcmask 179328  }
  0x89   :  { %65 = vst.msk [vmem:[#allocation0] sm:$0x1] %vm64_vm11, %v63_v32   ;;  %vm164_vm11 = vcmask 130128  }
  0x8c   :  { %v75_v43 = vpop.permute.xlu1 %74  }
  0x8d   :  { %v137_v44 = vpop.permute.xlu2 %136  }
  0x8e   :  { %v69_v42 = vpop.permute.xlu0 %68  }
  0x8f   :  { %71 = vst.msk [vmem:[#allocation0] sm:$0x1] %vm70_vm12, %v69_v42   ;;  %vm177_vm12 = vcmask 80928  }
  0x90   :  { %77 = vst.msk [vmem:[#allocation0] sm:$0x1] %vm76_vm13, %v75_v43   ;;  %vm171_vm13 = vcmask 97328  }
  0x91   :  { %83 = vst.msk [vmem:[#allocation0] sm:$0x1] %vm82_vm14, %v81_v35  }
  0x94   :  { %v93_v46 = vpop.permute.xlu1 %92  }
  0x95   :  { %v157_v47 = vpop.permute.xlu2 %156  }
  0x96   :  { %v87_v45 = vpop.permute.xlu0 %86  }
  0x97   :  { %89 = vst.msk [vmem:[#allocation0] sm:$0x1] %vm88_vm15, %v87_v45  }
  0x98   :  { %95 = vst.msk [vmem:[#allocation0] sm:$0x1] %vm94_vm0, %v93_v46  }
  0x99   :  { %101 = vst.msk [vmem:[#allocation0] sm:$0x1] %vm100_vm1, %v99_v38  }
  0x9c   :  { %v111_v49 = vpop.permute.xlu1 %110  }
  0x9d   :  { %114 = vst.msk [vmem:[#allocation0 + $0x8] sm:$0x1] %vm112_vm4, %v111_v49   ;;  %v176_v50 = vpop.permute.xlu2 %175  }
  0x9e   :  { %v105_v48 = vpop.permute.xlu0 %104  }
  0x9f   :  { %107 = vst.msk [vmem:[#allocation0] sm:$0x1] %vm106_vm2, %v105_v48  }
  0xa0   :  { %120 = vst.msk [vmem:[#allocation0] sm:$0x1] %vm119_vm3, %v118_v41  }
  0xa4   :  { %v131_v52 = vpop.permute.xlu1 %130  }
  0xa5   :  { %133 = vst.msk [vmem:[#allocation0] sm:$0x1] %vm132_vm7, %v131_v52  }
  0xa6   :  { %v124_v51 = vpop.permute.xlu0 %123  }
  0xa7   :  { %127 = vst.msk [vmem:[#allocation0 + $0x8] sm:$0x1] %vm125_vm5, %v124_v51  }
  0xa8   :  { %140 = vst.msk [vmem:[#allocation0 + $0x8] sm:$0x1] %vm138_vm6, %v137_v44  }
  0xac   :  { %v150_v54 = vpop.permute.xlu1 %149  }
  0xad   :  { %153 = vst.msk [vmem:[#allocation0 + $0x8] sm:$0x1] %vm151_vm10, %v150_v54  }
  0xae   :  { %v144_v53 = vpop.permute.xlu0 %143  }
  0xaf   :  { %146 = vst.msk [vmem:[#allocation0] sm:$0x1] %vm145_vm8, %v144_v53  }
  0xb0   :  { %159 = vst.msk [vmem:[#allocation0] sm:$0x1] %vm158_vm9, %v157_v47  }
  0xb4   :  { %v170_v56 = vpop.permute.xlu1 %169  }
  0xb5   :  { %172 = vst.msk [vmem:[#allocation0] sm:$0x1] %vm171_vm13, %v170_v56  }
  0xb6   :  { %v163_v55 = vpop.permute.xlu0 %162  }
  0xb7   :  { %166 = vst.msk [vmem:[#allocation0 + $0x8] sm:$0x1] %vm164_vm11, %v163_v55  }
  0xb8   :  { %179 = vst.msk [vmem:[#allocation0 + $0x8] sm:$0x1] %vm177_vm12, %v176_v50  }
  0xbc   :  { %v182_v58 = vld [vmem:[#allocation0] sm:$0x1] }
  0xbd   :  { %185 = vst [vmem:[%s379_s1] sm:$0x1] %v182_v58 }
  0xbf   :  { %v187_v57 = vld [vmem:[#allocation0 + $0x8] sm:$0x1] }
  0xc0   :  { %220 = vst [vmem:[%s379_s1 + $0x1] sm:$0x1] %v187_v57 }

// kernel: tile.18
= control target key start
LH: loop header
LB: loop body
LE: loop exit
PB: predicated region body
PF: predicated region fallthrough
CT: control target
= control target key end

     0   :  { %s28_s0 = inlined_call_operand.vmem [shape: f32[16], index: 0, kind: input, shape index: {}]   ;;  %s29_s1 = inlined_call_operand.vmem [shape: f32[10,16], index: 1, kind: output, shape index: {}]  }
   0x1   :  { %v4_v0 = vld [vmem:[%s28_s0] ss:$0 sm:$0xff] }
   0x2   :  { %5 = vst [vmem:[%s29_s1] sm:$0xff] %v4_v0 }
   0x3   :  { %8 = vst [vmem:[%s29_s1 + $0x8] sm:$0xff] %v4_v0 }

// kernel: tile.19
= control target key start
LH: loop header
LB: loop body
LE: loop exit
PB: predicated region body
PF: predicated region fallthrough
CT: control target
= control target key end

     0   :  { %s76_s10 = smov 112   ;;  %s77_s11 = smov 80   ;;  %vm4_vm0 = vcmask 130048   ;;  %vm10_vm1 = vcmask 1048448   ;;  %vm16_vm2 = vcmask 917248   ;;  %vm22_vm3 = vcmask 786048   ;;  %s123_s0 = inlined_call_operand.vmem [shape: f32[10,16], index: 0, kind: input, shape index: {}]   ;;  %s124_s1 = inlined_call_operand.vmem [shape: f32[1,160], index: 1, kind: output, shape index: {}]  }
   0x1   :  { %v61_v0 = vld [vmem:[%s123_s0 + $0x7] sm:$0x1]   ;;  %v63_v1 = vld [vmem:[%s123_s0 + $0x5] sm:$0x1]   ;;  %v65_v2 = vld [vmem:[%s123_s0 + $0x3] sm:$0x1]  }
   0x2   :  { %8 = vrot.lane.b32.xlu0 %v61_v0, %s76_s10  ;;  %20 = vrot.lane.b32.xlu1 %v63_v1, %s77_s11  ;;  %s78_s14 = smov 48   ;;  %v62_v3 = vld [vmem:[%s123_s0 + $0x6] sm:$0x1]   ;;  %v64_v4 = vld [vmem:[%s123_s0 + $0x4] sm:$0x1]   ;;  %s79_s19 = smov 96  }
   0x3   :  { %32 = vrot.lane.b32.xlu2 %v65_v2, %s78_s14  ;;  %s80_s20 = smov 64   ;;  %v66_v5 = vld [vmem:[%s123_s0 + $0x2] sm:$0x1]   ;;  %s43_s23 = smov 3  ;;  %vm28_vm4 = vcmask 654848   ;;  %vm34_vm5 = vcmask 523648  }
   0x4   :  { %s81_s24 = smov 32   ;;  %v67_v6 = vld [vmem:[%s123_s0 + $0x1] ss:$8 sm:%s43_s23]   ;;  %s82_s27 = smov 16   ;;  %vm40_vm6 = vcmask 392448   ;;  %vm47_vm7 = vcmask 261248  }
   0x5   :  { %s2_s28 = smov 3 }
   0x6   :  { %v3_v7 = vld [vmem:[%s123_s0] ss:$8 sm:%s2_s28]  }
   0x7   :  { %5 = vst.msk [vmem:[#allocation0] ss:$8 sm:$0x3] %vm4_vm0, %v3_v7  }
   0xa   :  { %14 = vrot.lane.b32.xlu0 %v62_v3, %s79_s19  ;;  %26 = vrot.lane.b32.xlu1 %v64_v4, %s80_s20 }
   0xb   :  { %38 = vrot.lane.b32.xlu2 %v66_v5, %s81_s24 }
  0x12   :  { %45 = vrot.lane.b32.xlu0 %v67_v6, %s82_s27 }
  0x5d   :  { %v33_v8 = vpop.permute.xlu2 %32  }
  0x65   :  { %v39_v9 = vpop.permute.xlu2 %38  }
  0x74   :  { %v9_v10 = vpop.permute.xlu0 %8   ;;  %v21_v11 = vpop.permute.xlu1 %20  }
  0x75   :  { %11 = vst.msk [vmem:[#allocation0] sm:$0x1] %vm10_vm1, %v9_v10  }
  0x7c   :  { %v15_v12 = vpop.permute.xlu0 %14   ;;  %v27_v13 = vpop.permute.xlu1 %26  }
  0x7d   :  { %17 = vst.msk [vmem:[#allocation0] sm:$0x1] %vm16_vm2, %v15_v12  }
  0x7e   :  { %23 = vst.msk [vmem:[#allocation0] sm:$0x1] %vm22_vm3, %v21_v11  }
  0x7f   :  { %29 = vst.msk [vmem:[#allocation0] sm:$0x1] %vm28_vm4, %v27_v13  }
  0x80   :  { %35 = vst.msk [vmem:[#allocation0] sm:$0x1] %vm34_vm5, %v33_v8  }
  0x81   :  { %41 = vst.msk [vmem:[#allocation0] sm:$0x1] %vm40_vm6, %v39_v9  }
  0x84   :  { %v46_v14 = vpop.permute.xlu0 %45  }
  0x85   :  { %48 = vst.msk [vmem:[#allocation0] ss:$8 sm:$0x3] %vm47_vm7, %v46_v14  }
  0x8c   :  { %v51_v15 = vld [vmem:[#allocation0] sm:$0x1]  ;;  %v56_v16 = vld [vmem:[#allocation0 + $0x8] sm:$0x1] }
  0x8d   :  { %54 = vst [vmem:[%s124_s1] sm:$0x1] %v51_v15 }
  0x8e   :  { %68 = vst [vmem:[%s124_s1 + $0x1] sm:$0x1] %v56_v16 }

// kernel: classifier_forward.1
= control target key start
LH: loop header
LB: loop body
LE: loop exit
PB: predicated region body
PF: predicated region fallthrough
CT: control target
= control target key end

     0   :  { %vm183_vm0 = vsmask.f32 7424  ;;  %vm371_vm1 = vcmask 785408   ;;  %vm889_vm2 = vcmask 1046528   ;;  %vm1288_vm3 = vsmask.f32 6400  ;;  %s10430_s1 = inlined_call_operand.vmem [shape: bf16[5,96,168], index: 1, kind: input, shape index: {}]   ;;  %s10431_s0 = inlined_call_operand.vmem [shape: bf16[256,96], index: 0, kind: input, shape index: {}]   ;;  %s10432_s3 = inlined_call_operand.vmem [shape: bf16[2,168,128], index: 3, kind: input, shape index: {}]   ;;  %s10433_s2 = inlined_call_operand.vmem [shape: f32[1,168], index: 2, kind: input, shape index: {}]   ;;  %s10434_s4 = inlined_call_operand.vmem [shape: bf16[5,128,160], index: 4, kind: input, shape index: {}]   ;;  %s10435_s6 = inlined_call_operand.vmem [shape: bf16[2,160,128], index: 6, kind: input, shape index: {}]   ;;  %s10436_s5 = inlined_call_operand.vmem [shape: f32[1,160], index: 5, kind: input, shape index: {}]   ;;  %s10437_s7 = inlined_call_operand.vmem [shape: bf16[640,128], index: 7, kind: input, shape index: {}]   ;;  %s10438_s8 = inlined_call_operand.vmem [shape: f32[1,128], index: 8, kind: input, shape index: {}]   ;;  %s10439_s10 = inlined_call_operand.vmem [shape: f32[1,128], index: 10, kind: input, shape index: {}]   ;;  %s10440_s9 = inlined_call_operand.vmem [shape: bf16[128,128], index: 9, kind: input, shape index: {}]   ;;  %s10441_s11 = inlined_call_operand.vmem [shape: bf16[128,128], index: 11, kind: input, shape index: {}]   ;;  %s10442_s12 = inlined_call_operand.vmem [shape: f32[1,128], index: 12, kind: input, shape index: {}]   ;;  %s10443_s13 = inlined_call_operand.vmem [shape: f32[8,128], index: 13, kind: output, shape index: {}]  }
   0x1   :  { %v5610_v0 = vld [vmem:[%s10430_s1 + $0xb0] sm:$0xf]  ;;  %v6922_v1 = vld [vmem:[%s10430_s1 + $0xb4] sm:$0xf0]  ;;  %v6921_v2 = vld [vmem:[%s10430_s1 + $0xb4] sm:$0xf] }
   0x2   :  { %v5611_v3 = vor.u32 %v6922_v1, %v5610_v0  ;;  %v5612_v4 = vld [vmem:[%s10430_s1 + $0xb8] sm:$0xf0]  ;;  %v5690_v5 = vld [vmem:[%s10430_s1 + $0x50] sm:$0xf]  ;;  %v6910_v6 = vld [vmem:[%s10430_s1 + $0x54] sm:$0xf0] }
   0x3   :  { %v5615_v7 = vor.u32 %v6921_v2, %v5612_v4  ;;  %v5691_v8 = vor.u32 %v6910_v6, %v5690_v5  ;;  %v6909_v9 = vld [vmem:[%s10430_s1 + $0x54] sm:$0xf]  ;;  %v5692_v10 = vld [vmem:[%s10430_s1 + $0x58] sm:$0xf0]  ;;  %v5602_v11 = vld [vmem:[%s10430_s1 + $0xa0] sm:$0xf] }
   0x4   :  { %422 = vmatpush.bf16.msra.mxu0 %v5611_v3  ;;  %v5695_v12 = vor.u32 %v6909_v9, %v5692_v10  ;;  %v6920_v13 = vld [vmem:[%s10430_s1 + $0xa4] sm:$0xf0]  ;;  %v6919_v14 = vld [vmem:[%s10430_s1 + $0xa4] sm:$0xf]  ;;  %v5604_v15 = vld [vmem:[%s10430_s1 + $0xa8] sm:$0xf0] }
   0x5   :  { %511 = vmatpush.bf16.msra.mxu1 %v5615_v7  ;;  %696 = vmatpush.bf16.msra.mxu2 %v5691_v8  ;;  %v5603_v16 = vor.u32 %v6920_v13, %v5602_v11  ;;  %v5607_v17 = vor.u32 %v6919_v14, %v5604_v15  ;;  %v5682_v18 = vld [vmem:[%s10430_s1 + $0x40] sm:$0xf]  ;;  %v6908_v19 = vld [vmem:[%s10430_s1 + $0x44] sm:$0xf0]  ;;  %v6907_v20 = vld [vmem:[%s10430_s1 + $0x44] sm:$0xf] }
   0x6   :  { %785 = vmatpush.bf16.msra.mxu3 %v5695_v12  ;;  %v5683_v21 = vor.u32 %v6908_v19, %v5682_v18  ;;  %v5684_v22 = vld [vmem:[%s10430_s1 + $0x48] sm:$0xf0]  ;;  %v5594_v23 = vld [vmem:[%s10430_s1 + $0x90] sm:$0xf]  ;;  %v6918_v24 = vld [vmem:[%s10430_s1 + $0x94] sm:$0xf0] }
   0x7   :  { %v5687_v25 = vor.u32 %v6907_v20, %v5684_v22  ;;  %v6917_v26 = vld [vmem:[%s10430_s1 + $0x94] sm:$0xf]  ;;  %v5596_v27 = vld [vmem:[%s10430_s1 + $0x98] sm:$0xf0]  ;;  %v5674_v28 = vld [vmem:[%s10430_s1 + $0x30] sm:$0xf]  ;;  %v5595_v29 = vor.u32 %v6918_v24, %v5594_v23 }
   0x8   :  { %423 = vmatpush.bf16.msra.mxu0 %v5603_v16  ;;  %v6906_v30 = vld [vmem:[%s10430_s1 + $0x34] sm:$0xf0]  ;;  %v6905_v31 = vld [vmem:[%s10430_s1 + $0x34] sm:$0xf]  ;;  %v5676_v32 = vld [vmem:[%s10430_s1 + $0x38] sm:$0xf0]  ;;  %v5599_v33 = vor.u32 %v6917_v26, %v5596_v27 }
   0x9   :  { %512 = vmatpush.bf16.msra.mxu1 %v5607_v17  ;;  %697 = vmatpush.bf16.msra.mxu2 %v5683_v21  ;;  %v5675_v34 = vor.u32 %v6906_v30, %v5674_v28  ;;  %v5586_v35 = vld [vmem:[%s10430_s1 + $0x80] sm:$0xf]  ;;  %v6916_v36 = vld [vmem:[%s10430_s1 + $0x84] sm:$0xf0]  ;;  %v6915_v37 = vld [vmem:[%s10430_s1 + $0x84] sm:$0xf]  ;;  %v5679_v38 = vor.u32 %v6905_v31, %v5676_v32 }
   0xa   :  { %786 = vmatpush.bf16.msra.mxu3 %v5687_v25  ;;  %v5588_v39 = vld [vmem:[%s10430_s1 + $0x88] sm:$0xf0]  ;;  %v5666_v40 = vld [vmem:[%s10430_s1 + $0x20] sm:$0xf]  ;;  %v6904_v41 = vld [vmem:[%s10430_s1 + $0x24] sm:$0xf0]  ;;  %v5587_v44 = vor.u32 %v6916_v36, %v5586_v35 }
   0xb   :  { %v6903_v42 = vld [vmem:[%s10430_s1 + $0x24] sm:$0xf]  ;;  %v5668_v43 = vld [vmem:[%s10430_s1 + $0x28] sm:$0xf0]  ;;  %v5578_v45 = vld [vmem:[%s10430_s1 + $0x70] sm:$0xf]  ;;  %v5591_v46 = vor.u32 %v6915_v37, %v5588_v39  ;;  %v5667_v47 = vor.u32 %v6904_v41, %v5666_v40 }
   0xc   :  { %424 = vmatpush.bf16.msra.mxu0 %v5595_v29  ;;  %v6914_v48 = vld [vmem:[%s10430_s1 + $0x74] sm:$0xf0]  ;;  %v6913_v49 = vld [vmem:[%s10430_s1 + $0x74] sm:$0xf]  ;;  %v5580_v50 = vld [vmem:[%s10430_s1 + $0x78] sm:$0xf0]  ;;  %v5671_v51 = vor.u32 %v6903_v42, %v5668_v43 }
   0xd   :  { %513 = vmatpush.bf16.msra.mxu1 %v5599_v33  ;;  %698 = vmatpush.bf16.msra.mxu2 %v5675_v34  ;;  %v5658_v52 = vld [vmem:[%s10430_s1 + $0x10] sm:$0xf]  ;;  %v6902_v53 = vld [vmem:[%s10430_s1 + $0x14] sm:$0xf0]  ;;  %v6901_v54 = vld [vmem:[%s10430_s1 + $0x14] sm:$0xf]  ;;  %v5579_v58 = vor.u32 %v6914_v48, %v5578_v45  ;;  %v5583_v62 = vor.u32 %v6913_v49, %v5580_v50 }
   0xe   :  { %787 = vmatpush.bf16.msra.mxu3 %v5679_v38  ;;  %v5660_v55 = vld [vmem:[%s10430_s1 + $0x18] sm:$0xf0]  ;;  %v5570_v56 = vld [vmem:[%s10430_s1 + $0x60] sm:$0xf]  ;;  %v6912_v57 = vld [vmem:[%s10430_s1 + $0x64] sm:$0xf0]  ;;  %v5659_v63 = vor.u32 %v6902_v53, %v5658_v52 }
   0xf   :  { %v6911_v59 = vld [vmem:[%s10430_s1 + $0x64] sm:$0xf]  ;;  %v5572_v60 = vld [vmem:[%s10430_s1 + $0x68] sm:$0xf0]  ;;  %v5650_v61 = vld [vmem:[%s10430_s1] sm:$0xf]  ;;  %v5663_v3 = vor.u32 %v6901_v54, %v5660_v55  ;;  %v5571_v11 = vor.u32 %v6912_v57, %v5570_v56 }
  0x10   :  { %425 = vmatpush.bf16.msra.mxu0 %v5587_v44  ;;  %v6900_v0 = vld [vmem:[%s10430_s1 + $0x4] sm:$0xf0]  ;;  %v7446_v1 = vld [vmem:[%s10431_s0] sm:$0xff]   ;;  %v5652_v5 = vld [vmem:[%s10430_s1 + $0x8] sm:$0xf0]  ;;  %v5575_v13 = vor.u32 %v6911_v59, %v5572_v60  ;;  %vm2410_vm4 = vcmask 1043456  }
  0x11   :  { %514 = vmatpush.bf16.msra.mxu1 %v5591_v46  ;;  %699 = vmatpush.bf16.msra.mxu2 %v5667_v47  ;;  %10472 = vst [vmem:[#allocation6_spill] sm:$0xff] %v7446_v1  ;;  %v7451_v2 = vld [vmem:[%s10431_s0 + $0x8] sm:$0xff]  ;;  %v6899_v4 = vld [vmem:[%s10430_s1 + $0x4] sm:$0xf]  ;;  %v185_v6 = vshrl.u32 %v7446_v1, 16  ;;  %v187_v7 = vshll.u32 %v7446_v1, 16  ;;  %v5651_v14 = vor.u32 %v6900_v0, %v5650_v61 }
  0x12   :  { %788 = vmatpush.bf16.msra.mxu3 %v5671_v51  ;;  %v192_v8 = vshll.u32 %v7451_v2, 16  ;;  %v6933_v9 = vld [vmem:[%s10430_s1 + $0x114] sm:$0xf]  ;;  %v5784_v10 = vld [vmem:[%s10430_s1 + $0x118] sm:$0xf0]  ;;  %v5655_v16 = vor.u32 %v6899_v4, %v5652_v5  ;;  %v196_v27 = vshrl.u32 %v7451_v2, 16 }
  0x13   :  { %v189_v12 = vrot.slane %v187_v7, 1  ;;  %v5787_v18 = vor.u32 %v6933_v9, %v5784_v10  ;;  %v5782_v19 = vld [vmem:[%s10430_s1 + $0x110] sm:$0xf]  ;;  %v6934_v20 = vld [vmem:[%s10430_s1 + $0x114] sm:$0xf0]  ;;  %v7532_v41 = vld [vmem:[%s10431_s0 + $0x20] sm:$0xff] }
  0x14   :  { %426 = vmatpush.bf16.msra.mxu0 %v5579_v58  ;;  %v194_v15 = vrot.slane %v192_v8, 1  ;;  %v5783_v22 = vor.u32 %v6934_v20, %v5782_v19  ;;  %v7484_v23 = vld [vmem:[%s10431_s0 + $0x10] sm:$0xff]  ;;  %v6931_v24 = vld [vmem:[%s10430_s1 + $0x104] sm:$0xf]  ;;  %v5776_v25 = vld [vmem:[%s10430_s1 + $0x108] sm:$0xf0] }
  0x15   :  { %515 = vmatpush.bf16.msra.mxu1 %v5583_v62  ;;  %700 = vmatpush.bf16.msra.mxu2 %v5659_v63  ;;  %v190_v17 = vor.u32 %v189_v12, %v185_v6  ;;  %v5779_v26 = vor.u32 %v6931_v24, %v5776_v25  ;;  %v10469_v28 = vshll.u32 %v7484_v23, 16  ;;  %v7508_v32 = vld [vmem:[%s10431_s0 + $0x18] sm:$0xff]  ;;  %v5774_v33 = vld [vmem:[%s10430_s1 + $0x100] sm:$0xf]  ;;  %v6932_v34 = vld [vmem:[%s10430_s1 + $0x104] sm:$0xf0] }
  0x16   :  { %789 = vmatpush.bf16.msra.mxu3 %v5663_v3  ;;  %v198_v29 = vor.u32 %v196_v27, %v194_v15  ;;  %v5775_v35 = vor.u32 %v6932_v34, %v5774_v33  ;;  %v10470_v36 = vshrl.u32 %v7484_v23, 16  ;;  %v10466_v37 = vshll.u32 %v7508_v32, 16  ;;  %v7550_v47 = vld [vmem:[%s10431_s0 + $0x28] sm:$0xff]  ;;  %v6929_v48 = vld [vmem:[%s10430_s1 + $0xf4] sm:$0xf]  ;;  %v7598_v3 = vld [vmem:[%s10431_s0 + $0x38] sm:$0xff] }
  0x17   :  { %v195_v21 = vsel %vm183_vm0, %v190_v17, %v194_v15  ;;  %v202_v30 = vrot.slane %v10469_v28, 1  ;;  %v10467_v42 = vshrl.u32 %v7508_v32, 16  ;;  %v10463_v43 = vshll.u32 %v7532_v41, 16  ;;  %v5768_v49 = vld [vmem:[%s10430_s1 + $0xf8] sm:$0xf0]  ;;  %v7574_v56 = vld [vmem:[%s10431_s0 + $0x30] sm:$0xff] }
  0x18   :  { %427 = vmatpush.bf16.msra.mxu0 %v5571_v11  ;;  %v210_v39 = vrot.slane %v10466_v37, 1  ;;  %v5771_v50 = vor.u32 %v6929_v48, %v5768_v49  ;;  %v10465_v51 = vshrl.u32 %v7532_v41, 16  ;;  %v10461_v52 = vshll.u32 %v7550_v47, 16  ;;  %v5766_v57 = vld [vmem:[%s10430_s1 + $0xf0] sm:$0xf]  ;;  %v7616_v10 = vld [vmem:[%s10431_s0 + $0x40] sm:$0xff] }
  0x19   :  { %516 = vmatpush.bf16.msra.mxu1 %v5575_v13  ;;  %701 = vmatpush.bf16.msra.mxu2 %v5651_v14  ;;  %v203_v31 = vsel %vm183_vm0, %v198_v29, %v202_v30  ;;  %v206_v38 = vor.u32 %v10470_v36, %v202_v30  ;;  %v218_v45 = vrot.slane %v10463_v43, 1  ;;  %v6930_v58 = vld [vmem:[%s10430_s1 + $0xf4] sm:$0xf0]  ;;  %v10462_v60 = vshrl.u32 %v7550_v47, 16  ;;  %v6927_v11 = vld [vmem:[%s10430_s1 + $0xe4] sm:$0xf] }
  0x1a   :  { %790 = vmatpush.bf16.msra.mxu3 %v5655_v16  ;;  %v214_v44 = vor.u32 %v10467_v42, %v210_v39  ;;  %v226_v54 = vrot.slane %v10461_v52, 1  ;;  %v5767_v59 = vor.u32 %v6930_v58, %v5766_v57  ;;  %v10459_v61 = vshll.u32 %v7574_v56, 16  ;;  %v5760_v12 = vld [vmem:[%s10430_s1 + $0xe8] sm:$0xf0]  ;;  %v5758_v20 = vld [vmem:[%s10430_s1 + $0xe0] sm:$0xf] }
  0x1b   :  { %5616 = vmatmul.msk.bf16.vlgmr.msra.gmra.mxu0 %vm371_vm1, %v195_v21  ;;  %v211_v40 = vsel %vm183_vm0, %v206_v38, %v210_v39  ;;  %v222_v53 = vor.u32 %v10465_v51, %v218_v45  ;;  %v10460_v4 = vshrl.u32 %v7574_v56, 16  ;;  %v10455_v5 = vshll.u32 %v7598_v3, 16  ;;  %v7640_v19 = vld [vmem:[%s10431_s0 + $0x48] sm:$0xff]  ;;  %v7664_v34 = vld [vmem:[%s10431_s0 + $0x50] sm:$0xff] }
  0x1c   :  { %5632 = vmatmul.msk.bf16.vlgmr.msra.gmra.mxu1 %vm371_vm1, %v195_v21  ;;  %5696 = vmatmul.msk.bf16.vlgmr.msra.gmra.mxu2 %vm371_vm1, %v7446_v1  ;;  %v219_v46 = vsel %vm183_vm0, %v214_v44, %v218_v45  ;;  %v230_v62 = vor.u32 %v10462_v60, %v226_v54  ;;  %v234_v63 = vrot.slane %v10459_v61, 1  ;;  %v5763_v13 = vor.u32 %v6927_v11, %v5760_v12  ;;  %v6928_v21 = vld [vmem:[%s10430_s1 + $0xe4] sm:$0xf0] }
  0x1d   :  { %1120 = vmatpush.bf16.msrb.mxu1 %v5787_v18  ;;  %5712 = vmatmul.msk.bf16.vlgmr.msra.gmra.mxu3 %vm371_vm1, %v7446_v1  ;;  %v227_v55 = vsel %vm183_vm0, %v222_v53, %v226_v54  ;;  %v242_v7 = vrot.slane %v10455_v5, 1  ;;  %v10458_v14 = vshrl.u32 %v7598_v3, 16  ;;  %v10453_v15 = vshll.u32 %v7616_v10, 16 }
  0x1e   :  { %1031 = vmatpush.bf16.msrb.mxu0 %v5783_v22  ;;  %v235_v0 = vsel %vm183_vm0, %v230_v62, %v234_v63  ;;  %v238_v6 = vor.u32 %v10460_v4, %v234_v63  ;;  %v5759_v22 = vor.u32 %v6928_v21, %v5758_v20  ;;  %v10454_v24 = vshrl.u32 %v7616_v10, 16  ;;  %v6925_v63 = vld [vmem:[%s10430_s1 + $0xd4] sm:$0xf] }
  0x1f   :  { %v246_v16 = vor.u32 %v10458_v14, %v242_v7  ;;  %v250_v17 = vrot.slane %v10453_v15, 1  ;;  %v10451_v25 = vshll.u32 %v7640_v19, 16  ;;  %v10452_v44 = vshrl.u32 %v7640_v19, 16  ;;  %v89_v15 = vld [vmem:[%s10431_s0 + $0x7c] sm:$0x7] }
  0x20   :  { %v243_v9 = vsel %vm183_vm0, %v238_v6, %v242_v7  ;;  %v10447_v45 = vshll.u32 %v7664_v34, 16  ;;  %v7696_v7 = vld [vmem:[%s10431_s0 + $0x58] sm:$0xff]  ;;  %v1298_v52 = vrot.slane %v192_v8, 2  ;;  %v1297_v60 = vrot.slane %v196_v27, 1 }
  0x21   :  { %1121 = vmatpush.bf16.msrb.mxu1 %v5779_v26  ;;  %v251_v18 = vsel %vm183_vm0, %v246_v16, %v250_v17  ;;  %v254_v26 = vor.u32 %v10454_v24, %v250_v17  ;;  %v258_v29 = vrot.slane %v10451_v25, 1  ;;  %v10450_v16 = vshrl.u32 %v7664_v34, 16 }
  0x22   :  { %1032 = vmatpush.bf16.msrb.mxu0 %v5775_v35  ;;  %v10445_v17 = vshll.u32 %v7696_v7, 16  ;;  %v891_v36 = vrot.slane %v7451_v2, 1  ;;  %vm1729_vm5 = vcmask 1045504   ;;  %vm2361_vm6 = vcmask 326656  }
  0x23   :  { %v262_v49 = vor.u32 %v10452_v44, %v258_v29  ;;  %vm4516_vm7 = vcmask 261120  }
  0x25   :  { %1122 = vmatpush.bf16.msrb.mxu1 %v5771_v50  ;;  %v266_v50 = vrot.slane %v10447_v45, 1 }
  0x26   :  { %1033 = vmatpush.bf16.msrb.mxu0 %v5767_v59 }
  0x27   :  { %v267_v58 = vsel %vm183_vm0, %v262_v49, %v266_v50  ;;  %v270_v21 = vor.u32 %v10450_v16, %v266_v50  ;;  %v7728_v50 = vld [vmem:[%s10431_s0 + $0x60] sm:$0xff] }
  0x29   :  { %1123 = vmatpush.bf16.msrb.mxu1 %v5763_v13 }
  0x2a   :  { %1034 = vmatpush.bf16.msrb.mxu0 %v5759_v22  ;;  %v274_v22 = vrot.slane %v10445_v17, 1 }
  0x2b   :  { %5617 = vmatmul.msk.bf16.gmra.mxu0 %vm371_vm1, %v203_v31 }
  0x2c   :  { %5633 = vmatmul.msk.bf16.gmra.mxu1 %vm371_vm1, %v203_v31  ;;  %5697 = vmatmul.msk.bf16.gmra.mxu2 %vm371_vm1, %v7451_v2  ;;  %v259_v31 = vsel %vm183_vm0, %v254_v26, %v258_v29 }
  0x2d   :  { %5713 = vmatmul.msk.bf16.gmra.mxu3 %vm371_vm1, %v7451_v2 }
  0x3b   :  { %5618 = vmatmul.msk.bf16.gmra.mxu0 %vm371_vm1, %v211_v40 }
  0x3c   :  { %5634 = vmatmul.msk.bf16.gmra.mxu1 %vm371_vm1, %v211_v40  ;;  %5698 = vmatmul.msk.bf16.gmra.mxu2 %vm371_vm1, %v7484_v23 }
  0x3d   :  { %5714 = vmatmul.msk.bf16.gmra.mxu3 %vm371_vm1, %v7484_v23 }
  0x4b   :  { %5619 = vmatmul.msk.bf16.gmra.mxu0 %vm371_vm1, %v219_v46 }
  0x4c   :  { %5635 = vmatmul.msk.bf16.gmra.mxu1 %vm371_vm1, %v219_v46  ;;  %5699 = vmatmul.msk.bf16.gmra.mxu2 %vm371_vm1, %v7508_v32 }
  0x4d   :  { %5715 = vmatmul.msk.bf16.gmra.mxu3 %vm371_vm1, %v7508_v32 }
  0x5b   :  { %5620 = vmatmul.msk.bf16.gmra.mxu0 %vm371_vm1, %v227_v55 }
  0x5c   :  { %5636 = vmatmul.msk.bf16.gmra.mxu1 %vm371_vm1, %v227_v55  ;;  %5700 = vmatmul.msk.bf16.gmra.mxu2 %vm371_vm1, %v7532_v41 }
  0x5d   :  { %5716 = vmatmul.msk.bf16.gmra.mxu3 %vm371_vm1, %v7532_v41 }
  0x6b   :  { %5621 = vmatmul.msk.bf16.gmra.mxu0 %vm371_vm1, %v235_v0 }
  0x6c   :  { %5637 = vmatmul.msk.bf16.gmra.mxu1 %vm371_vm1, %v235_v0  ;;  %5701 = vmatmul.msk.bf16.gmra.mxu2 %vm371_vm1, %v7550_v47  ;;  %v5752_v0 = vld [vmem:[%s10430_s1 + $0xd8] sm:$0xf0] }
  0x6d   :  { %5717 = vmatmul.msk.bf16.gmra.mxu3 %vm371_vm1, %v7550_v47  ;;  %v5755_v6 = vor.u32 %v6925_v63, %v5752_v0  ;;  %v10444_v63 = vshll.u32 %v7728_v50, 16 }
  0x6f   :  { %1124 = vmatpush.bf16.msrb.mxu1 %v5755_v6 }
  0x7b   :  { %5622 = vmatmul.msk.bf16.gmra.mxu0 %vm371_vm1, %v243_v9 }
  0x7c   :  { %5638 = vmatmul.msk.bf16.gmra.mxu1 %vm371_vm1, %v243_v9  ;;  %5702 = vmatmul.msk.bf16.gmra.mxu2 %vm371_vm1, %v7574_v56 }
  0x7d   :  { %5718 = vmatmul.msk.bf16.gmra.mxu3 %vm371_vm1, %v7574_v56 }
  0x8b   :  { %5623 = vmatmul.msk.bf16.gmra.mxu0 %vm371_vm1, %v251_v18 }
  0x8c   :  { %5639 = vmatmul.msk.bf16.gmra.mxu1 %vm371_vm1, %v251_v18  ;;  %5703 = vmatmul.msk.bf16.gmra.mxu2 %vm371_vm1, %v7598_v3 }
  0x8d   :  { %5719 = vmatmul.msk.bf16.gmra.mxu3 %vm371_vm1, %v7598_v3 }
  0x98   :  { %v429_v30 = vpop.f32.mrf.mxu0 }
  0x99   :  { %v518_v33 = vpop.f32.mrf.mxu1 }
  0x9b   :  { %5624 = vmatmul.msk.bf16.gmra.mxu0 %vm371_vm1, %v259_v31 }
  0x9c   :  { %5640 = vmatmul.msk.bf16.gmra.mxu1 %vm371_vm1, %v259_v31  ;;  %5704 = vmatmul.msk.bf16.gmra.mxu2 %vm371_vm1, %v7616_v10 }
  0x9d   :  { %5720 = vmatmul.msk.bf16.gmra.mxu3 %vm371_vm1, %v7616_v10 }
  0x9f   :  { %v703_v35 = vpop.f32.mrf.mxu2 }
  0xa0   :  { %v7668_v38 = vadd.f32 %v703_v35, %v429_v30  ;;  %v792_v39 = vpop.f32.mrf.mxu3  ;;  %v431_v40 = vpop.f32.mrf.mxu0 }
  0xa1   :  { %v7672_v46 = vadd.f32 %v792_v39, %v518_v33  ;;  %v520_v48 = vpop.f32.mrf.mxu1  ;;  %v275_v33 = vsel %vm183_vm0, %v270_v21, %v274_v22 }
  0xa7   :  { %v705_v53 = vpop.f32.mrf.mxu2 }
  0xa8   :  { %v7678_v54 = vadd.f32 %v705_v53, %v431_v40  ;;  %v794_v55 = vpop.f32.mrf.mxu3  ;;  %v434_v57 = vpop.f32.mrf.mxu0  ;;  %v5750_v40 = vld [vmem:[%s10430_s1 + $0xd0] sm:$0xf] }
  0xa9   :  { %v7681_v59 = vadd.f32 %v794_v55, %v520_v48  ;;  %v523_v62 = vpop.f32.mrf.mxu1  ;;  %v6926_v48 = vld [vmem:[%s10430_s1 + $0xd4] sm:$0xf0] }
  0xaa   :  { %v5751_v49 = vor.u32 %v6926_v48, %v5750_v40 }
  0xab   :  { %5625 = vmatmul.msk.bf16.gmra.mxu0 %vm371_vm1, %v267_v58 }
  0xac   :  { %5641 = vmatmul.msk.bf16.gmra.mxu1 %vm371_vm1, %v267_v58  ;;  %5705 = vmatmul.msk.bf16.gmra.mxu2 %vm371_vm1, %v7640_v19 }
  0xad   :  { %5721 = vmatmul.msk.bf16.gmra.mxu3 %vm371_vm1, %v7640_v19  ;;  %1035 = vmatpush.bf16.msrb.mxu0 %v5751_v49 }
  0xaf   :  { %v708_v9 = vpop.f32.mrf.mxu2 }
  0xb0   :  { %v7700_v11 = vadd.f32 %v708_v9, %v434_v57  ;;  %v797_v12 = vpop.f32.mrf.mxu3  ;;  %v436_v13 = vpop.f32.mrf.mxu0 }
  0xb1   :  { %v7704_v18 = vadd.f32 %v797_v12, %v523_v62  ;;  %v525_v20 = vpop.f32.mrf.mxu1  ;;  %v10446_v62 = vshrl.u32 %v7696_v7, 16  ;;  %v282_v12 = vrot.slane %v10444_v63, 1 }
  0xb3   :  { %v278_v9 = vor.u32 %v10446_v62, %v274_v22  ;;  %v7754_v22 = vld [vmem:[%s10431_s0 + $0x68] sm:$0xff] }
  0xb7   :  { %v710_v26 = vpop.f32.mrf.mxu2 }
  0xb8   :  { %v7710_v29 = vadd.f32 %v710_v26, %v436_v13  ;;  %v799_v30 = vpop.f32.mrf.mxu3  ;;  %v439_v31 = vpop.f32.mrf.mxu0 }
  0xb9   :  { %v7713_v35 = vadd.f32 %v799_v30, %v525_v20  ;;  %v528_v39 = vpop.f32.mrf.mxu1  ;;  %v283_v30 = vsel %vm183_vm0, %v278_v9, %v282_v12  ;;  %v6923_v9 = vld [vmem:[%s10430_s1 + $0xc4] sm:$0xf] }
  0xbb   :  { %5626 = vmatmul.msk.bf16.gmra.mxu0 %vm371_vm1, %v275_v33 }
  0xbc   :  { %5642 = vmatmul.msk.bf16.gmra.mxu1 %vm371_vm1, %v275_v33  ;;  %5706 = vmatmul.msk.bf16.gmra.mxu2 %vm371_vm1, %v7664_v34 }
  0xbd   :  { %5722 = vmatmul.msk.bf16.gmra.mxu3 %vm371_vm1, %v7664_v34 }
  0xbf   :  { %v713_v53 = vpop.f32.mrf.mxu2 }
  0xc0   :  { %v7732_v55 = vadd.f32 %v713_v53, %v439_v31  ;;  %v802_v57 = vpop.f32.mrf.mxu3  ;;  %v441_v58 = vpop.f32.mrf.mxu0  ;;  %v10449_v53 = vshrl.u32 %v7728_v50, 16 }
  0xc1   :  { %v7736_v0 = vadd.f32 %v802_v57, %v528_v39  ;;  %v530_v6 = vpop.f32.mrf.mxu1  ;;  %v10448_v57 = vshll.u32 %v7754_v22, 16 }
  0xc7   :  { %v715_v13 = vpop.f32.mrf.mxu2 }
  0xc8   :  { %v7742_v20 = vadd.f32 %v715_v13, %v441_v58  ;;  %v804_v21 = vpop.f32.mrf.mxu3  ;;  %v444_v26 = vpop.f32.mrf.mxu0  ;;  %v5744_v13 = vld [vmem:[%s10430_s1 + $0xc8] sm:$0xf0] }
  0xc9   :  { %v7745_v31 = vadd.f32 %v804_v21, %v530_v6  ;;  %v533_v33 = vpop.f32.mrf.mxu1  ;;  %v5747_v21 = vor.u32 %v6923_v9, %v5744_v13 }
  0xcb   :  { %5627 = vmatmul.msk.bf16.gmra.mxu0 %vm371_vm1, %v283_v30  ;;  %1125 = vmatpush.bf16.msrb.mxu1 %v5747_v21 }
  0xcc   :  { %5643 = vmatmul.msk.bf16.gmra.mxu1 %vm371_vm1, %v283_v30  ;;  %5707 = vmatmul.msk.bf16.gmra.mxu2 %vm371_vm1, %v7696_v7  ;;  %v290_v30 = vrot.slane %v10448_v57, 1  ;;  %v6924_v57 = vld [vmem:[%s10430_s1 + $0xc4] sm:$0xf0] }
  0xcd   :  { %5723 = vmatmul.msk.bf16.gmra.mxu3 %vm371_vm1, %v7696_v7 }
  0xcf   :  { %v718_v39 = vpop.f32.mrf.mxu2 }
  0xd0   :  { %v7758_v40 = vadd.f32 %v718_v39, %v444_v26  ;;  %v807_v48 = vpop.f32.mrf.mxu3  ;;  %v446_v49 = vpop.f32.mrf.mxu0  ;;  %v286_v26 = vor.u32 %v10449_v53, %v282_v12  ;;  %v7783_v12 = vld [vmem:[%s10431_s0 + $0x70] sm:$0xff] }
  0xd1   :  { %v7762_v58 = vadd.f32 %v807_v48, %v533_v33  ;;  %v535_v6 = vpop.f32.mrf.mxu1  ;;  %v10456_v9 = vshll.u32 %v7783_v12, 16  ;;  %v5874_v53 = vld [vmem:[%s10430_s1 + $0x170] sm:$0xf] }
  0xd2   :  { %v291_v17 = vsel %vm183_vm0, %v286_v26, %v290_v30 }
  0xd3   :  { %v298_v25 = vrot.slane %v10456_v9, 1  ;;  %v5868_v9 = vld [vmem:[%s10430_s1 + $0x168] sm:$0xf0] }
  0xd7   :  { %v720_v39 = vpop.f32.mrf.mxu2 }
  0xd8   :  { %v7774_v33 = vadd.f32 %v720_v39, %v446_v49  ;;  %v809_v48 = vpop.f32.mrf.mxu3  ;;  %v449_v63 = vpop.f32.mrf.mxu0 }
  0xd9   :  { %v7777_v62 = vadd.f32 %v809_v48, %v535_v6  ;;  %v538_v45 = vpop.f32.mrf.mxu1  ;;  %v10457_v6 = vshrl.u32 %v7754_v22, 16 }
  0xdb   :  { %5628 = vmatmul.msk.bf16.gmra.mxu0 %vm371_vm1, %v291_v17 }
  0xdc   :  { %5644 = vmatmul.msk.bf16.gmra.mxu1 %vm371_vm1, %v291_v17  ;;  %5708 = vmatmul.msk.bf16.gmra.mxu2 %vm371_vm1, %v7728_v50  ;;  %v5742_v17 = vld [vmem:[%s10430_s1 + $0xc0] sm:$0xf] }
  0xdd   :  { %5724 = vmatmul.msk.bf16.gmra.mxu3 %vm371_vm1, %v7728_v50  ;;  %v5743_v16 = vor.u32 %v6924_v57, %v5742_v17  ;;  %v75_v17 = vld [vmem:[%s10431_s0 + $0x78] sm:$0xf] }
  0xdf   :  { %v723_v49 = vpop.f32.mrf.mxu2  ;;  %1036 = vmatpush.bf16.msrb.mxu0 %v5743_v16  ;;  %v6944_v16 = vld [vmem:[%s10430_s1 + $0x164] sm:$0xf0] }
  0xe0   :  { %v7792_v13 = vadd.f32 %v723_v49, %v449_v63  ;;  %v812_v21 = vpop.f32.mrf.mxu3  ;;  %v451_v26 = vpop.f32.mrf.mxu0  ;;  %v6946_v63 = vld [vmem:[%s10430_s1 + $0x174] sm:$0xf0]  ;;  %v5876_v49 = vld [vmem:[%s10430_s1 + $0x178] sm:$0xf0] }
  0xe1   :  { %v7794_v39 = vadd.f32 %v812_v21, %v538_v45  ;;  %v540_v48 = vpop.f32.mrf.mxu1  ;;  %v6945_v45 = vld [vmem:[%s10430_s1 + $0x174] sm:$0xf]  ;;  %v294_v21 = vor.u32 %v10457_v6, %v290_v30  ;;  %v5875_v44 = vor.u32 %v6946_v63, %v5874_v53  ;;  %v5866_v30 = vld [vmem:[%s10430_s1 + $0x160] sm:$0xf]  ;;  %v6943_v53 = vld [vmem:[%s10430_s1 + $0x164] sm:$0xf] }
  0xe2   :  { %v5879_v57 = vor.u32 %v6945_v45, %v5876_v49  ;;  %v7836_v49 = vunpack.c.l.b16 %v75_v17  ;;  %v5871_v61 = vor.u32 %v6943_v53, %v5868_v9  ;;  %v6939_v53 = vld [vmem:[%s10430_s1 + $0x144] sm:$0xf] }
  0xe3   :  { %1472 = vmatpush.bf16.msrb.mxu2 %v5875_v44  ;;  %v299_v5 = vsel %vm183_vm0, %v294_v21, %v298_v25  ;;  %v5867_v21 = vor.u32 %v6944_v16, %v5866_v30  ;;  %v6940_v16 = vld [vmem:[%s10430_s1 + $0x144] sm:$0xf0] }
  0xe4   :  { %1561 = vmatpush.bf16.msrb.mxu3 %v5879_v57  ;;  %v166_v57 = vunpack.c.l.b16 %v89_v15  ;;  %v6942_v15 = vld [vmem:[%s10430_s1 + $0x154] sm:$0xf0] }
  0xe6   :  { %v7857_v9 = vpack.c.b16 %v166_v57, %v7836_v49 }
  0xe7   :  { %v725_v24 = vpop.f32.mrf.mxu2  ;;  %1473 = vmatpush.bf16.msrb.mxu2 %v5867_v21 }
  0xe8   :  { %v7834_v63 = vadd.f32 %v725_v24, %v451_v26  ;;  %v814_v45 = vpop.f32.mrf.mxu3  ;;  %v454_v44 = vpop.f32.mrf.mxu0  ;;  %1562 = vmatpush.bf16.msrb.mxu3 %v5871_v61  ;;  %v5858_v24 = vld [vmem:[%s10430_s1 + $0x150] sm:$0xf]  ;;  %v6941_v26 = vld [vmem:[%s10430_s1 + $0x154] sm:$0xf] }
  0xe9   :  { %v7841_v6 = vadd.f32 %v814_v45, %v540_v48  ;;  %v543_v14 = vpop.f32.mrf.mxu1  ;;  %v5859_v61 = vor.u32 %v6942_v15, %v5858_v24  ;;  %v5860_v48 = vld [vmem:[%s10430_s1 + $0x158] sm:$0xf0]  ;;  %v10464_v24 = vshrl.u32 %v7783_v12, 16  ;;  %v304_v15 = vshll.u32 %v7857_v9, 16 }
  0xea   :  { %v5863_v17 = vor.u32 %v6941_v26, %v5860_v48 }
  0xeb   :  { %5629 = vmatmul.msk.bf16.gmra.mxu0 %vm371_vm1, %v299_v5  ;;  %1474 = vmatpush.bf16.msrb.mxu2 %v5859_v61  ;;  %v5852_v61 = vld [vmem:[%s10430_s1 + $0x148] sm:$0xf0] }
  0xec   :  { %5645 = vmatmul.msk.bf16.gmra.mxu1 %vm371_vm1, %v299_v5  ;;  %5709 = vmatmul.msk.bf16.gmra.mxu2 %vm371_vm1, %v7754_v22  ;;  %v5850_v5 = vld [vmem:[%s10430_s1 + $0x140] sm:$0xf]  ;;  %v5855_v4 = vor.u32 %v6939_v53, %v5852_v61  ;;  %v306_v61 = vrot.slane %v304_v15, 1 }
  0xed   :  { %5725 = vmatmul.msk.bf16.gmra.mxu3 %vm371_vm1, %v7754_v22  ;;  %v5851_v26 = vor.u32 %v6940_v16, %v5850_v5  ;;  %v6937_v5 = vld [vmem:[%s10430_s1 + $0x134] sm:$0xf] }
  0xee   :  { %1563 = vmatpush.bf16.msrb.mxu3 %v5863_v17 }
  0xef   :  { %v728_v30 = vpop.f32.mrf.mxu2  ;;  %1475 = vmatpush.bf16.msrb.mxu2 %v5851_v26  ;;  %v5834_v26 = vld [vmem:[%s10430_s1 + $0x120] sm:$0xf] }
  0xf0   :  { %v7873_v45 = vadd.f32 %v728_v30, %v454_v44  ;;  %v817_v57 = vpop.f32.mrf.mxu3  ;;  %v456_v21 = vpop.f32.mrf.mxu0  ;;  %v5842_v44 = vld [vmem:[%s10430_s1 + $0x130] sm:$0xf]  ;;  %v6938_v30 = vld [vmem:[%s10430_s1 + $0x134] sm:$0xf0] }
  0xf1   :  { %v7880_v48 = vadd.f32 %v817_v57, %v543_v14  ;;  %v545_v17 = vpop.f32.mrf.mxu1  ;;  %v5843_v16 = vor.u32 %v6938_v30, %v5842_v44  ;;  %v5844_v14 = vld [vmem:[%s10430_s1 + $0x138] sm:$0xf0]  ;;  %v302_v57 = vor.u32 %v10464_v24, %v298_v25  ;;  %v6935_v25 = vld [vmem:[%s10430_s1 + $0x124] sm:$0xf]  ;;  %v7917_v24 = vor.u32 %v1298_v52, %v1297_v60 }
  0xf2   :  { %1564 = vmatpush.bf16.msrb.mxu3 %v5855_v4  ;;  %v5847_v53 = vor.u32 %v6937_v5, %v5844_v14  ;;  %v6936_v4 = vld [vmem:[%s10430_s1 + $0x124] sm:$0xf0]  ;;  %v5836_v5 = vld [vmem:[%s10430_s1 + $0x128] sm:$0xf0]  ;;  %v5968_v52 = vld [vmem:[%s10430_s1 + $0x1d8] sm:$0xf0] }
  0xf3   :  { %1476 = vmatpush.bf16.msrb.mxu2 %v5843_v16  ;;  %v307_v27 = vsel %vm183_vm0, %v302_v57, %v306_v61  ;;  %v5835_v30 = vor.u32 %v6936_v4, %v5834_v26 }
  0xf6   :  { %1565 = vmatpush.bf16.msrb.mxu3 %v5847_v53  ;;  %v5839_v53 = vor.u32 %v6935_v25, %v5836_v5 }
  0xf7   :  { %v730_v43 = vpop.f32.mrf.mxu2  ;;  %1477 = vmatpush.bf16.msrb.mxu2 %v5835_v30  ;;  %v308_v30 = vshrl.u32 %v7857_v9, 16 }
  0xf8   :  { %v7909_v15 = vadd.f32 %v730_v43, %v456_v21  ;;  %v819_v8 = vpop.f32.mrf.mxu3  ;;  %v459_v44 = vpop.f32.mrf.mxu0  ;;  %v6957_v43 = vld [vmem:[%s10430_s1 + $0x1d4] sm:$0xf] }
  0xf9   :  { %v7915_v16 = vadd.f32 %v819_v8, %v545_v17  ;;  %v548_v14 = vpop.f32.mrf.mxu1  ;;  %v5971_v60 = vor.u32 %v6957_v43, %v5968_v52  ;;  %v76_v8 = vld [vmem:[%s10431_s0 + $0x7c] sm:$0x3]  ;;  %v310_v52 = vor.u32 %v308_v30, %v306_v61 }
  0xfa   :  { %1566 = vmatpush.bf16.msrb.mxu3 %v5839_v53  ;;  %v599_v5 = vunpack.c.l.b16 %v76_v8  ;;  %v5966_v8 = vld [vmem:[%s10430_s1 + $0x1d0] sm:$0xf] }
  0xfb   :  { %5630 = vmatmul.msk.bf16.gmra.mxu0 %vm371_vm1, %v307_v27  ;;  %1960 = vmatpush.bf16.msra.mxu1 %v5971_v60 }
  0xfc   :  { %5646 = vmatmul.msk.bf16.gmra.mxu1 %vm371_vm1, %v307_v27  ;;  %5710 = vmatmul.msk.bf16.gmra.mxu2 %vm371_vm1, %v7783_v12  ;;  %v872_v27 = vld [vmem:[%s10431_s0] sm:$0xe] }
  0xfd   :  { %5726 = vmatmul.msk.bf16.gmra.mxu3 %vm371_vm1, %v7783_v12  ;;  %v887_v53 = vunpack.c.l.b16 %v872_v27 }
  0xff   :  { %v733_v21 = vpop.f32.mrf.mxu2 }
 0x100   :  { %v7931_v17 = vadd.f32 %v733_v21, %v459_v44  ;;  %v822_v57 = vpop.f32.mrf.mxu3  ;;  %v461_v26 = vpop.f32.mrf.mxu0  ;;  %v10468_v44 = vunpack.c.h.b16 %v7446_v1 }
 0x101   :  { %v7933_v4 = vadd.f32 %v822_v57, %v548_v14  ;;  %v550_v25 = vpop.f32.mrf.mxu1  ;;  %v600_v57 = vpack.c.b16 %v599_v5, %v7836_v49 }
 0x102   :  { %v888_v42 = vpack.c.b16 %v10468_v44, %v887_v53 }
 0x104   :  { %v1290_v61 = vshrl.u32 %v888_v42, 16  ;;  %v890_v28 = vrot.slane %v888_v42, 1 }
 0x107   :  { %v735_v43 = vpop.f32.mrf.mxu2 }
 0x108   :  { %v7943_v60 = vadd.f32 %v735_v43, %v461_v26  ;;  %v824_v14 = vpop.f32.mrf.mxu3  ;;  %v464_v21 = vpop.f32.mrf.mxu0  ;;  %v1293_v26 = vshll.u32 %v888_v42, 16 }
 0x109   :  { %v7946_v51 = vadd.f32 %v824_v14, %v550_v25  ;;  %v553_v37 = vpop.f32.mrf.mxu1  ;;  %v6958_v25 = vld [vmem:[%s10430_s1 + $0x1d4] sm:$0xf0] }
 0x10a   :  { %v5967_v27 = vor.u32 %v6958_v25, %v5966_v8  ;;  %v1295_v44 = vrot.slane %v1293_v26, 2 }
 0x10b   :  { %10473 = vst [vmem:[#allocation7_spill] sm:$0xff] %v7946_v51  ;;  %5631 = vmatmul.msk.bf16.gmra.mxu0 %vm371_vm1, %v310_v52 }
 0x10c   :  { %5647 = vmatmul.msk.bf16.gmra.mxu1 %vm371_vm1, %v310_v52  ;;  %5711 = vmatmul.msk.bf16.gmra.mxu2 %vm371_vm1, %v600_v57 }
 0x10d   :  { %5727 = vmatmul.msk.bf16.gmra.mxu3 %vm371_vm1, %v600_v57  ;;  %1871 = vmatpush.bf16.msra.mxu0 %v5967_v27  ;;  %v1292_v57 = vrot.slane %v1290_v61, 1 }
 0x10e   :  { %7196 = vmatpush.bf16.msra.mxu3 %v5967_v27  ;;  %v10476_v27 = vshrl.u32 %v7484_v23, 16 }
 0x10f   :  { %v738_v30 = vpop.f32.mrf.mxu2  ;;  %v1296_v1 = vor.u32 %v1295_v44, %v1292_v57 }
 0x110   :  { %v7960_v5 = vadd.f32 %v738_v30, %v464_v21  ;;  %v827_v53 = vpop.f32.mrf.mxu3  ;;  %v466_v43 = vpop.f32.mrf.mxu0  ;;  %v892_v30 = vsel %vm889_vm2, %v890_v28, %v891_v36 }
 0x111   :  { %v7962_v52 = vadd.f32 %v827_v53, %v553_v37  ;;  %v555_v14 = vpop.f32.mrf.mxu1  ;;  %v1300_v61 = vsel %vm1288_vm3, %v1296_v1, %v7917_v24  ;;  %v1301_v53 = vrot.slane %v10476_v27, 1  ;;  %v10477_v1 = vshll.u32 %v7484_v23, 16  ;;  %v6955_v27 = vld [vmem:[%s10430_s1 + $0x1c4] sm:$0xf] }
 0x112   :  { %10474 = vst [vmem:[#allocation8_spill] sm:$0xff] %v7960_v5 }
 0x117   :  { %v740_v51 = vpop.f32.mrf.mxu2 }
 0x118   :  { %v7965_v8 = vadd.f32 %v740_v51, %v466_v43  ;;  %v829_v21 = vpop.f32.mrf.mxu3  ;;  %v469_v25 = vpop.f32.mrf.mxu0  ;;  %v1302_v43 = vrot.slane %v10477_v1, 2 }
 0x119   :  { %v7968_v5 = vadd.f32 %v829_v21, %v555_v14  ;;  %v558_v37 = vpop.f32.mrf.mxu1  ;;  %v893_v14 = vrot.slane %v7484_v23, 1  ;;  %v5960_v23 = vld [vmem:[%s10430_s1 + $0x1c8] sm:$0xf0] }
 0x11a   :  { %v1303_v57 = vor.u32 %v1302_v43, %v1301_v53 }
 0x11b   :  { %5788 = vmatmul.msk.bf16.vlgmr.msrb.gmra.mxu0 %vm371_vm1, %v892_v30 }
 0x11c   :  { %5804 = vmatmul.msk.bf16.vlgmr.msrb.gmra.mxu1 %vm371_vm1, %v892_v30  ;;  %5880 = vmatmul.msk.bf16.vlgmr.msrb.gmra.mxu2 %vm371_vm1, %v1300_v61 }
 0x11d   :  { %5896 = vmatmul.msk.bf16.vlgmr.msrb.gmra.mxu3 %vm371_vm1, %v1300_v61 }
 0x11f   :  { %v743_v2 = vpop.f32.mrf.mxu2 }
 0x120   :  { %v7976_v42 = vadd.f32 %v743_v2, %v469_v25  ;;  %v832_v51 = vpop.f32.mrf.mxu3  ;;  %v471_v44 = vpop.f32.mrf.mxu0  ;;  %v894_v2 = vsel %vm889_vm2, %v891_v36, %v893_v14 }
 0x121   :  { %v7978_v28 = vadd.f32 %v832_v51, %v558_v37  ;;  %v560_v26 = vpop.f32.mrf.mxu1  ;;  %v1304_v51 = vsel %vm1288_vm3, %v7917_v24, %v1303_v57 }
 0x122   :  { %10475 = vst [vmem:[#allocation9_spill] sm:$0xff] %v7976_v42 }
 0x127   :  { %v745_v21 = vpop.f32.mrf.mxu2 }
 0x128   :  { %v7985_v30 = vadd.f32 %v745_v21, %v471_v44  ;;  %v834_v61 = vpop.f32.mrf.mxu3  ;;  %v474_v25 = vpop.f32.mrf.mxu0  ;;  %v5963_v44 = vor.u32 %v6955_v27, %v5960_v23  ;;  %v10481_v21 = vshrl.u32 %v7508_v32, 16  ;;  %v10482_v27 = vshll.u32 %v7508_v32, 16 }
 0x129   :  { %v7988_v42 = vadd.f32 %v834_v61, %v560_v26  ;;  %v563_v37 = vpop.f32.mrf.mxu1 }
 0x12a   :  { %10478 = vst [vmem:[#allocation10_spill] sm:$0xff] %v7985_v30  ;;  %1961 = vmatpush.bf16.msra.mxu1 %v5963_v44  ;;  %v1305_v61 = vrot.slane %v10481_v21, 1  ;;  %v1306_v23 = vrot.slane %v10482_v27, 2  ;;  %v5958_v21 = vld [vmem:[%s10430_s1 + $0x1c0] sm:$0xf] }
 0x12b   :  { %10479 = vst [vmem:[#allocation11_spill] sm:$0xff] %v7988_v42  ;;  %5789 = vmatmul.msk.bf16.gmra.mxu0 %vm371_vm1, %v894_v2 }
 0x12c   :  { %5805 = vmatmul.msk.bf16.gmra.mxu1 %vm371_vm1, %v894_v2  ;;  %5881 = vmatmul.msk.bf16.gmra.mxu2 %vm371_vm1, %v1304_v51  ;;  %v895_v2 = vrot.slane %v7508_v32, 1  ;;  %v1307_v42 = vor.u32 %v1306_v23, %v1305_v61  ;;  %v6956_v32 = vld [vmem:[%s10430_s1 + $0x1c4] sm:$0xf0]  ;;  %v10486_v23 = vshrl.u32 %v7532_v41, 16 }
 0x12d   :  { %5897 = vmatmul.msk.bf16.gmra.mxu3 %vm371_vm1, %v1304_v51  ;;  %v5959_v61 = vor.u32 %v6956_v32, %v5958_v21  ;;  %v10487_v21 = vshll.u32 %v7532_v41, 16  ;;  %v897_v32 = vrot.slane %v7532_v41, 1 }
 0x12f   :  { %v748_v36 = vpop.f32.mrf.mxu2  ;;  %1872 = vmatpush.bf16.msra.mxu0 %v5959_v61  ;;  %7197 = vmatpush.bf16.msra.mxu3 %v5959_v61 }
 0x130   :  { %v8002_v24 = vadd.f32 %v748_v36, %v474_v25  ;;  %v837_v26 = vpop.f32.mrf.mxu3  ;;  %v476_v53 = vpop.f32.mrf.mxu0  ;;  %v896_v36 = vsel %vm889_vm2, %v893_v14, %v895_v2 }
 0x131   :  { %v8004_v1 = vadd.f32 %v837_v26, %v563_v37  ;;  %v565_v43 = vpop.f32.mrf.mxu1  ;;  %v1308_v26 = vsel %vm1288_vm3, %v1303_v57, %v1307_v42 }
 0x132   :  { %10480 = vst [vmem:[#allocation12_spill] sm:$0xff] %v8002_v24 }
 0x137   :  { %v750_v30 = vpop.f32.mrf.mxu2 }
 0x138   :  { %v8011_v51 = vadd.f32 %v750_v30, %v476_v53  ;;  %v839_v44 = vpop.f32.mrf.mxu3  ;;  %v479_v25 = vpop.f32.mrf.mxu0 }
 0x139   :  { %v8014_v24 = vadd.f32 %v839_v44, %v565_v43  ;;  %v568_v37 = vpop.f32.mrf.mxu1  ;;  %v1309_v44 = vrot.slane %v10486_v23, 1 }
 0x13a   :  { %10483 = vst [vmem:[#allocation13_spill] sm:$0xff] %v8011_v51 }
 0x13b   :  { %10484 = vst [vmem:[#allocation14_spill] sm:$0xff] %v8014_v24  ;;  %5790 = vmatmul.msk.bf16.gmra.mxu0 %vm371_vm1, %v896_v36 }
 0x13c   :  { %5806 = vmatmul.msk.bf16.gmra.mxu1 %vm371_vm1, %v896_v36  ;;  %5882 = vmatmul.msk.bf16.gmra.mxu2 %vm371_vm1, %v1308_v26  ;;  %v1310_v36 = vrot.slane %v10487_v21, 2 }
 0x13d   :  { %5898 = vmatmul.msk.bf16.gmra.mxu3 %vm371_vm1, %v1308_v26 }
 0x13e   :  { %v1311_v24 = vor.u32 %v1310_v36, %v1309_v44 }
 0x13f   :  { %v753_v14 = vpop.f32.mrf.mxu2 }
 0x140   :  { %v8027_v57 = vadd.f32 %v753_v14, %v479_v25  ;;  %v842_v30 = vpop.f32.mrf.mxu3  ;;  %v481_v53 = vpop.f32.mrf.mxu0  ;;  %v898_v14 = vsel %vm889_vm2, %v895_v2, %v897_v32 }
 0x141   :  { %v8029_v43 = vadd.f32 %v842_v30, %v568_v37  ;;  %v570_v27 = vpop.f32.mrf.mxu1  ;;  %v1312_v30 = vsel %vm1288_vm3, %v1307_v42, %v1311_v24  ;;  %v10493_v42 = vshll.u32 %v7550_v47, 16 }
 0x142   :  { %10485 = vst [vmem:[#allocation15_spill] sm:$0xff] %v8027_v57 }
 0x147   :  { %v755_v26 = vpop.f32.mrf.mxu2 }
 0x148   :  { %v8036_v51 = vadd.f32 %v755_v26, %v481_v53  ;;  %v844_v61 = vpop.f32.mrf.mxu3  ;;  %v484_v25 = vpop.f32.mrf.mxu0  ;;  %v1314_v26 = vrot.slane %v10493_v42, 2 }
 0x149   :  { %v8039_v57 = vadd.f32 %v844_v61, %v570_v27  ;;  %v573_v37 = vpop.f32.mrf.mxu1  ;;  %v10492_v27 = vshrl.u32 %v7550_v47, 16  ;;  %v6953_v61 = vld [vmem:[%s10430_s1 + $0x1b4] sm:$0xf] }
 0x14a   :  { %10488 = vst [vmem:[#allocation16_spill] sm:$0xff] %v8036_v51 }
 0x14b   :  { %10489 = vst [vmem:[#allocation17_spill] sm:$0xff] %v8039_v57  ;;  %5791 = vmatmul.msk.bf16.gmra.mxu0 %vm371_vm1, %v898_v14  ;;  %v1313_v36 = vrot.slane %v10492_v27, 1 }
 0x14c   :  { %5807 = vmatmul.msk.bf16.gmra.mxu1 %vm371_vm1, %v898_v14  ;;  %5883 = vmatmul.msk.bf16.gmra.mxu2 %vm371_vm1, %v1312_v30 }
 0x14d   :  { %5899 = vmatmul.msk.bf16.gmra.mxu3 %vm371_vm1, %v1312_v30  ;;  %v899_v30 = vrot.slane %v7550_v47, 1 }
 0x14f   :  { %v758_v41 = vpop.f32.mrf.mxu2  ;;  %v900_v42 = vsel %vm889_vm2, %v897_v32, %v899_v30 }
 0x150   :  { %v8046_v53 = vadd.f32 %v758_v41, %v484_v25  ;;  %v847_v23 = vpop.f32.mrf.mxu3  ;;  %v486_v44 = vpop.f32.mrf.mxu0  ;;  %v5952_v25 = vld [vmem:[%s10430_s1 + $0x1b8] sm:$0xf0] }
 0x151   :  { %v8048_v21 = vadd.f32 %v847_v23, %v573_v37  ;;  %v575_v2 = vpop.f32.mrf.mxu1  ;;  %v5955_v14 = vor.u32 %v6953_v61, %v5952_v25  ;;  %v1315_v37 = vor.u32 %v1314_v26, %v1313_v36 }
 0x152   :  { %10490 = vst [vmem:[#allocation18_spill] sm:$0xff] %v8046_v53 }
 0x153   :  { %10491 = vst [vmem:[#allocation19_spill] sm:$0xff] %v8048_v21  ;;  %1962 = vmatpush.bf16.msra.mxu1 %v5955_v14  ;;  %v1316_v51 = vsel %vm1288_vm3, %v1311_v24, %v1315_v37  ;;  %v10498_v24 = vshll.u32 %v7574_v56, 16 }
 0x155   :  { %v1318_v14 = vrot.slane %v10498_v24, 2 }
 0x157   :  { %v760_v41 = vpop.f32.mrf.mxu2 }
 0x158   :  { %v8061_v23 = vadd.f32 %v760_v41, %v486_v44  ;;  %v849_v27 = vpop.f32.mrf.mxu3  ;;  %v489_v21 = vpop.f32.mrf.mxu0  ;;  %v5950_v41 = vld [vmem:[%s10430_s1 + $0x1b0] sm:$0xf] }
 0x159   :  { %v8064_v53 = vadd.f32 %v849_v27, %v575_v2  ;;  %v578_v57 = vpop.f32.mrf.mxu1  ;;  %v10497_v2 = vshrl.u32 %v7574_v56, 16  ;;  %v901_v27 = vrot.slane %v7574_v56, 1 }
 0x15b   :  { %10494 = vst [vmem:[#allocation20_spill] sm:$0xff] %v8064_v53  ;;  %5792 = vmatmul.msk.bf16.gmra.mxu0 %vm371_vm1, %v900_v42  ;;  %v1317_v25 = vrot.slane %v10497_v2, 1  ;;  %v902_v24 = vsel %vm889_vm2, %v899_v30, %v901_v27 }
 0x15c   :  { %5808 = vmatmul.msk.bf16.gmra.mxu1 %vm371_vm1, %v900_v42  ;;  %5884 = vmatmul.msk.bf16.gmra.mxu2 %vm371_vm1, %v1316_v51 }
 0x15d   :  { %5900 = vmatmul.msk.bf16.gmra.mxu3 %vm371_vm1, %v1316_v51  ;;  %v6954_v51 = vld [vmem:[%s10430_s1 + $0x1b4] sm:$0xf0] }
 0x15f   :  { %v763_v47 = vpop.f32.mrf.mxu2 }
 0x160   :  { %v8071_v44 = vadd.f32 %v763_v47, %v489_v21  ;;  %v852_v36 = vpop.f32.mrf.mxu3  ;;  %v491_v26 = vpop.f32.mrf.mxu0  ;;  %v5951_v21 = vor.u32 %v6954_v51, %v5950_v41 }
 0x161   :  { %v8073_v61 = vadd.f32 %v852_v36, %v578_v57  ;;  %v580_v32 = vpop.f32.mrf.mxu1  ;;  %v1319_v57 = vor.u32 %v1318_v14, %v1317_v25 }
 0x162   :  { %10495 = vst [vmem:[#allocation21_spill] sm:$0xff] %v8071_v44  ;;  %1873 = vmatpush.bf16.msra.mxu0 %v5951_v21  ;;  %7198 = vmatpush.bf16.msra.mxu3 %v5951_v21 }
 0x163   :  { %10496 = vst [vmem:[#allocation22_spill] sm:$0xff] %v8073_v61  ;;  %v1320_v53 = vsel %vm1288_vm3, %v1315_v37, %v1319_v57  ;;  %v10503_v37 = vshll.u32 %v7598_v3, 16 }
 0x165   :  { %v1322_v21 = vrot.slane %v10503_v37, 2 }
 0x167   :  { %v765_v42 = vpop.f32.mrf.mxu2 }
 0x168   :  { %v8086_v47 = vadd.f32 %v765_v42, %v491_v26  ;;  %v854_v36 = vpop.f32.mrf.mxu3  ;;  %v494_v2 = vpop.f32.mrf.mxu0  ;;  %v903_v42 = vrot.slane %v7598_v3, 1 }
 0x169   :  { %v8089_v61 = vadd.f32 %v854_v36, %v580_v32  ;;  %v583_v44 = vpop.f32.mrf.mxu1  ;;  %v10502_v32 = vshrl.u32 %v7598_v3, 16  ;;  %v6951_v3 = vld [vmem:[%s10430_s1 + $0x1a4] sm:$0xf] }
 0x16b   :  { %10499 = vst [vmem:[#allocation23_spill] sm:$0xff] %v8089_v61  ;;  %5793 = vmatmul.msk.bf16.gmra.mxu0 %vm371_vm1, %v902_v24  ;;  %v1321_v51 = vrot.slane %v10502_v32, 1 }
 0x16c   :  { %5809 = vmatmul.msk.bf16.gmra.mxu1 %vm371_vm1, %v902_v24  ;;  %5885 = vmatmul.msk.bf16.gmra.mxu2 %vm371_vm1, %v1320_v53 }
 0x16d   :  { %5901 = vmatmul.msk.bf16.gmra.mxu3 %vm371_vm1, %v1320_v53  ;;  %v1323_v36 = vor.u32 %v1322_v21, %v1321_v51 }
 0x16f   :  { %v768_v56 = vpop.f32.mrf.mxu2 }
 0x170   :  { %v8096_v26 = vadd.f32 %v768_v56, %v494_v2  ;;  %v857_v25 = vpop.f32.mrf.mxu3  ;;  %v496_v14 = vpop.f32.mrf.mxu0  ;;  %v904_v56 = vsel %vm889_vm2, %v901_v27, %v903_v42  ;;  %v5944_v27 = vld [vmem:[%s10430_s1 + $0x1a8] sm:$0xf0] }
 0x171   :  { %v8098_v41 = vadd.f32 %v857_v25, %v583_v44  ;;  %v585_v30 = vpop.f32.mrf.mxu1  ;;  %v1324_v25 = vsel %vm1288_vm3, %v1319_v57, %v1323_v36 }
 0x172   :  { %10500 = vst [vmem:[#allocation24_spill] sm:$0xff] %v8096_v26 }
 0x173   :  { %10501 = vst [vmem:[#allocation25_spill] sm:$0xff] %v8098_v41 }
 0x177   :  { %v770_v24 = vpop.f32.mrf.mxu2 }
 0x178   :  { %v8105_v61 = vadd.f32 %v770_v24, %v496_v14  ;;  %v859_v53 = vpop.f32.mrf.mxu3  ;;  %v499_v2 = vpop.f32.mrf.mxu0  ;;  %v5947_v14 = vor.u32 %v6951_v3, %v5944_v27  ;;  %v10506_v24 = vshrl.u32 %v7616_v10, 16 }
 0x179   :  { %v8108_v26 = vadd.f32 %v859_v53, %v585_v30  ;;  %v588_v44 = vpop.f32.mrf.mxu1 }
 0x17a   :  { %10504 = vst [vmem:[#allocation26_spill] sm:$0xff] %v8105_v61  ;;  %1963 = vmatpush.bf16.msra.mxu1 %v5947_v14  ;;  %v1325_v53 = vrot.slane %v10506_v24, 1 }
 0x17b   :  { %10505 = vst [vmem:[#allocation27_spill] sm:$0xff] %v8108_v26  ;;  %5794 = vmatmul.msk.bf16.gmra.mxu0 %vm371_vm1, %v904_v56  ;;  %v905_v26 = vrot.slane %v7616_v10, 1 }
 0x17c   :  { %5810 = vmatmul.msk.bf16.gmra.mxu1 %vm371_vm1, %v904_v56  ;;  %5886 = vmatmul.msk.bf16.gmra.mxu2 %vm371_vm1, %v1324_v25  ;;  %v10507_v56 = vshll.u32 %v7616_v10, 16  ;;  %v5942_v10 = vld [vmem:[%s10430_s1 + $0x1a0] sm:$0xf] }
 0x17d   :  { %5902 = vmatmul.msk.bf16.gmra.mxu3 %vm371_vm1, %v1324_v25 }
 0x17e   :  { %v1326_v25 = vrot.slane %v10507_v56, 2 }
 0x17f   :  { %v773_v30 = vpop.f32.mrf.mxu2 }
 0x180   :  { %v8121_v32 = vadd.f32 %v773_v30, %v499_v2  ;;  %v862_v57 = vpop.f32.mrf.mxu3  ;;  %v501_v51 = vpop.f32.mrf.mxu0  ;;  %v1327_v61 = vor.u32 %v1326_v25, %v1325_v53  ;;  %v906_v30 = vsel %vm889_vm2, %v903_v42, %v905_v26  ;;  %v10512_v25 = vshrl.u32 %v7640_v19, 16 }
 0x181   :  { %v8123_v37 = vadd.f32 %v862_v57, %v588_v44  ;;  %v590_v21 = vpop.f32.mrf.mxu1 }
 0x182   :  { %v1328_v57 = vsel %vm1288_vm3, %v1323_v36, %v1327_v61 }
 0x187   :  { %v775_v41 = vpop.f32.mrf.mxu2 }
 0x188   :  { %v8130_v3 = vadd.f32 %v775_v41, %v501_v51  ;;  %v864_v2 = vpop.f32.mrf.mxu3  ;;  %v504_v27 = vpop.f32.mrf.mxu0  ;;  %v6952_v41 = vld [vmem:[%s10430_s1 + $0x1a4] sm:$0xf0] }
 0x189   :  { %v8133_v14 = vadd.f32 %v864_v2, %v590_v21  ;;  %v593_v44 = vpop.f32.mrf.mxu1  ;;  %v5943_v42 = vor.u32 %v6952_v41, %v5942_v10  ;;  %v1329_v2 = vrot.slane %v10512_v25, 1 }
 0x18a   :  { %10508 = vst [vmem:[#allocation28_spill] sm:$0xff] %v8130_v3 }
 0x18b   :  { %10509 = vst [vmem:[#allocation29_spill] sm:$0xff] %v8133_v14  ;;  %5795 = vmatmul.msk.bf16.gmra.mxu0 %vm371_vm1, %v906_v30  ;;  %7199 = vmatpush.bf16.msra.mxu3 %v5943_v42  ;;  %v907_v14 = vrot.slane %v7640_v19, 1 }
 0x18c   :  { %5811 = vmatmul.msk.bf16.gmra.mxu1 %vm371_vm1, %v906_v30  ;;  %5887 = vmatmul.msk.bf16.gmra.mxu2 %vm371_vm1, %v1328_v57  ;;  %v10513_v30 = vshll.u32 %v7640_v19, 16 }
 0x18d   :  { %5903 = vmatmul.msk.bf16.gmra.mxu3 %vm371_vm1, %v1328_v57  ;;  %1874 = vmatpush.bf16.msra.mxu0 %v5943_v42 }
 0x18e   :  { %v1330_v57 = vrot.slane %v10513_v30, 2 }
 0x18f   :  { %v778_v51 = vpop.f32.mrf.mxu2 }
 0x190   :  { %v8146_v21 = vadd.f32 %v778_v51, %v504_v27  ;;  %v867_v36 = vpop.f32.mrf.mxu3  ;;  %v506_v24 = vpop.f32.mrf.mxu0  ;;  %v1331_v3 = vor.u32 %v1330_v57, %v1329_v2  ;;  %v10515_v57 = vshll.u32 %v7664_v34, 16 }
 0x191   :  { %v8148_v53 = vadd.f32 %v867_v36, %v593_v44  ;;  %v595_v56 = vpop.f32.mrf.mxu1 }
 0x192   :  { %10510 = vst [vmem:[#allocation30_spill] sm:$0xff] %v8146_v21  ;;  %v908_v21 = vsel %vm889_vm2, %v905_v26, %v907_v14  ;;  %v1332_v25 = vsel %vm1288_vm3, %v1327_v61, %v1331_v3 }
 0x193   :  { %10511 = vst [vmem:[#allocation31_spill] sm:$0xff] %v8148_v53 }
 0x197   :  { %v780_v10 = vpop.f32.mrf.mxu2 }
 0x198   :  { %v8155_v41 = vadd.f32 %v780_v10, %v506_v24  ;;  %v869_v27 = vpop.f32.mrf.mxu3  ;;  %v1038_v51 = vpop.f32.mrf.mxu0 }
 0x199   :  { %v8158_v42 = vadd.f32 %v869_v27, %v595_v56  ;;  %v1207_v44 = vadd.f32 %v1038_v51, %v7668_v38  ;;  %v1127_v36 = vpop.f32.mrf.mxu1  ;;  %v909_v27 = vrot.slane %v7664_v34, 1 }
 0x19a   :  { %v1208_v53 = vadd.f32 %v1127_v36, %v7672_v46  ;;  %v10514_v46 = vshrl.u32 %v7664_v34, 16  ;;  %v5936_v34 = vld [vmem:[%s10430_s1 + $0x198] sm:$0xf0] }
 0x19b   :  { %5796 = vmatmul.msk.bf16.gmra.mxu0 %vm371_vm1, %v908_v21 }
 0x19c   :  { %5812 = vmatmul.msk.bf16.gmra.mxu1 %vm371_vm1, %v908_v21  ;;  %5888 = vmatmul.msk.bf16.gmra.mxu2 %vm371_vm1, %v1332_v25  ;;  %v1333_v30 = vrot.slane %v10514_v46, 1  ;;  %v1334_v21 = vrot.slane %v10515_v57, 2 }
 0x19d   :  { %5904 = vmatmul.msk.bf16.gmra.mxu3 %vm371_vm1, %v1332_v25 }
 0x19e   :  { %v1335_v51 = vor.u32 %v1334_v21, %v1333_v30 }
 0x19f   :  { %v1479_v19 = vpop.f32.mrf.mxu2 }
 0x1a0   :  { %v8167_v24 = vadd.f32 %v1479_v19, %v1207_v44  ;;  %v1568_v26 = vpop.f32.mrf.mxu3  ;;  %v1040_v56 = vpop.f32.mrf.mxu0  ;;  %v910_v19 = vsel %vm889_vm2, %v907_v14, %v909_v27  ;;  %v1336_v46 = vsel %vm1288_vm3, %v1331_v3, %v1335_v51 }
 0x1a1   :  { %v8169_v2 = vadd.f32 %v1568_v26, %v1208_v53  ;;  %v1209_v38 = vadd.f32 %v1040_v56, %v7678_v54  ;;  %v1129_v61 = vpop.f32.mrf.mxu1 }
 0x1a2   :  { %v1210_v10 = vadd.f32 %v1129_v61, %v7681_v59  ;;  %v6949_v59 = vld [vmem:[%s10430_s1 + $0x194] sm:$0xf] }
 0x1a3   :  { %v5939_v61 = vor.u32 %v6949_v59, %v5936_v34 }
 0x1a5   :  { %1964 = vmatpush.bf16.msra.mxu1 %v5939_v61 }
 0x1a7   :  { %v1481_v44 = vpop.f32.mrf.mxu2 }
 0x1a8   :  { %v8178_v36 = vadd.f32 %v1481_v44, %v1209_v38  ;;  %v1570_v25 = vpop.f32.mrf.mxu3  ;;  %v1043_v53 = vpop.f32.mrf.mxu0 }
 0x1a9   :  { %v8181_v54 = vadd.f32 %v1570_v25, %v1210_v10  ;;  %v1211_v26 = vadd.f32 %v1043_v53, %v7700_v11  ;;  %v1132_v56 = vpop.f32.mrf.mxu1  ;;  %v10516_v10 = vshrl.u32 %v7696_v7, 16  ;;  %v10517_v25 = vshll.u32 %v7696_v7, 16 }
 0x1aa   :  { %v1212_v38 = vadd.f32 %v1132_v56, %v7704_v18  ;;  %v911_v56 = vrot.slane %v7696_v7, 1  ;;  %v6950_v7 = vld [vmem:[%s10430_s1 + $0x194] sm:$0xf0] }
 0x1ab   :  { %5797 = vmatmul.msk.bf16.gmra.mxu0 %vm371_vm1, %v910_v19  ;;  %v1337_v44 = vrot.slane %v10516_v10, 1  ;;  %v1338_v53 = vrot.slane %v10517_v25, 2 }
 0x1ac   :  { %5813 = vmatmul.msk.bf16.gmra.mxu1 %vm371_vm1, %v910_v19  ;;  %5889 = vmatmul.msk.bf16.gmra.mxu2 %vm371_vm1, %v1336_v46  ;;  %v912_v61 = vsel %vm889_vm2, %v909_v27, %v911_v56 }
 0x1ad   :  { %5905 = vmatmul.msk.bf16.gmra.mxu3 %vm371_vm1, %v1336_v46  ;;  %v1339_v46 = vor.u32 %v1338_v53, %v1337_v44  ;;  %v10518_v53 = vshrl.u32 %v7728_v50, 16 }
 0x1af   :  { %v1484_v11 = vpop.f32.mrf.mxu2 }
 0x1b0   :  { %v8196_v3 = vadd.f32 %v1484_v11, %v1211_v26  ;;  %v1573_v14 = vpop.f32.mrf.mxu3  ;;  %v1045_v30 = vpop.f32.mrf.mxu0 }
 0x1b1   :  { %v8198_v57 = vadd.f32 %v1573_v14, %v1212_v38  ;;  %v1213_v21 = vadd.f32 %v1045_v30, %v7710_v29  ;;  %v1134_v18 = vpop.f32.mrf.mxu1  ;;  %v1340_v30 = vsel %vm1288_vm3, %v1335_v51, %v1339_v46 }
 0x1b2   :  { %v1214_v19 = vadd.f32 %v1134_v18, %v7713_v35  ;;  %v5934_v35 = vld [vmem:[%s10430_s1 + $0x190] sm:$0xf] }
 0x1b3   :  { %v5935_v18 = vor.u32 %v6950_v7, %v5934_v35 }
 0x1b5   :  { %1875 = vmatpush.bf16.msra.mxu0 %v5935_v18  ;;  %7200 = vmatpush.bf16.msra.mxu3 %v5935_v18 }
 0x1b7   :  { %v1486_v26 = vpop.f32.mrf.mxu2 }
 0x1b8   :  { %v8207_v59 = vadd.f32 %v1486_v26, %v1213_v21  ;;  %v1575_v34 = vpop.f32.mrf.mxu3  ;;  %v1048_v38 = vpop.f32.mrf.mxu0  ;;  %v10519_v26 = vshll.u32 %v7728_v50, 16 }
 0x1b9   :  { %v8210_v29 = vadd.f32 %v1575_v34, %v1214_v19  ;;  %v1215_v11 = vadd.f32 %v1048_v38, %v7732_v55  ;;  %v1137_v14 = vpop.f32.mrf.mxu1  ;;  %v1341_v19 = vrot.slane %v10518_v53, 1 }
 0x1ba   :  { %v1216_v21 = vadd.f32 %v1137_v14, %v7736_v0  ;;  %v1342_v34 = vrot.slane %v10519_v26, 2 }
 0x1bb   :  { %5798 = vmatmul.msk.bf16.gmra.mxu0 %vm371_vm1, %v912_v61 }
 0x1bc   :  { %5814 = vmatmul.msk.bf16.gmra.mxu1 %vm371_vm1, %v912_v61  ;;  %5890 = vmatmul.msk.bf16.gmra.mxu2 %vm371_vm1, %v1340_v30  ;;  %v913_v61 = vrot.slane %v7728_v50, 1  ;;  %v1343_v14 = vor.u32 %v1342_v34, %v1341_v19  ;;  %v10521_v19 = vshll.u32 %v7754_v22, 16 }
 0x1bd   :  { %5906 = vmatmul.msk.bf16.gmra.mxu3 %vm371_vm1, %v1340_v30 }
 0x1be   :  { %v1346_v26 = vrot.slane %v10521_v19, 2  ;;  %v10523_v19 = vshll.u32 %v7783_v12, 16 }
 0x1bf   :  { %v1489_v55 = vpop.f32.mrf.mxu2 }
 0x1c0   :  { %v8225_v27 = vadd.f32 %v1489_v55, %v1215_v11  ;;  %v1578_v51 = vpop.f32.mrf.mxu3  ;;  %v1050_v10 = vpop.f32.mrf.mxu0 }
 0x1c1   :  { %v8227_v44 = vadd.f32 %v1578_v51, %v1216_v21  ;;  %v1217_v0 = vadd.f32 %v1050_v10, %v7742_v20  ;;  %v1139_v25 = vpop.f32.mrf.mxu1  ;;  %v914_v21 = vsel %vm889_vm2, %v911_v56, %v913_v61  ;;  %v1344_v51 = vsel %vm1288_vm3, %v1339_v46, %v1343_v14 }
 0x1c2   :  { %v1218_v38 = vadd.f32 %v1139_v25, %v7745_v31 }
 0x1c7   :  { %v1491_v11 = vpop.f32.mrf.mxu2 }
 0x1c8   :  { %v8236_v30 = vadd.f32 %v1491_v11, %v1217_v0  ;;  %v1580_v35 = vpop.f32.mrf.mxu3  ;;  %v1053_v7 = vpop.f32.mrf.mxu0  ;;  %v5928_v11 = vld [vmem:[%s10430_s1 + $0x188] sm:$0xf0] }
 0x1c9   :  { %v8239_v20 = vadd.f32 %v1580_v35, %v1218_v38  ;;  %v1219_v18 = vadd.f32 %v1053_v7, %v7758_v40  ;;  %v1142_v55 = vpop.f32.mrf.mxu1  ;;  %v6947_v38 = vld [vmem:[%s10430_s1 + $0x184] sm:$0xf] }
 0x1ca   :  { %v1220_v10 = vadd.f32 %v1142_v55, %v7762_v58  ;;  %v10520_v58 = vshrl.u32 %v7754_v22, 16  ;;  %v5931_v35 = vor.u32 %v6947_v38, %v5928_v11  ;;  %v1271_v38 = vld [vmem:[%s10431_s0 + $0x7c] sm:$0xf]  ;;  %v5926_v11 = vld [vmem:[%s10430_s1 + $0x180] sm:$0xf] }
 0x1cb   :  { %5799 = vmatmul.msk.bf16.gmra.mxu0 %vm371_vm1, %v914_v21 }
 0x1cc   :  { %5815 = vmatmul.msk.bf16.gmra.mxu1 %vm371_vm1, %v914_v21  ;;  %5891 = vmatmul.msk.bf16.gmra.mxu2 %vm371_vm1, %v1344_v51  ;;  %v1345_v53 = vrot.slane %v10520_v58, 1 }
 0x1cd   :  { %5907 = vmatmul.msk.bf16.gmra.mxu3 %vm371_vm1, %v1344_v51  ;;  %1965 = vmatpush.bf16.msra.mxu1 %v5931_v35 }
 0x1ce   :  { %v1347_v7 = vor.u32 %v1346_v26, %v1345_v53  ;;  %v1350_v26 = vrot.slane %v10523_v19, 2 }
 0x1cf   :  { %v1494_v50 = vpop.f32.mrf.mxu2 }
 0x1d0   :  { %v8248_v31 = vadd.f32 %v1494_v50, %v1219_v18  ;;  %v1583_v56 = vpop.f32.mrf.mxu3  ;;  %v1055_v0 = vpop.f32.mrf.mxu0 }
 0x1d1   :  { %v8250_v25 = vadd.f32 %v1583_v56, %v1220_v10  ;;  %v1221_v40 = vadd.f32 %v1055_v0, %v7774_v33  ;;  %v1144_v46 = vpop.f32.mrf.mxu1  ;;  %v915_v33 = vrot.slane %v7754_v22, 1  ;;  %v1348_v0 = vsel %vm1288_vm3, %v1343_v14, %v1347_v7 }
 0x1d2   :  { %v1222_v34 = vadd.f32 %v1144_v46, %v7777_v62 }
 0x1d3   :  { %v916_v62 = vsel %vm889_vm2, %v913_v61, %v915_v33 }
 0x1d7   :  { %v1496_v21 = vpop.f32.mrf.mxu2 }
 0x1d8   :  { %v8265_v18 = vadd.f32 %v1496_v21, %v1221_v40  ;;  %v1585_v55 = vpop.f32.mrf.mxu3  ;;  %v1058_v51 = vpop.f32.mrf.mxu0  ;;  %v917_v21 = vrot.slane %v7783_v12, 1 }
 0x1d9   :  { %v8268_v10 = vadd.f32 %v1585_v55, %v1222_v34  ;;  %v8271_v50 = vadd.f32 %v1058_v51, %v7792_v13  ;;  %v1147_v56 = vpop.f32.mrf.mxu1  ;;  %v1286_v51 = vunpack.c.l.b16 %v1271_v38 }
 0x1da   :  { %v1224_v46 = vadd.f32 %v1147_v56, %v7794_v39  ;;  %v10522_v39 = vshrl.u32 %v7783_v12, 16 }
 0x1db   :  { %5800 = vmatmul.msk.bf16.gmra.mxu0 %vm371_vm1, %v916_v62  ;;  %v8311_v12 = vpack.c.b16 %v1286_v51, %v7836_v49 }
 0x1dc   :  { %5816 = vmatmul.msk.bf16.gmra.mxu1 %vm371_vm1, %v916_v62  ;;  %5892 = vmatmul.msk.bf16.gmra.mxu2 %vm371_vm1, %v1348_v0  ;;  %v1349_v53 = vrot.slane %v10522_v39, 1 }
 0x1dd   :  { %5908 = vmatmul.msk.bf16.gmra.mxu3 %vm371_vm1, %v1348_v0  ;;  %v918_v0 = vsel %vm889_vm2, %v915_v33, %v917_v21  ;;  %v1354_v33 = vshrl.u32 %v8311_v12, 16 }
 0x1de   :  { %v1351_v55 = vor.u32 %v1350_v26, %v1349_v53 }
 0x1df   :  { %v8279_v22 = vpop.f32.mrf.mxu2 }
 0x1e0   :  { %v1588_v61 = vpop.f32.mrf.mxu3  ;;  %v1060_v40 = vpop.f32.mrf.mxu0 }
 0x1e1   :  { %v8281_v58 = vadd.f32 %v1588_v61, %v1224_v46  ;;  %v8284_v13 = vadd.f32 %v1060_v40, %v7834_v63  ;;  %v1149_v14 = vpop.f32.mrf.mxu1  ;;  %v6948_v63 = vld [vmem:[%s10430_s1 + $0x184] sm:$0xf0] }
 0x1e2   :  { %v1226_v34 = vadd.f32 %v1149_v14, %v7841_v6  ;;  %v5927_v35 = vor.u32 %v6948_v63, %v5926_v11  ;;  %v1352_v14 = vsel %vm1288_vm3, %v1347_v7, %v1351_v55  ;;  %v6966_v63 = vld [vmem:[%s10432_s3 + $0x38] sm:$0xff] }
 0x1e3   :  { %2414 = vmatpush.bf16.msra.mxu2 %v6966_v63 }
 0x1e4   :  { %1876 = vmatpush.bf16.msra.mxu0 %v5927_v35  ;;  %7201 = vmatpush.bf16.msra.mxu3 %v5927_v35  ;;  %v919_v35 = vrot.slane %v7857_v9, 1  ;;  %v6080_v9 = vld [vmem:[%s10432_s3 + $0xa4] sm:$0xf] }
 0x1e7   :  { %v8301_v6 = vpop.f32.mrf.mxu2 }
 0x1e8   :  { %v1590_v62 = vpop.f32.mrf.mxu3  ;;  %v1063_v56 = vpop.f32.mrf.mxu0 }
 0x1e9   :  { %v8304_v46 = vadd.f32 %v1590_v62, %v1226_v34  ;;  %v8307_v61 = vadd.f32 %v1063_v56, %v7873_v45  ;;  %v1152_v40 = vpop.f32.mrf.mxu1  ;;  %v1357_v45 = vshll.u32 %v8311_v12, 16  ;;  %v1356_v34 = vrot.slane %v1354_v33, 1 }
 0x1ea   :  { %v1228_v39 = vadd.f32 %v1152_v40, %v7880_v48 }
 0x1eb   :  { %5801 = vmatmul.msk.bf16.gmra.mxu0 %vm371_vm1, %v918_v0  ;;  %v1359_v38 = vrot.slane %v1357_v45, 2 }
 0x1ec   :  { %5817 = vmatmul.msk.bf16.gmra.mxu1 %vm371_vm1, %v918_v0  ;;  %5893 = vmatmul.msk.bf16.gmra.mxu2 %vm371_vm1, %v1352_v14  ;;  %v920_v0 = vsel %vm889_vm2, %v917_v21, %v919_v35  ;;  %v2655_v21 = vunpack.c.l.b16 %v6080_v9 }
 0x1ed   :  { %5909 = vmatmul.msk.bf16.gmra.mxu3 %vm371_vm1, %v1352_v14  ;;  %v1360_v51 = vor.u32 %v1359_v38, %v1356_v34 }
 0x1ef   :  { %v8320_v53 = vpop.f32.mrf.mxu2  ;;  %v1361_v14 = vsel %vm1288_vm3, %v1351_v55, %v1360_v51  ;;  %v2666_v55 = vpack.c.b16 %v2655_v21, %v2655_v21 }
 0x1f0   :  { %v1593_v7 = vpop.f32.mrf.mxu3  ;;  %v1065_v19 = vpop.f32.mrf.mxu0 }
 0x1f1   :  { %v8322_v49 = vadd.f32 %v1593_v7, %v1228_v39  ;;  %v8325_v48 = vadd.f32 %v1065_v19, %v7909_v15  ;;  %v1154_v26 = vpop.f32.mrf.mxu1  ;;  %v2678_v38 = vsel %vm2410_vm4, %v2666_v55, 0 }
 0x1f2   :  { %v8328_v11 = vadd.f32 %v1154_v26, %v7915_v16  ;;  %v10524_v26 = vld [vmem:[#allocation7_spill] sm:$0xff]  ;;  %2774 = vmatpush.bf16.msrb.mxu1 %v2678_v38 }
 0x1f7   :  { %v8334_v62 = vpop.f32.mrf.mxu2 }
 0x1f8   :  { %v8336_v56 = vpop.f32.mrf.mxu3  ;;  %v1068_v15 = vpop.f32.mrf.mxu0 }
 0x1f9   :  { %v8340_v40 = vadd.f32 %v1068_v15, %v7931_v17  ;;  %v1157_v16 = vpop.f32.mrf.mxu1 }
 0x1fa   :  { %v1232_v39 = vadd.f32 %v1157_v16, %v7933_v4  ;;  %v10525_v16 = vld [vmem:[#allocation8_spill] sm:$0xff] }
 0x1fb   :  { %5802 = vmatmul.msk.bf16.gmra.mxu0 %vm371_vm1, %v920_v0 }
 0x1fc   :  { %5818 = vmatmul.msk.bf16.gmra.mxu1 %vm371_vm1, %v920_v0  ;;  %5894 = vmatmul.msk.bf16.gmra.mxu2 %vm371_vm1, %v1361_v14 }
 0x1fd   :  { %5910 = vmatmul.msk.bf16.gmra.mxu3 %vm371_vm1, %v1361_v14 }
 0x1ff   :  { %v8351_v17 = vpop.f32.mrf.mxu2 }
 0x200   :  { %v1598_v33 = vpop.f32.mrf.mxu3  ;;  %v1070_v45 = vpop.f32.mrf.mxu0 }
 0x201   :  { %v8353_v7 = vadd.f32 %v1598_v33, %v1232_v39  ;;  %v8356_v4 = vadd.f32 %v1070_v45, %v7943_v60  ;;  %v1159_v19 = vpop.f32.mrf.mxu1  ;;  %v1712_v60 = vld [vmem:[%s10431_s0] sm:$0xc]  ;;  %v6976_v33 = vld [vmem:[%s10432_s3 + $0x8c] sm:$0xff] }
 0x202   :  { %v8359_v34 = vadd.f32 %v1159_v19, %v10524_v26  ;;  %v1727_v21 = vunpack.c.l.b16 %v1712_v60  ;;  %2680 = vmatpush.bf16.msrb.mxu0 %v6976_v33  ;;  %v10526_v26 = vld [vmem:[#allocation6_spill] sm:$0xff]  ;;  %v7218_v33 = vld [vmem:[%s10431_s0 + $0x8] sm:$0xff] }
 0x207   :  { %v8362_v63 = vpop.f32.mrf.mxu2 }
 0x208   :  { %v8364_v15 = vpop.f32.mrf.mxu3  ;;  %v1073_v0 = vpop.f32.mrf.mxu0 }
 0x209   :  { %v8367_v14 = vadd.f32 %v1073_v0, %v10525_v16  ;;  %v1162_v39 = vpop.f32.mrf.mxu1 }
 0x20a   :  { %v1236_v9 = vadd.f32 %v1162_v39, %v7962_v52  ;;  %v10527_v52 = vunpack.c.h.b16 %v10526_v26  ;;  %v1731_v26 = vrot.slane %v7218_v33, 2 }
 0x20b   :  { %5803 = vmatmul.msk.bf16.gmra.mxu0 %vm371_vm1, %v919_v35 }
 0x20c   :  { %5819 = vmatmul.msk.bf16.gmra.mxu1 %vm371_vm1, %v919_v35  ;;  %5895 = vmatmul.msk.bf16.gmra.mxu2 %vm371_vm1, %v1360_v51  ;;  %v1728_v38 = vpack.c.b16 %v10527_v52, %v1727_v21 }
 0x20d   :  { %5911 = vmatmul.msk.bf16.gmra.mxu3 %vm371_vm1, %v1360_v51  ;;  %v6965_v51 = vld [vmem:[%s10432_s3 + $0x30] sm:$0xff] }
 0x20e   :  { %v1730_v60 = vrot.slane %v1728_v38, 2  ;;  %2415 = vmatpush.bf16.msra.mxu2 %v6965_v51  ;;  %v8407_v38 = vrot.slane %v8311_v12, 2 }
 0x20f   :  { %v8380_v45 = vpop.f32.mrf.mxu2 }
 0x210   :  { %v1603_v55 = vpop.f32.mrf.mxu3  ;;  %v1075_v19 = vpop.f32.mrf.mxu0 }
 0x211   :  { %v8384_v0 = vadd.f32 %v1603_v55, %v1236_v9  ;;  %v8387_v35 = vadd.f32 %v1075_v19, %v7965_v8  ;;  %v1164_v16 = vpop.f32.mrf.mxu1  ;;  %v10531_v55 = vld [vmem:[#allocation9_spill] sm:$0xff] }
 0x212   :  { %v8390_v39 = vadd.f32 %v1164_v16, %v7968_v5  ;;  %v1732_v5 = vsel %vm1729_vm5, %v1730_v60, %v1731_v26 }
 0x214   :  { %10528 = vst [vmem:[#allocation7_spill] sm:$0xff] %v8390_v39 }
 0x217   :  { %v8398_v9 = vpop.f32.mrf.mxu2 }
 0x218   :  { %10529 = vst [vmem:[#allocation8_spill] sm:$0xff] %v8398_v9  ;;  %v8400_v8 = vpop.f32.mrf.mxu3  ;;  %v1078_v21 = vpop.f32.mrf.mxu0 }
 0x219   :  { %10530 = vst [vmem:[#allocation6_spill] sm:$0xff] %v8400_v8  ;;  %v8404_v19 = vadd.f32 %v1078_v21, %v10531_v55  ;;  %v1167_v52 = vpop.f32.mrf.mxu1  ;;  %v10535_v21 = vld [vmem:[#allocation10_spill] sm:$0xff] }
 0x21a   :  { %v1240_v16 = vadd.f32 %v1167_v52, %v7978_v28  ;;  %v7219_v28 = vld [vmem:[%s10431_s0 + $0x10] sm:$0xff] }
 0x21b   :  { %10532 = vst [vmem:[#allocation9_spill] sm:$0xff] %v8404_v19  ;;  %5972 = vmatmul.msk.bf16.vlgmr.msra.gmra.mxu0 %vm371_vm1, %v1732_v5  ;;  %v10536_v19 = vld [vmem:[#allocation11_spill] sm:$0xff] }
 0x21c   :  { %5988 = vmatmul.msk.bf16.vlgmr.msra.gmra.mxu1 %vm371_vm1, %v1732_v5  ;;  %v1733_v5 = vrot.slane %v7219_v28, 2 }
 0x21d   :  { %5987 = vmatmul.msk.bf16.vlgmr.msra.gmra.mxu3 %vm371_vm1, %v8407_v38 }
 0x21f   :  { %v8414_v51 = vpop.f32.mrf.mxu2 }
 0x220   :  { %10533 = vst [vmem:[#allocation32_spill] sm:$0xff] %v8414_v51  ;;  %v1608_v33 = vpop.f32.mrf.mxu3  ;;  %v1080_v60 = vpop.f32.mrf.mxu0 }
 0x221   :  { %v8416_v8 = vadd.f32 %v1608_v33, %v1240_v16  ;;  %v8419_v55 = vadd.f32 %v1080_v60, %v10535_v21  ;;  %v1169_v12 = vpop.f32.mrf.mxu1  ;;  %v1734_v16 = vsel %vm1729_vm5, %v1731_v26, %v1733_v5  ;;  %v10540_v33 = vld [vmem:[#allocation12_spill] sm:$0xff] }
 0x222   :  { %v8422_v39 = vadd.f32 %v1169_v12, %v10536_v19  ;;  %v6975_v19 = vld [vmem:[%s10432_s3 + $0x84] sm:$0xff] }
 0x223   :  { %10534 = vst [vmem:[#allocation33_spill] sm:$0xff] %v8416_v8  ;;  %2681 = vmatpush.bf16.msrb.mxu0 %v6975_v19 }
 0x224   :  { %10537 = vst [vmem:[#allocation10_spill] sm:$0xff] %v8422_v39  ;;  %v6964_v39 = vld [vmem:[%s10432_s3 + $0x28] sm:$0xff] }
 0x225   :  { %2416 = vmatpush.bf16.msra.mxu2 %v6964_v39 }
 0x227   :  { %v8427_v52 = vpop.f32.mrf.mxu2 }
 0x228   :  { %10538 = vst [vmem:[#allocation11_spill] sm:$0xff] %v8427_v52  ;;  %v8429_v9 = vpop.f32.mrf.mxu3  ;;  %v1083_v51 = vpop.f32.mrf.mxu0  ;;  %v10556_v52 = vld [vmem:[#allocation17_spill] sm:$0xff] }
 0x229   :  { %10539 = vst [vmem:[#allocation34_spill] sm:$0xff] %v8429_v9  ;;  %v8433_v8 = vadd.f32 %v1083_v51, %v10540_v33  ;;  %v1172_v60 = vpop.f32.mrf.mxu1  ;;  %v10544_v51 = vld [vmem:[#allocation13_spill] sm:$0xff] }
 0x22a   :  { %v1244_v21 = vadd.f32 %v1172_v60, %v8004_v1  ;;  %v10546_v1 = vld [vmem:[#allocation14_spill] sm:$0xff] }
 0x22b   :  { %10541 = vst [vmem:[#allocation12_spill] sm:$0xff] %v8433_v8  ;;  %5973 = vmatmul.msk.bf16.gmra.mxu0 %vm371_vm1, %v1734_v16 }
 0x22c   :  { %5989 = vmatmul.msk.bf16.gmra.mxu1 %vm371_vm1, %v1734_v16  ;;  %v7220_v16 = vld [vmem:[%s10431_s0 + $0x18] sm:$0xff] }
 0x22d   :  { %v1735_v19 = vrot.slane %v7220_v16, 2 }
 0x22f   :  { %v8441_v12 = vpop.f32.mrf.mxu2 }
 0x230   :  { %10542 = vst [vmem:[#allocation35_spill] sm:$0xff] %v8441_v12  ;;  %v1613_v28 = vpop.f32.mrf.mxu3  ;;  %v1085_v9 = vpop.f32.mrf.mxu0 }
 0x231   :  { %v8443_v26 = vadd.f32 %v1613_v28, %v1244_v21  ;;  %v8446_v33 = vadd.f32 %v1085_v9, %v10544_v51  ;;  %v1174_v8 = vpop.f32.mrf.mxu1  ;;  %v1736_v28 = vsel %vm1729_vm5, %v1733_v5, %v1735_v19  ;;  %v10550_v51 = vld [vmem:[#allocation15_spill] sm:$0xff] }
 0x232   :  { %v8449_v60 = vadd.f32 %v1174_v8, %v10546_v1 }
 0x233   :  { %10543 = vst [vmem:[#allocation36_spill] sm:$0xff] %v8443_v26 }
 0x234   :  { %10545 = vst [vmem:[#allocation13_spill] sm:$0xff] %v8446_v33 }
 0x235   :  { %10547 = vst [vmem:[#allocation14_spill] sm:$0xff] %v8449_v60 }
 0x237   :  { %v8457_v12 = vpop.f32.mrf.mxu2 }
 0x238   :  { %10548 = vst [vmem:[#allocation37_spill] sm:$0xff] %v8457_v12  ;;  %v8459_v21 = vpop.f32.mrf.mxu3  ;;  %v1088_v9 = vpop.f32.mrf.mxu0 }
 0x239   :  { %10549 = vst [vmem:[#allocation38_spill] sm:$0xff] %v8459_v21  ;;  %v8463_v8 = vadd.f32 %v1088_v9, %v10550_v51  ;;  %v1177_v1 = vpop.f32.mrf.mxu1  ;;  %v10554_v21 = vld [vmem:[#allocation16_spill] sm:$0xff] }
 0x23a   :  { %v1248_v60 = vadd.f32 %v1177_v1, %v8029_v43  ;;  %v7221_v43 = vld [vmem:[%s10431_s0 + $0x20] sm:$0xff] }
 0x23b   :  { %10551 = vst [vmem:[#allocation15_spill] sm:$0xff] %v8463_v8  ;;  %5974 = vmatmul.msk.bf16.gmra.mxu0 %vm371_vm1, %v1736_v28  ;;  %v1737_v51 = vrot.slane %v7221_v43, 2 }
 0x23c   :  { %5990 = vmatmul.msk.bf16.gmra.mxu1 %vm371_vm1, %v1736_v28 }
 0x23f   :  { %v8468_v33 = vpop.f32.mrf.mxu2 }
 0x240   :  { %10552 = vst [vmem:[#allocation39_spill] sm:$0xff] %v8468_v33  ;;  %v1618_v39 = vpop.f32.mrf.mxu3  ;;  %v1090_v16 = vpop.f32.mrf.mxu0 }
 0x241   :  { %v8470_v12 = vadd.f32 %v1618_v39, %v1248_v60  ;;  %v8473_v26 = vadd.f32 %v1090_v16, %v10554_v21  ;;  %v1179_v5 = vpop.f32.mrf.mxu1  ;;  %v1738_v60 = vsel %vm1729_vm5, %v1735_v19, %v1737_v51  ;;  %v10560_v39 = vld [vmem:[#allocation18_spill] sm:$0xff]  ;;  %v10562_v16 = vld [vmem:[#allocation19_spill] sm:$0xff] }
 0x242   :  { %v8476_v9 = vadd.f32 %v1179_v5, %v10556_v52  ;;  %v6974_v52 = vld [vmem:[%s10432_s3 + $0x7c] sm:$0xff] }
 0x243   :  { %10553 = vst [vmem:[#allocation40_spill] sm:$0xff] %v8470_v12  ;;  %2682 = vmatpush.bf16.msrb.mxu0 %v6974_v52 }
 0x244   :  { %10555 = vst [vmem:[#allocation16_spill] sm:$0xff] %v8473_v26 }
 0x245   :  { %10557 = vst [vmem:[#allocation17_spill] sm:$0xff] %v8476_v9 }
 0x247   :  { %v8481_v1 = vpop.f32.mrf.mxu2 }
 0x248   :  { %10558 = vst [vmem:[#allocation41_spill] sm:$0xff] %v8481_v1  ;;  %v8483_v28 = vpop.f32.mrf.mxu3  ;;  %v1093_v33 = vpop.f32.mrf.mxu0 }
 0x249   :  { %10559 = vst [vmem:[#allocation42_spill] sm:$0xff] %v8483_v28  ;;  %v8487_v12 = vadd.f32 %v1093_v33, %v10560_v39  ;;  %v1182_v21 = vpop.f32.mrf.mxu1 }
 0x24a   :  { %v1252_v5 = vadd.f32 %v1182_v21, %v10562_v16  ;;  %v6978_v21 = vld [vmem:[%s10432_s3 + $0x9c] sm:$0xff] }
 0x24b   :  { %10561 = vst [vmem:[#allocation18_spill] sm:$0xff] %v8487_v12  ;;  %5975 = vmatmul.msk.bf16.gmra.mxu0 %vm371_vm1, %v1738_v60  ;;  %v10566_v12 = vld [vmem:[#allocation20_spill] sm:$0xff]  ;;  %2775 = vmatpush.bf16.msrb.mxu1 %v6978_v21 }
 0x24c   :  { %5991 = vmatmul.msk.bf16.gmra.mxu1 %vm371_vm1, %v1738_v60  ;;  %v6963_v60 = vld [vmem:[%s10432_s3 + $0x20] sm:$0xff] }
 0x24d   :  { %2417 = vmatpush.bf16.msra.mxu2 %v6963_v60 }
 0x24f   :  { %v8495_v43 = vpop.f32.mrf.mxu2 }
 0x250   :  { %10563 = vst [vmem:[#allocation19_spill] sm:$0xff] %v8495_v43  ;;  %v1623_v28 = vpop.f32.mrf.mxu3  ;;  %v1095_v9 = vpop.f32.mrf.mxu0  ;;  %v10576_v43 = vld [vmem:[#allocation23_spill] sm:$0xff] }
 0x251   :  { %v8497_v19 = vadd.f32 %v1623_v28, %v1252_v5  ;;  %v8500_v33 = vadd.f32 %v1095_v9, %v8061_v23  ;;  %v1184_v39 = vpop.f32.mrf.mxu1  ;;  %v7222_v28 = vld [vmem:[%s10431_s0 + $0x28] sm:$0xff]  ;;  %v10570_v5 = vld [vmem:[#allocation21_spill] sm:$0xff] }
 0x252   :  { %v8503_v1 = vadd.f32 %v1184_v39, %v10566_v12  ;;  %v1739_v52 = vrot.slane %v7222_v28, 2 }
 0x253   :  { %10564 = vst [vmem:[#allocation43_spill] sm:$0xff] %v8497_v19 }
 0x254   :  { %10565 = vst [vmem:[#allocation44_spill] sm:$0xff] %v8500_v33  ;;  %v1740_v16 = vsel %vm1729_vm5, %v1737_v51, %v1739_v52  ;;  %v10572_v33 = vld [vmem:[#allocation22_spill] sm:$0xff] }
 0x255   :  { %10567 = vst [vmem:[#allocation20_spill] sm:$0xff] %v8503_v1 }
 0x257   :  { %v8514_v23 = vpop.f32.mrf.mxu2 }
 0x258   :  { %10568 = vst [vmem:[#allocation45_spill] sm:$0xff] %v8514_v23  ;;  %v8516_v9 = vpop.f32.mrf.mxu3  ;;  %v1098_v12 = vpop.f32.mrf.mxu0 }
 0x259   :  { %10569 = vst [vmem:[#allocation46_spill] sm:$0xff] %v8516_v9  ;;  %v8520_v39 = vadd.f32 %v1098_v12, %v10570_v5  ;;  %v1187_v1 = vpop.f32.mrf.mxu1 }
 0x25a   :  { %v1256_v19 = vadd.f32 %v1187_v1, %v10572_v33  ;;  %v6973_v1 = vld [vmem:[%s10432_s3 + $0x74] sm:$0xff] }
 0x25b   :  { %10571 = vst [vmem:[#allocation21_spill] sm:$0xff] %v8520_v39  ;;  %5976 = vmatmul.msk.bf16.gmra.mxu0 %vm371_vm1, %v1740_v16  ;;  %v7223_v33 = vld [vmem:[%s10431_s0 + $0x30] sm:$0xff]  ;;  %v10587_v39 = vld [vmem:[#allocation27_spill] sm:$0xff] }
 0x25c   :  { %5992 = vmatmul.msk.bf16.gmra.mxu1 %vm371_vm1, %v1740_v16  ;;  %v1741_v16 = vrot.slane %v7223_v33, 2  ;;  %2683 = vmatpush.bf16.msrb.mxu0 %v6973_v1 }
 0x25f   :  { %v8525_v28 = vpop.f32.mrf.mxu2 }
 0x260   :  { %10573 = vst [vmem:[#allocation22_spill] sm:$0xff] %v8525_v28  ;;  %v1628_v21 = vpop.f32.mrf.mxu3  ;;  %v1100_v60 = vpop.f32.mrf.mxu0 }
 0x261   :  { %v8527_v23 = vadd.f32 %v1628_v21, %v1256_v19  ;;  %v8530_v9 = vadd.f32 %v1100_v60, %v8086_v47  ;;  %v1189_v51 = vpop.f32.mrf.mxu1  ;;  %v1742_v21 = vsel %vm1729_vm5, %v1739_v52, %v1741_v16  ;;  %v10580_v60 = vld [vmem:[#allocation24_spill] sm:$0xff] }
 0x262   :  { %v8533_v12 = vadd.f32 %v1189_v51, %v10576_v43 }
 0x263   :  { %10574 = vst [vmem:[#allocation47_spill] sm:$0xff] %v8527_v23 }
 0x264   :  { %10575 = vst [vmem:[#allocation48_spill] sm:$0xff] %v8530_v9 }
 0x265   :  { %10577 = vst [vmem:[#allocation23_spill] sm:$0xff] %v8533_v12  ;;  %v10582_v12 = vld [vmem:[#allocation25_spill] sm:$0xff] }
 0x267   :  { %v8541_v5 = vpop.f32.mrf.mxu2 }
 0x268   :  { %10578 = vst [vmem:[#allocation49_spill] sm:$0xff] %v8541_v5  ;;  %v8543_v19 = vpop.f32.mrf.mxu3  ;;  %v1103_v47 = vpop.f32.mrf.mxu0 }
 0x269   :  { %10579 = vst [vmem:[#allocation50_spill] sm:$0xff] %v8543_v19  ;;  %v8547_v43 = vadd.f32 %v1103_v47, %v10580_v60  ;;  %v1192_v51 = vpop.f32.mrf.mxu1  ;;  %v10585_v19 = vld [vmem:[#allocation26_spill] sm:$0xff] }
 0x26a   :  { %v1260_v9 = vadd.f32 %v1192_v51, %v10582_v12  ;;  %v6962_v12 = vld [vmem:[%s10432_s3 + $0x18] sm:$0xff] }
 0x26b   :  { %10581 = vst [vmem:[#allocation24_spill] sm:$0xff] %v8547_v43  ;;  %5977 = vmatmul.msk.bf16.gmra.mxu0 %vm371_vm1, %v1742_v21  ;;  %2418 = vmatpush.bf16.msra.mxu2 %v6962_v12 }
 0x26c   :  { %5993 = vmatmul.msk.bf16.gmra.mxu1 %vm371_vm1, %v1742_v21  ;;  %v7224_v21 = vld [vmem:[%s10431_s0 + $0x38] sm:$0xff] }
 0x26d   :  { %v1743_v60 = vrot.slane %v7224_v21, 2 }
 0x26f   :  { %v8552_v1 = vpop.f32.mrf.mxu2 }
 0x270   :  { %v1633_v23 = vpop.f32.mrf.mxu3  ;;  %v1105_v33 = vpop.f32.mrf.mxu0  ;;  %10583 = vst [vmem:[#allocation25_spill] sm:$0xff] %v8552_v1 }
 0x271   :  { %v8554_v5 = vadd.f32 %v1633_v23, %v1260_v9  ;;  %v8557_v28 = vadd.f32 %v1105_v33, %v10585_v19  ;;  %v1194_v52 = vpop.f32.mrf.mxu1  ;;  %v1744_v9 = vsel %vm1729_vm5, %v1741_v16, %v1743_v60 }
 0x272   :  { %v8560_v47 = vadd.f32 %v1194_v52, %v10587_v39  ;;  %v2297_v52 = vld [vmem:[%s10432_s3 + $0x50] sm:$0xf] }
 0x273   :  { %10584 = vst [vmem:[#allocation51_spill] sm:$0xff] %v8554_v5  ;;  %v2339_v12 = vunpack.c.l.b16 %v2297_v52  ;;  %v10595_v52 = vld [vmem:[#allocation29_spill] sm:$0xff] }
 0x274   :  { %10586 = vst [vmem:[#allocation26_spill] sm:$0xff] %v8557_v28 }
 0x275   :  { %10588 = vst [vmem:[#allocation27_spill] sm:$0xff] %v8560_v47  ;;  %v2350_v21 = vpack.c.b16 %v2339_v12, %v2339_v12  ;;  %v6968_v12 = vld [vmem:[%s10432_s3 + $0x48] sm:$0xff] }
 0x277   :  { %v8578_v47 = vpop.f32.mrf.mxu2  ;;  %v2412_v16 = vsel %vm2410_vm4, %v2350_v21, 0 }
 0x278   :  { %v8568_v51 = vpop.f32.mrf.mxu3  ;;  %v1108_v23 = vpop.f32.mrf.mxu0  ;;  %10591 = vst [vmem:[#allocation54_spill] sm:$0xff] %v8578_v47  ;;  %2508 = vmatpush.bf16.msrb.mxu3 %v2412_v16 }
 0x279   :  { %10589 = vst [vmem:[#allocation52_spill] sm:$0xff] %v8568_v51  ;;  %v8572_v19 = vadd.f32 %v1108_v23, %v8121_v32  ;;  %v1197_v39 = vpop.f32.mrf.mxu1  ;;  %v6961_v32 = vld [vmem:[%s10432_s3 + $0x10] sm:$0xff] }
 0x27a   :  { %v1264_v33 = vadd.f32 %v1197_v39, %v8123_v37  ;;  %2419 = vmatpush.bf16.msra.mxu2 %v6961_v32  ;;  %v6967_v32 = vld [vmem:[%s10432_s3 + $0x40] sm:$0xff] }
 0x27b   :  { %10590 = vst [vmem:[#allocation53_spill] sm:$0xff] %v8572_v19  ;;  %5978 = vmatmul.msk.bf16.gmra.mxu0 %vm371_vm1, %v1744_v9  ;;  %v10593_v19 = vld [vmem:[#allocation28_spill] sm:$0xff] }
 0x27c   :  { %5994 = vmatmul.msk.bf16.gmra.mxu1 %vm371_vm1, %v1744_v9  ;;  %v6960_v9 = vld [vmem:[%s10432_s3 + $0x8] sm:$0xff]  ;;  %2509 = vmatpush.bf16.msrb.mxu3 %v6968_v12 }
 0x27e   :  { %2420 = vmatpush.bf16.msra.mxu2 %v6960_v9  ;;  %v10599_v9 = vld [vmem:[#allocation30_spill] sm:$0xff] }
 0x280   :  { %v1638_v23 = vpop.f32.mrf.mxu3  ;;  %v1110_v37 = vpop.f32.mrf.mxu0  ;;  %2510 = vmatpush.bf16.msrb.mxu3 %v6967_v32 }
 0x281   :  { %v8586_v39 = vadd.f32 %v1638_v23, %v1264_v33  ;;  %v8589_v51 = vadd.f32 %v1110_v37, %v10593_v19  ;;  %v1199_v47 = vpop.f32.mrf.mxu1  ;;  %v7225_v33 = vld [vmem:[%s10431_s0 + $0x40] sm:$0xff]  ;;  %v8603_v19 = vpop.f32.mrf.mxu2 }
 0x282   :  { %v8592_v28 = vadd.f32 %v1199_v47, %v10595_v52  ;;  %v1745_v21 = vrot.slane %v7225_v33, 2  ;;  %10597 = vst [vmem:[#allocation56_spill] sm:$0xff] %v8603_v19  ;;  %v6959_v47 = vld [vmem:[%s10432_s3] sm:$0xff]  ;;  %v6972_v52 = vld [vmem:[%s10432_s3 + $0x6c] sm:$0xff] }
 0x283   :  { %10592 = vst [vmem:[#allocation55_spill] sm:$0xff] %v8586_v39  ;;  %2421 = vmatpush.bf16.msra.mxu2 %v6959_v47  ;;  %2684 = vmatpush.bf16.msrb.mxu0 %v6972_v52 }
 0x284   :  { %10594 = vst [vmem:[#allocation28_spill] sm:$0xff] %v8589_v51  ;;  %v1746_v37 = vsel %vm1729_vm5, %v1743_v60, %v1745_v21 }
 0x285   :  { %10596 = vst [vmem:[#allocation29_spill] sm:$0xff] %v8592_v28  ;;  %v10600_v28 = vld [vmem:[#allocation31_spill] sm:$0xff] }
 0x288   :  { %v8611_v16 = vpop.f32.mrf.mxu3  ;;  %v1113_v23 = vpop.f32.mrf.mxu0 }
 0x289   :  { %10598 = vst [vmem:[#allocation57_spill] sm:$0xff] %v8611_v16  ;;  %v1267_v12 = vadd.f32 %v1113_v23, %v10599_v9  ;;  %v1202_v33 = vpop.f32.mrf.mxu1  ;;  %v8621_v16 = vpop.f32.mrf.mxu2 }
 0x28a   :  { %v1268_v51 = vadd.f32 %v1202_v33, %v10600_v28  ;;  %10601 = vst [vmem:[#allocation30_spill] sm:$0xff] %v8621_v16  ;;  %v7226_v28 = vld [vmem:[%s10431_s0 + $0x48] sm:$0xff] }
 0x28b   :  { %5979 = vmatmul.msk.bf16.gmra.mxu0 %vm371_vm1, %v1746_v37  ;;  %v1747_v23 = vrot.slane %v7226_v28, 2 }
 0x28c   :  { %5995 = vmatmul.msk.bf16.gmra.mxu1 %vm371_vm1, %v1746_v37 }
 0x28d   :  { %v1748_v9 = vsel %vm1729_vm5, %v1745_v21, %v1747_v23 }
 0x290   :  { %v1643_v39 = vpop.f32.mrf.mxu3  ;;  %v1115_v60 = vpop.f32.mrf.mxu0 }
 0x291   :  { %v8623_v19 = vadd.f32 %v1643_v39, %v1268_v51  ;;  %v1269_v5 = vadd.f32 %v1115_v60, %v8155_v41  ;;  %v1204_v47 = vpop.f32.mrf.mxu1  ;;  %v1554_v16 = vpop.f32.mrf.mxu2  ;;  %v2111_v41 = vld [vmem:[%s10433_s2] sm:$0x3] }
 0x292   :  { %v8627_v32 = vadd.f32 %v1204_v47, %v8158_v42  ;;  %v8641_v51 = vperm.slane %v2111_v41, 0  ;;  %v8644_v60 = vperm.slane %v2111_v41, 1 }
 0x293   :  { %10602 = vst [vmem:[#allocation31_spill] sm:$0xff] %v8623_v19 }
 0x294   :  { %10603 = vst [vmem:[#allocation58_spill] sm:$0xff] %v8627_v32 }
 0x298   :  { %v8632_v52 = vpop.f32.mrf.mxu3  ;;  %v1878_v37 = vpop.f32.mrf.mxu0 }
 0x299   :  { %10604 = vst [vmem:[#allocation59_spill] sm:$0xff] %v8632_v52  ;;  %v1967_v33 = vpop.f32.mrf.mxu1  ;;  %v2047_v42 = vadd.f32 %v1878_v37, %v8167_v24  ;;  %v1556_v37 = vpop.f32.mrf.mxu2 }
 0x29a   :  { %v2048_v39 = vadd.f32 %v1967_v33, %v8169_v2  ;;  %v7227_v2 = vld [vmem:[%s10431_s0 + $0x50] sm:$0xff]  ;;  %v1710_v8 = vadd.f32 %v1556_v37, %v1269_v5 }
 0x29b   :  { %5980 = vmatmul.msk.bf16.gmra.mxu0 %vm371_vm1, %v1748_v9  ;;  %v2117_v28 = vadd.f32 %v8641_v51, %v2047_v42  ;;  %v1749_v33 = vrot.slane %v7227_v2, 2 }
 0x29c   :  { %5996 = vmatmul.msk.bf16.gmra.mxu1 %vm371_vm1, %v1748_v9  ;;  %v2118_v19 = vadd.f32 %v8644_v60, %v2048_v39  ;;  %v1708_v9 = vadd.f32 %v1554_v16, %v1267_v12 }
 0x29d   :  { %v2181_v41 = vmax.f32 %v2117_v28, 0.0 }
 0x2a0   :  { %v1953_v47 = vpop.f32.mrf.mxu3  ;;  %v1880_v21 = vpop.f32.mrf.mxu0 }
 0x2a1   :  { %v2049_v52 = vadd.f32 %v1880_v21, %v8178_v36  ;;  %v1969_v32 = vpop.f32.mrf.mxu1  ;;  %v2107_v42 = vadd.f32 %v1953_v47, %v1708_v9  ;;  %v2182_v36 = vmax.f32 %v2118_v19, 0.0 }
 0x2a2   :  { %v2050_v1 = vadd.f32 %v1969_v32, %v8181_v54  ;;  %v6971_v32 = vld [vmem:[%s10432_s3 + $0x64] sm:$0xff] }
 0x2a3   :  { %v2119_v24 = vadd.f32 %v8641_v51, %v2049_v52  ;;  %v6977_v52 = vld [vmem:[%s10432_s3 + $0x94] sm:$0xff]  ;;  %2685 = vmatpush.bf16.msrb.mxu0 %v6971_v32 }
 0x2a4   :  { %v2120_v43 = vadd.f32 %v8644_v60, %v2050_v1  ;;  %v1750_v1 = vsel %vm1729_vm5, %v1747_v23, %v1749_v33  ;;  %2776 = vmatpush.bf16.msrb.mxu1 %v6977_v52 }
 0x2a5   :  { %v2183_v26 = vmax.f32 %v2119_v24, 0.0 }
 0x2a6   :  { %v2184_v21 = vmax.f32 %v2120_v43, 0.0  ;;  %v2177_v43 = vadd.f32 %v8641_v51, %v2107_v42 }
 0x2a7   :  { %v8655_v39 = vpack.c.bf16 %v2183_v26, %v2181_v41 }
 0x2a8   :  { %v8657_v54 = vpack.c.bf16 %v2184_v21, %v2182_v36  ;;  %v1955_v16 = vpop.f32.mrf.mxu3  ;;  %v1883_v12 = vpop.f32.mrf.mxu0  ;;  %v2241_v23 = vmax.f32 %v2177_v43, 0.0 }
 0x2a9   :  { %v2109_v5 = vadd.f32 %v1955_v16, %v1710_v8  ;;  %v1972_v26 = vpop.f32.mrf.mxu1  ;;  %2422 = vmatmul.bf16.vlgmr.msra.gmra.mxu2 %v8655_v39  ;;  %v2051_v28 = vadd.f32 %v1883_v12, %v8196_v3  ;;  %v7228_v3 = vld [vmem:[%s10431_s0 + $0x58] sm:$0xff] }
 0x2aa   :  { %6044 = vmatmul.msk.bf16.vlgmr.msrb.gmra.mxu3 %vm2361_vm6, %v8657_v54  ;;  %v2052_v8 = vadd.f32 %v1972_v26, %v8198_v57  ;;  %v1751_v57 = vrot.slane %v7228_v3, 2 }
 0x2ab   :  { %v2179_v19 = vadd.f32 %v8641_v51, %v2109_v5  ;;  %5981 = vmatmul.msk.bf16.gmra.mxu0 %vm371_vm1, %v1750_v1  ;;  %v2121_v37 = vadd.f32 %v8641_v51, %v2051_v28 }
 0x2ac   :  { %5997 = vmatmul.msk.bf16.gmra.mxu1 %vm371_vm1, %v1750_v1  ;;  %v2122_v42 = vadd.f32 %v8644_v60, %v2052_v8 }
 0x2ad   :  { %v2243_v47 = vmax.f32 %v2179_v19, 0.0  ;;  %v2185_v12 = vmax.f32 %v2121_v37, 0.0 }
 0x2ae   :  { %v2186_v32 = vmax.f32 %v2122_v42, 0.0 }
 0x2af   :  { %v8675_v9 = vpack.c.bf16 %v2243_v47, %v2241_v23  ;;  %v6970_v47 = vld [vmem:[%s10432_s3 + $0x5c] sm:$0xff] }
 0x2b0   :  { %v1885_v24 = vpop.f32.mrf.mxu0  ;;  %2686 = vmatpush.bf16.msrb.mxu0 %v6970_v47 }
 0x2b1   :  { %v2053_v2 = vadd.f32 %v1885_v24, %v8207_v59  ;;  %v1974_v41 = vpop.f32.mrf.mxu1 }
 0x2b2   :  { %v2054_v36 = vadd.f32 %v1974_v41, %v8210_v29  ;;  %v1752_v29 = vsel %vm1729_vm5, %v1749_v33, %v1751_v57 }
 0x2b3   :  { %v2123_v21 = vadd.f32 %v8641_v51, %v2053_v2 }
 0x2b4   :  { %v2124_v16 = vadd.f32 %v8644_v60, %v2054_v36 }
 0x2b5   :  { %v2187_v1 = vmax.f32 %v2123_v21, 0.0 }
 0x2b6   :  { %v2188_v52 = vmax.f32 %v2124_v16, 0.0 }
 0x2b7   :  { %v8686_v43 = vpack.c.bf16 %v2187_v1, %v2185_v12 }
 0x2b8   :  { %v8688_v59 = vpack.c.bf16 %v2188_v52, %v2186_v32  ;;  %v1888_v5 = vpop.f32.mrf.mxu0 }
 0x2b9   :  { %v1977_v26 = vpop.f32.mrf.mxu1  ;;  %2427 = vmatmul.bf16.gmra.mxu2 %v8686_v43  ;;  %v2055_v19 = vadd.f32 %v1888_v5, %v8225_v27 }
 0x2ba   :  { %6045 = vmatmul.msk.bf16.gmra.mxu3 %vm2361_vm6, %v8688_v59  ;;  %v2056_v23 = vadd.f32 %v1977_v26, %v8227_v44  ;;  %v7229_v44 = vld [vmem:[%s10431_s0 + $0x60] sm:$0xff] }
 0x2bb   :  { %5982 = vmatmul.msk.bf16.gmra.mxu0 %vm371_vm1, %v1752_v29  ;;  %v2125_v33 = vadd.f32 %v8641_v51, %v2055_v19  ;;  %v1753_v42 = vrot.slane %v7229_v44, 2 }
 0x2bc   :  { %5998 = vmatmul.msk.bf16.gmra.mxu1 %vm371_vm1, %v1752_v29  ;;  %v2126_v37 = vadd.f32 %v8644_v60, %v2056_v23 }
 0x2bd   :  { %v2189_v36 = vmax.f32 %v2125_v33, 0.0 }
 0x2be   :  { %v2190_v16 = vmax.f32 %v2126_v37, 0.0 }
 0x2c0   :  { %v1890_v28 = vpop.f32.mrf.mxu0 }
 0x2c1   :  { %v2057_v8 = vadd.f32 %v1890_v28, %v8236_v30  ;;  %v1979_v24 = vpop.f32.mrf.mxu1 }
 0x2c2   :  { %v2058_v2 = vadd.f32 %v1979_v24, %v8239_v20  ;;  %v1754_v20 = vsel %vm1729_vm5, %v1751_v57, %v1753_v42 }
 0x2c3   :  { %v2127_v41 = vadd.f32 %v8641_v51, %v2057_v8 }
 0x2c4   :  { %v2128_v27 = vadd.f32 %v8644_v60, %v2058_v2 }
 0x2c5   :  { %v2191_v21 = vmax.f32 %v2127_v41, 0.0 }
 0x2c6   :  { %v2192_v3 = vmax.f32 %v2128_v27, 0.0 }
 0x2c7   :  { %v8710_v12 = vpack.c.bf16 %v2191_v21, %v2189_v36  ;;  %v1664_v36 = vadd.f32 %v8279_v22, %v8271_v50 }
 0x2c8   :  { %v8712_v30 = vpack.c.bf16 %v2192_v3, %v2190_v16  ;;  %v1893_v1 = vpop.f32.mrf.mxu0  ;;  %v1666_v3 = vadd.f32 %v8301_v6, %v8284_v13 }
 0x2c9   :  { %v1982_v32 = vpop.f32.mrf.mxu1  ;;  %2432 = vmatmul.bf16.gmra.mxu2 %v8710_v12  ;;  %v2059_v52 = vadd.f32 %v1893_v1, %v8248_v31  ;;  %v7230_v31 = vld [vmem:[%s10431_s0 + $0x68] sm:$0xff] }
 0x2ca   :  { %6046 = vmatmul.msk.bf16.gmra.mxu3 %vm2361_vm6, %v8712_v30  ;;  %v2060_v5 = vadd.f32 %v1982_v32, %v8250_v25  ;;  %v1755_v8 = vrot.slane %v7230_v31, 2  ;;  %v1668_v31 = vadd.f32 %v8320_v53, %v8307_v61 }
 0x2cb   :  { %5983 = vmatmul.msk.bf16.gmra.mxu0 %vm371_vm1, %v1754_v20  ;;  %v2129_v26 = vadd.f32 %v8641_v51, %v2059_v52 }
 0x2cc   :  { %5999 = vmatmul.msk.bf16.gmra.mxu1 %vm371_vm1, %v1754_v20  ;;  %v2130_v23 = vadd.f32 %v8644_v60, %v2060_v5 }
 0x2cd   :  { %v2193_v25 = vmax.f32 %v2129_v26, 0.0 }
 0x2ce   :  { %v2194_v37 = vmax.f32 %v2130_v23, 0.0 }
 0x2d0   :  { %v1895_v29 = vpop.f32.mrf.mxu0 }
 0x2d1   :  { %v2061_v19 = vadd.f32 %v1895_v29, %v8265_v18  ;;  %v1984_v57 = vpop.f32.mrf.mxu1  ;;  %v7231_v29 = vld [vmem:[%s10431_s0 + $0x70] sm:$0xff] }
 0x2d2   :  { %v2062_v47 = vadd.f32 %v1984_v57, %v8268_v10  ;;  %v1756_v10 = vsel %vm1729_vm5, %v1753_v42, %v1755_v8  ;;  %v6969_v42 = vld [vmem:[%s10432_s3 + $0x54] sm:$0xff]  ;;  %v1757_v26 = vrot.slane %v7231_v29, 2 }
 0x2d3   :  { %v2131_v28 = vadd.f32 %v8641_v51, %v2061_v19  ;;  %2687 = vmatpush.bf16.msrb.mxu0 %v6969_v42 }
 0x2d4   :  { %v2132_v33 = vadd.f32 %v8644_v60, %v2062_v47 }
 0x2d5   :  { %v2195_v24 = vmax.f32 %v2131_v28, 0.0 }
 0x2d6   :  { %v2196_v2 = vmax.f32 %v2132_v33, 0.0 }
 0x2d7   :  { %v8731_v41 = vpack.c.bf16 %v2195_v24, %v2193_v25 }
 0x2d8   :  { %v8733_v18 = vpack.c.bf16 %v2196_v2, %v2194_v37  ;;  %v1898_v27 = vpop.f32.mrf.mxu0  ;;  %v1670_v37 = vadd.f32 %v8334_v62, %v8325_v48 }
 0x2d9   :  { %v1987_v44 = vpop.f32.mrf.mxu1  ;;  %2437 = vmatmul.bf16.gmra.mxu2 %v8731_v41  ;;  %v2063_v21 = vadd.f32 %v1898_v27, %v1664_v36 }
 0x2da   :  { %6047 = vmatmul.msk.bf16.gmra.mxu3 %vm2361_vm6, %v8733_v18  ;;  %v2064_v16 = vadd.f32 %v1987_v44, %v8281_v58 }
 0x2db   :  { %5984 = vmatmul.msk.bf16.gmra.mxu0 %vm371_vm1, %v1756_v10  ;;  %v2133_v20 = vadd.f32 %v8641_v51, %v2063_v21 }
 0x2dc   :  { %6000 = vmatmul.msk.bf16.gmra.mxu1 %vm371_vm1, %v1756_v10  ;;  %v2134_v22 = vadd.f32 %v8644_v60, %v2064_v16 }
 0x2dd   :  { %v2197_v13 = vmax.f32 %v2133_v20, 0.0  ;;  %v1672_v20 = vadd.f32 %v8351_v17, %v8340_v40 }
 0x2de   :  { %v2198_v19 = vmax.f32 %v2134_v22, 0.0  ;;  %v1674_v22 = vadd.f32 %v8362_v63, %v8356_v4 }
 0x2e0   :  { %v1900_v1 = vpop.f32.mrf.mxu0 }
 0x2e1   :  { %v2065_v32 = vadd.f32 %v1900_v1, %v1666_v3  ;;  %v1989_v50 = vpop.f32.mrf.mxu1 }
 0x2e2   :  { %v2066_v52 = vadd.f32 %v1989_v50, %v8304_v46  ;;  %v1758_v46 = vsel %vm1729_vm5, %v1755_v8, %v1757_v26  ;;  %v1671_v8 = vadd.f32 %v8336_v56, %v8328_v11  ;;  %v1760_v56 = vsel %vm1729_vm5, %v1757_v26, %v8407_v38 }
 0x2e3   :  { %v2135_v5 = vadd.f32 %v8641_v51, %v2065_v32 }
 0x2e4   :  { %v2136_v58 = vadd.f32 %v8644_v60, %v2066_v52  ;;  %v1675_v52 = vadd.f32 %v8364_v15, %v8359_v34 }
 0x2e5   :  { %v2199_v6 = vmax.f32 %v2135_v5, 0.0 }
 0x2e6   :  { %v2200_v57 = vmax.f32 %v2136_v58, 0.0 }
 0x2e7   :  { %v8757_v23 = vpack.c.bf16 %v2199_v6, %v2197_v13 }
 0x2e8   :  { %v8759_v47 = vpack.c.bf16 %v2200_v57, %v2198_v19  ;;  %v1903_v28 = vpop.f32.mrf.mxu0 }
 0x2e9   :  { %v1992_v33 = vpop.f32.mrf.mxu1  ;;  %2442 = vmatmul.bf16.gmra.mxu2 %v8757_v23  ;;  %v2067_v25 = vadd.f32 %v1903_v28, %v1668_v31 }
 0x2ea   :  { %6048 = vmatmul.msk.bf16.gmra.mxu3 %vm2361_vm6, %v8759_v47  ;;  %v2068_v24 = vadd.f32 %v1992_v33, %v8322_v49 }
 0x2eb   :  { %5985 = vmatmul.msk.bf16.gmra.mxu0 %vm371_vm1, %v1758_v46  ;;  %v2137_v27 = vadd.f32 %v8641_v51, %v2067_v25  ;;  %v10605_v25 = vld [vmem:[#allocation8_spill] sm:$0xff] }
 0x2ec   :  { %6001 = vmatmul.msk.bf16.gmra.mxu1 %vm371_vm1, %v1758_v46  ;;  %v2138_v61 = vadd.f32 %v8644_v60, %v2068_v24  ;;  %v1676_v46 = vadd.f32 %v8380_v45, %v8367_v14  ;;  %v1678_v24 = vadd.f32 %v10605_v25, %v8387_v35 }
 0x2ed   :  { %v2201_v16 = vmax.f32 %v2137_v27, 0.0 }
 0x2ee   :  { %v2202_v42 = vmax.f32 %v2138_v61, 0.0 }
 0x2f0   :  { %v1905_v2 = vpop.f32.mrf.mxu0 }
 0x2f1   :  { %v2069_v10 = vadd.f32 %v1905_v2, %v1670_v37  ;;  %v1994_v44 = vpop.f32.mrf.mxu1  ;;  %v10606_v37 = vld [vmem:[#allocation7_spill] sm:$0xff] }
 0x2f2   :  { %v2070_v53 = vadd.f32 %v1994_v44, %v1671_v8  ;;  %v10607_v8 = vld [vmem:[#allocation6_spill] sm:$0xff] }
 0x2f3   :  { %v2139_v36 = vadd.f32 %v8641_v51, %v2069_v10  ;;  %v1679_v2 = vadd.f32 %v10607_v8, %v10606_v37  ;;  %v10616_v37 = vld [vmem:[#allocation36_spill] sm:$0xff] }
 0x2f4   :  { %v2140_v21 = vadd.f32 %v8644_v60, %v2070_v53 }
 0x2f5   :  { %v2203_v49 = vmax.f32 %v2139_v36, 0.0 }
 0x2f6   :  { %v2204_v3 = vmax.f32 %v2140_v21, 0.0 }
 0x2f7   :  { %v8778_v48 = vpack.c.bf16 %v2203_v49, %v2201_v16 }
 0x2f8   :  { %v8780_v62 = vpack.c.bf16 %v2204_v3, %v2202_v42  ;;  %v1908_v11 = vpop.f32.mrf.mxu0  ;;  %v10608_v3 = vld [vmem:[#allocation9_spill] sm:$0xff] }
 0x2f9   :  { %v1997_v1 = vpop.f32.mrf.mxu1  ;;  %2447 = vmatmul.bf16.gmra.mxu2 %v8778_v48  ;;  %v2071_v32 = vadd.f32 %v1908_v11, %v1672_v20  ;;  %v10609_v11 = vld [vmem:[#allocation32_spill] sm:$0xff]  ;;  %v10610_v20 = vld [vmem:[#allocation33_spill] sm:$0xff] }
 0x2fa   :  { %6049 = vmatmul.msk.bf16.gmra.mxu3 %vm2361_vm6, %v8780_v62  ;;  %v2072_v50 = vadd.f32 %v1997_v1, %v8353_v7 }
 0x2fb   :  { %5986 = vmatmul.msk.bf16.gmra.mxu0 %vm371_vm1, %v1760_v56  ;;  %v2141_v58 = vadd.f32 %v8641_v51, %v2071_v32 }
 0x2fc   :  { %6002 = vmatmul.msk.bf16.gmra.mxu1 %vm371_vm1, %v1760_v56  ;;  %v2142_v40 = vadd.f32 %v8644_v60, %v2072_v50  ;;  %v1680_v56 = vadd.f32 %v10609_v11, %v10608_v3  ;;  %v10611_v50 = vld [vmem:[#allocation11_spill] sm:$0xff] }
 0x2fd   :  { %v2205_v19 = vmax.f32 %v2141_v58, 0.0 }
 0x2fe   :  { %v2206_v57 = vmax.f32 %v2142_v40, 0.0 }
 0x300   :  { %v1910_v5 = vpop.f32.mrf.mxu0 }
 0x301   :  { %v2073_v29 = vadd.f32 %v1910_v5, %v1674_v22  ;;  %v1999_v26 = vpop.f32.mrf.mxu1  ;;  %v1682_v22 = vadd.f32 %v10611_v50, %v8419_v55  ;;  %v10613_v5 = vld [vmem:[#allocation34_spill] sm:$0xff] }
 0x302   :  { %v2074_v17 = vadd.f32 %v1999_v26, %v1675_v52  ;;  %v10612_v52 = vld [vmem:[#allocation10_spill] sm:$0xff] }
 0x303   :  { %v2143_v13 = vadd.f32 %v8641_v51, %v2073_v29  ;;  %v1683_v58 = vadd.f32 %v10613_v5, %v10612_v52  ;;  %v10621_v52 = vld [vmem:[#allocation15_spill] sm:$0xff] }
 0x304   :  { %v2144_v6 = vadd.f32 %v8644_v60, %v2074_v17  ;;  %v10622_v5 = vld [vmem:[#allocation39_spill] sm:$0xff] }
 0x305   :  { %v2207_v7 = vmax.f32 %v2143_v13, 0.0 }
 0x306   :  { %v2208_v28 = vmax.f32 %v2144_v6, 0.0 }
 0x307   :  { %v8800_v4 = vpack.c.bf16 %v2207_v7, %v2205_v19 }
 0x308   :  { %v8802_v63 = vpack.c.bf16 %v2208_v28, %v2206_v57  ;;  %v1913_v34 = vpop.f32.mrf.mxu0 }
 0x309   :  { %v2002_v15 = vpop.f32.mrf.mxu1  ;;  %2452 = vmatmul.bf16.gmra.mxu2 %v8800_v4  ;;  %v2075_v33 = vadd.f32 %v1913_v34, %v1676_v46 }
 0x30a   :  { %6050 = vmatmul.msk.bf16.gmra.mxu3 %vm2361_vm6, %v8802_v63  ;;  %v2076_v31 = vadd.f32 %v2002_v15, %v8384_v0 }
 0x30b   :  { %2688 = vmatmul.bf16.vlgmr.msrb.gmra.mxu0 %v8655_v39  ;;  %v2145_v10 = vadd.f32 %v8641_v51, %v2075_v33  ;;  %v10614_v33 = vld [vmem:[#allocation12_spill] sm:$0xff] }
 0x30c   :  { %6003 = vmatmul.msk.bf16.gmra.mxu1 %vm371_vm1, %v8407_v38  ;;  %v2146_v14 = vadd.f32 %v8644_v60, %v2076_v31  ;;  %v10615_v31 = vld [vmem:[#allocation35_spill] sm:$0xff] }
 0x30d   :  { %v2209_v53 = vmax.f32 %v2145_v10, 0.0  ;;  %v1684_v25 = vadd.f32 %v10615_v31, %v10614_v33 }
 0x30e   :  { %v2210_v36 = vmax.f32 %v2146_v14, 0.0 }
 0x310   :  { %v1915_v27 = vpop.f32.mrf.mxu0 }
 0x311   :  { %v2077_v44 = vadd.f32 %v1915_v27, %v1678_v24  ;;  %v2004_v61 = vpop.f32.mrf.mxu1  ;;  %v10618_v27 = vld [vmem:[#allocation37_spill] sm:$0xff] }
 0x312   :  { %v2078_v45 = vadd.f32 %v2004_v61, %v1679_v2  ;;  %v10617_v2 = vld [vmem:[#allocation13_spill] sm:$0xff]  ;;  %v10620_v61 = vld [vmem:[#allocation38_spill] sm:$0xff] }
 0x313   :  { %v2147_v39 = vadd.f32 %v8641_v51, %v2077_v44  ;;  %v1686_v10 = vadd.f32 %v10618_v27, %v10617_v2  ;;  %v10619_v44 = vld [vmem:[#allocation14_spill] sm:$0xff] }
 0x314   :  { %v2148_v38 = vadd.f32 %v8644_v60, %v2078_v45  ;;  %v1687_v14 = vadd.f32 %v10620_v61, %v10619_v44  ;;  %v7016_v44 = vld [vmem:[%s10434_s4 + $0xf4] sm:$0xf0] }
 0x315   :  { %v2211_v0 = vmax.f32 %v2147_v39, 0.0 }
 0x316   :  { %v2212_v21 = vmax.f32 %v2148_v38, 0.0 }
 0x317   :  { %v8821_v35 = vpack.c.bf16 %v2211_v0, %v2209_v53 }
 0x318   :  { %v8823_v16 = vpack.c.bf16 %v2212_v21, %v2210_v36  ;;  %v1918_v49 = vpop.f32.mrf.mxu0 }
 0x319   :  { %v2007_v42 = vpop.f32.mrf.mxu1  ;;  %2457 = vmatmul.bf16.gmra.mxu2 %v8821_v35  ;;  %v2079_v1 = vadd.f32 %v1918_v49, %v1680_v56 }
 0x31a   :  { %6051 = vmatmul.msk.bf16.gmra.mxu3 %vm2361_vm6, %v8823_v16  ;;  %v2080_v32 = vadd.f32 %v2007_v42, %v10610_v20  ;;  %v7015_v20 = vld [vmem:[%s10434_s4 + $0xf4] sm:$0xf] }
 0x31b   :  { %2693 = vmatmul.bf16.gmra.mxu0 %v8686_v43  ;;  %v2149_v26 = vadd.f32 %v8641_v51, %v2079_v1 }
 0x31c   :  { %6121 = vmatmul.msk.bf16.vlgmr.msrb.gmra.mxu1 %vm2361_vm6, %v8657_v54  ;;  %v2150_v13 = vadd.f32 %v8644_v60, %v2080_v32  ;;  %v6237_v32 = vld [vmem:[%s10434_s4 + $0xf8] sm:$0xf0] }
 0x31d   :  { %v2213_v19 = vmax.f32 %v2149_v26, 0.0  ;;  %v10623_v26 = vld [vmem:[#allocation40_spill] sm:$0xff] }
 0x31e   :  { %v2214_v57 = vmax.f32 %v2150_v13, 0.0  ;;  %v10625_v13 = vld [vmem:[#allocation41_spill] sm:$0xff] }
 0x320   :  { %v1920_v29 = vpop.f32.mrf.mxu0 }
 0x321   :  { %v2081_v40 = vadd.f32 %v1920_v29, %v1682_v22  ;;  %v2009_v17 = vpop.f32.mrf.mxu1  ;;  %v6240_v22 = vor.u32 %v7015_v20, %v6237_v32 }
 0x322   :  { %v2082_v43 = vadd.f32 %v2009_v17, %v1683_v58  ;;  %v1688_v58 = vadd.f32 %v10622_v5, %v10621_v52  ;;  %v10624_v17 = vld [vmem:[#allocation16_spill] sm:$0xff] }
 0x323   :  { %v2151_v6 = vadd.f32 %v8641_v51, %v2081_v40  ;;  %3324 = vmatpush.bf16.msra.mxu3 %v6240_v22 }
 0x324   :  { %v2152_v54 = vadd.f32 %v8644_v60, %v2082_v43  ;;  %v1690_v43 = vadd.f32 %v10625_v13, %v10624_v17 }
 0x325   :  { %v2215_v7 = vmax.f32 %v2151_v6, 0.0  ;;  %v10626_v6 = vld [vmem:[#allocation17_spill] sm:$0xff] }
 0x326   :  { %v2216_v28 = vmax.f32 %v2152_v54, 0.0  ;;  %v10627_v54 = vld [vmem:[#allocation42_spill] sm:$0xff] }
 0x327   :  { %v8842_v55 = vpack.c.bf16 %v2215_v7, %v2213_v19  ;;  %v1691_v19 = vadd.f32 %v10627_v54, %v10626_v6  ;;  %v7013_v54 = vld [vmem:[%s10434_s4 + $0xe4] sm:$0xf] }
 0x328   :  { %v8844_v34 = vpack.c.bf16 %v2216_v28, %v2214_v57  ;;  %v1923_v15 = vpop.f32.mrf.mxu0 }
 0x329   :  { %v2012_v46 = vpop.f32.mrf.mxu1  ;;  %2462 = vmatmul.bf16.gmra.mxu2 %v8842_v55  ;;  %v2083_v24 = vadd.f32 %v1923_v15, %v1684_v25 }
 0x32a   :  { %6052 = vmatmul.msk.bf16.gmra.mxu3 %vm2361_vm6, %v8844_v34  ;;  %v2084_v8 = vadd.f32 %v2012_v46, %v10616_v37 }
 0x32b   :  { %2698 = vmatmul.bf16.gmra.mxu0 %v8710_v12  ;;  %v2153_v39 = vadd.f32 %v8641_v51, %v2083_v24 }
 0x32c   :  { %6122 = vmatmul.msk.bf16.gmra.mxu1 %vm2361_vm6, %v8688_v59  ;;  %v2154_v0 = vadd.f32 %v8644_v60, %v2084_v8  ;;  %v8915_v52 = vpop.f32.mrf.mxu2 }
 0x32d   :  { %v2217_v21 = vmax.f32 %v2153_v39, 0.0  ;;  %v10629_v39 = vld [vmem:[#allocation19_spill] sm:$0xff]  ;;  %v8918_v5 = vpop.f32.mrf.mxu3 }
 0x32e   :  { %v2218_v42 = vmax.f32 %v2154_v0, 0.0  ;;  %v10630_v0 = vld [vmem:[#allocation43_spill] sm:$0xff] }
 0x330   :  { %v1925_v45 = vpop.f32.mrf.mxu0 }
 0x331   :  { %v2085_v38 = vadd.f32 %v1925_v45, %v1686_v10  ;;  %v2014_v53 = vpop.f32.mrf.mxu1  ;;  %v6235_v10 = vld [vmem:[%s10434_s4 + $0xf0] sm:$0xf]  ;;  %v10628_v45 = vld [vmem:[#allocation18_spill] sm:$0xff] }
 0x332   :  { %v2086_v12 = vadd.f32 %v2014_v53, %v1687_v14  ;;  %v6236_v14 = vor.u32 %v7016_v44, %v6235_v10  ;;  %v10640_v10 = vld [vmem:[#allocation23_spill] sm:$0xff]  ;;  %v10641_v44 = vld [vmem:[#allocation50_spill] sm:$0xff] }
 0x333   :  { %v2155_v36 = vadd.f32 %v8641_v51, %v2085_v38  ;;  %v1692_v38 = vadd.f32 %v10629_v39, %v10628_v45 }
 0x334   :  { %v2156_v59 = vadd.f32 %v8644_v60, %v2086_v12  ;;  %3275 = vmatpush.bf16.msrb.mxu2 %v6236_v14 }
 0x335   :  { %v2219_v49 = vmax.f32 %v2155_v36, 0.0  ;;  %v10631_v36 = vld [vmem:[#allocation44_spill] sm:$0xff] }
 0x336   :  { %v2220_v3 = vmax.f32 %v2156_v59, 0.0  ;;  %v10632_v59 = vld [vmem:[#allocation45_spill] sm:$0xff] }
 0x337   :  { %v8863_v11 = vpack.c.bf16 %v2219_v49, %v2217_v21  ;;  %v1694_v21 = vadd.f32 %v10632_v59, %v10631_v36  ;;  %v10633_v49 = vld [vmem:[#allocation20_spill] sm:$0xff] }
 0x338   :  { %v8865_v56 = vpack.c.bf16 %v2220_v3, %v2218_v42  ;;  %v1928_v1 = vpop.f32.mrf.mxu0  ;;  %v10634_v42 = vld [vmem:[#allocation46_spill] sm:$0xff] }
 0x339   :  { %v2017_v50 = vpop.f32.mrf.mxu1  ;;  %2467 = vmatmul.bf16.gmra.mxu2 %v8863_v11  ;;  %v2087_v29 = vadd.f32 %v1928_v1, %v1688_v58  ;;  %v1695_v3 = vadd.f32 %v10634_v42, %v10633_v49 }
 0x33a   :  { %6053 = vmatmul.msk.bf16.gmra.mxu3 %vm2361_vm6, %v8865_v56  ;;  %v2088_v40 = vadd.f32 %v2017_v50, %v10623_v26 }
 0x33b   :  { %2703 = vmatmul.bf16.gmra.mxu0 %v8731_v41  ;;  %v2157_v57 = vadd.f32 %v8641_v51, %v2087_v29 }
 0x33c   :  { %6123 = vmatmul.msk.bf16.gmra.mxu1 %vm2361_vm6, %v8712_v30  ;;  %v2158_v41 = vadd.f32 %v8644_v60, %v2088_v40 }
 0x33d   :  { %v2221_v31 = vmax.f32 %v2157_v57, 0.0 }
 0x33e   :  { %v2222_v24 = vmax.f32 %v2158_v41, 0.0 }
 0x340   :  { %v1930_v7 = vpop.f32.mrf.mxu0 }
 0x341   :  { %v2089_v28 = vadd.f32 %v1930_v7, %v1690_v43  ;;  %v2019_v15 = vpop.f32.mrf.mxu1 }
 0x342   :  { %v2090_v46 = vadd.f32 %v2019_v15, %v1691_v19  ;;  %v6229_v19 = vld [vmem:[%s10434_s4 + $0xe8] sm:$0xf0]  ;;  %v10636_v15 = vld [vmem:[#allocation22_spill] sm:$0xff] }
 0x343   :  { %v2159_v33 = vadd.f32 %v8641_v51, %v2089_v28  ;;  %v6232_v57 = vor.u32 %v7013_v54, %v6229_v19  ;;  %v10635_v28 = vld [vmem:[#allocation21_spill] sm:$0xff]  ;;  %v10646_v54 = vld [vmem:[#allocation54_spill] sm:$0xff] }
 0x344   :  { %v2160_v30 = vadd.f32 %v8644_v60, %v2090_v46  ;;  %v1696_v41 = vadd.f32 %v10636_v15, %v10635_v28  ;;  %v8939_v46 = vpop.f32.mrf.mxu2 }
 0x345   :  { %v2223_v25 = vmax.f32 %v2159_v33, 0.0  ;;  %3325 = vmatpush.bf16.msra.mxu3 %v6232_v57  ;;  %v10648_v57 = vld [vmem:[#allocation52_spill] sm:$0xff] }
 0x346   :  { %v2224_v37 = vmax.f32 %v2160_v30, 0.0  ;;  %v8941_v30 = vpop.f32.mrf.mxu3 }
 0x347   :  { %v8890_v8 = vpack.c.bf16 %v2223_v25, %v2221_v31  ;;  %v10637_v31 = vld [vmem:[#allocation47_spill] sm:$0xff] }
 0x348   :  { %v8892_v2 = vpack.c.bf16 %v2224_v37, %v2222_v24  ;;  %v1933_v27 = vpop.f32.mrf.mxu0  ;;  %v10638_v24 = vld [vmem:[#allocation48_spill] sm:$0xff]  ;;  %v10639_v37 = vld [vmem:[#allocation49_spill] sm:$0xff] }
 0x349   :  { %v2022_v61 = vpop.f32.mrf.mxu1  ;;  %2472 = vmatmul.bf16.gmra.mxu2 %v8890_v8  ;;  %v2091_v53 = vadd.f32 %v1933_v27, %v1692_v38  ;;  %v1698_v27 = vadd.f32 %v10639_v37, %v10638_v24 }
 0x34a   :  { %6054 = vmatmul.msk.bf16.gmra.mxu3 %vm2361_vm6, %v8892_v2  ;;  %v2092_v12 = vadd.f32 %v2022_v61, %v10630_v0  ;;  %v1699_v61 = vadd.f32 %v10641_v44, %v10640_v10 }
 0x34b   :  { %2708 = vmatmul.bf16.gmra.mxu0 %v8757_v23  ;;  %v2161_v20 = vadd.f32 %v8641_v51, %v2091_v53 }
 0x34c   :  { %6124 = vmatmul.msk.bf16.gmra.mxu1 %vm2361_vm6, %v8733_v18  ;;  %v2162_v23 = vadd.f32 %v8644_v60, %v2092_v12  ;;  %v8952_v49 = vpop.f32.mrf.mxu2 }
 0x34d   :  { %v2225_v29 = vmax.f32 %v2161_v20, 0.0 }
 0x34e   :  { %v2226_v40 = vmax.f32 %v2162_v23, 0.0 }
 0x350   :  { %v1935_v1 = vpop.f32.mrf.mxu0 }
 0x351   :  { %v2093_v32 = vadd.f32 %v1935_v1, %v1694_v21  ;;  %v2024_v50 = vpop.f32.mrf.mxu1 }
 0x352   :  { %v2094_v22 = vadd.f32 %v2024_v50, %v1695_v3  ;;  %v8956_v3 = vpop.f32.mrf.mxu3  ;;  %v7014_v50 = vld [vmem:[%s10434_s4 + $0xe4] sm:$0xf0] }
 0x353   :  { %v2163_v18 = vadd.f32 %v8641_v51, %v2093_v32  ;;  %v6227_v32 = vld [vmem:[%s10434_s4 + $0xe0] sm:$0xf] }
 0x354   :  { %v2164_v58 = vadd.f32 %v8644_v60, %v2094_v22  ;;  %v6228_v22 = vor.u32 %v7014_v50, %v6227_v32  ;;  %v10651_v50 = vld [vmem:[#allocation55_spill] sm:$0xff] }
 0x355   :  { %v2227_v26 = vmax.f32 %v2163_v18, 0.0  ;;  %v10642_v18 = vld [vmem:[#allocation24_spill] sm:$0xff] }
 0x356   :  { %v2228_v17 = vmax.f32 %v2164_v58, 0.0  ;;  %v10643_v58 = vld [vmem:[#allocation25_spill] sm:$0xff]  ;;  %3276 = vmatpush.bf16.msrb.mxu2 %v6228_v22  ;;  %v10652_v22 = vld [vmem:[#allocation28_spill] sm:$0xff] }
 0x357   :  { %v8921_v13 = vpack.c.bf16 %v2227_v26, %v2225_v29  ;;  %v1700_v29 = vadd.f32 %v10643_v58, %v10642_v18  ;;  %v10653_v18 = vld [vmem:[#allocation30_spill] sm:$0xff] }
 0x358   :  { %v8923_v43 = vpack.c.bf16 %v2228_v17, %v2226_v40  ;;  %v1938_v6 = vpop.f32.mrf.mxu0  ;;  %v10644_v40 = vld [vmem:[#allocation51_spill] sm:$0xff]  ;;  %v1706_v58 = vadd.f32 %v10653_v18, %v10652_v22 }
 0x359   :  { %v2027_v7 = vpop.f32.mrf.mxu1  ;;  %2477 = vmatmul.bf16.gmra.mxu2 %v8921_v13  ;;  %v2095_v33 = vadd.f32 %v1938_v6, %v1696_v41  ;;  %v10645_v6 = vld [vmem:[#allocation26_spill] sm:$0xff]  ;;  %v8979_v41 = vpop.f32.mrf.mxu2 }
 0x35a   :  { %6055 = vmatmul.msk.bf16.gmra.mxu3 %vm2361_vm6, %v8923_v43  ;;  %v2096_v25 = vadd.f32 %v2027_v7, %v10637_v31  ;;  %v1702_v19 = vadd.f32 %v10646_v54, %v10645_v6  ;;  %v10647_v7 = vld [vmem:[#allocation27_spill] sm:$0xff] }
 0x35b   :  { %2713 = vmatmul.bf16.gmra.mxu0 %v8778_v48  ;;  %v2165_v48 = vadd.f32 %v8641_v51, %v2095_v33  ;;  %v1703_v28 = vadd.f32 %v10648_v57, %v10647_v7 }
 0x35c   :  { %6125 = vmatmul.msk.bf16.gmra.mxu1 %vm2361_vm6, %v8759_v47  ;;  %v2166_v47 = vadd.f32 %v8644_v60, %v2096_v25  ;;  %v8982_v25 = vpop.f32.mrf.mxu3 }
 0x35d   :  { %v2229_v12 = vmax.f32 %v2165_v48, 0.0 }
 0x35e   :  { %v2230_v59 = vmax.f32 %v2166_v47, 0.0  ;;  %v7011_v47 = vld [vmem:[%s10434_s4 + $0xd4] sm:$0xf] }
 0x360   :  { %v1940_v14 = vpop.f32.mrf.mxu0 }
 0x361   :  { %v2097_v45 = vadd.f32 %v1940_v14, %v1698_v27  ;;  %v2029_v39 = vpop.f32.mrf.mxu1 }
 0x362   :  { %v2098_v38 = vadd.f32 %v2029_v39, %v1699_v61 }
 0x363   :  { %v2167_v53 = vadd.f32 %v8641_v51, %v2097_v45 }
 0x364   :  { %v2168_v0 = vadd.f32 %v8644_v60, %v2098_v38  ;;  %v6221_v38 = vld [vmem:[%s10434_s4 + $0xd8] sm:$0xf0] }
 0x365   :  { %v2231_v36 = vmax.f32 %v2167_v53, 0.0 }
 0x366   :  { %v2232_v21 = vmax.f32 %v2168_v0, 0.0  ;;  %v6224_v0 = vor.u32 %v7011_v47, %v6221_v38  ;;  %v10657_v38 = vld [vmem:[#allocation58_spill] sm:$0xff] }
 0x367   :  { %v8954_v42 = vpack.c.bf16 %v2231_v36, %v2229_v12  ;;  %v10649_v12 = vld [vmem:[#allocation53_spill] sm:$0xff]  ;;  %v10650_v36 = vld [vmem:[#allocation56_spill] sm:$0xff] }
 0x368   :  { %v8958_v1 = vpack.c.bf16 %v2232_v21, %v2230_v59  ;;  %v1943_v20 = vpop.f32.mrf.mxu0  ;;  %v1704_v59 = vadd.f32 %v10650_v36, %v10649_v12  ;;  %v9002_v21 = vpop.f32.mrf.mxu2  ;;  %3326 = vmatpush.bf16.msra.mxu3 %v6224_v0 }
 0x369   :  { %v2032_v23 = vpop.f32.mrf.mxu1  ;;  %2482 = vmatmul.bf16.gmra.mxu2 %v8954_v42  ;;  %v2099_v26 = vadd.f32 %v1943_v20, %v1700_v29  ;;  %v9005_v20 = vpop.f32.mrf.mxu3  ;;  %v10654_v29 = vld [vmem:[#allocation29_spill] sm:$0xff] }
 0x36a   :  { %6056 = vmatmul.msk.bf16.gmra.mxu3 %vm2361_vm6, %v8958_v1  ;;  %v2100_v17 = vadd.f32 %v2032_v23, %v10644_v40 }
 0x36b   :  { %2718 = vmatmul.bf16.gmra.mxu0 %v8800_v4  ;;  %v2169_v33 = vadd.f32 %v8641_v51, %v2099_v26  ;;  %v10655_v26 = vld [vmem:[#allocation57_spill] sm:$0xff] }
 0x36c   :  { %6126 = vmatmul.msk.bf16.gmra.mxu1 %vm2361_vm6, %v8780_v62  ;;  %v2170_v62 = vadd.f32 %v8644_v60, %v2100_v17  ;;  %v1707_v40 = vadd.f32 %v10655_v26, %v10654_v29  ;;  %v2513_v26 = vadd.f32 %v8918_v5, %v8915_v52  ;;  %v7009_v52 = vld [vmem:[%s10434_s4 + $0xc4] sm:$0xf]  ;;  %v6213_v5 = vld [vmem:[%s10434_s4 + $0xc8] sm:$0xf0] }
 0x36d   :  { %v2233_v10 = vmax.f32 %v2169_v33, 0.0 }
 0x36e   :  { %v2234_v61 = vmax.f32 %v2170_v62, 0.0 }
 0x370   :  { %v1945_v15 = vpop.f32.mrf.mxu0 }
 0x371   :  { %v2101_v31 = vadd.f32 %v1945_v15, %v1702_v19  ;;  %v2034_v4 = vpop.f32.mrf.mxu1 }
 0x372   :  { %v2102_v24 = vadd.f32 %v2034_v4, %v1703_v28  ;;  %v9018_v28 = vpop.f32.mrf.mxu2 }
 0x373   :  { %v2171_v37 = vadd.f32 %v8641_v51, %v2101_v31  ;;  %v9020_v31 = vpop.f32.mrf.mxu3 }
 0x374   :  { %v2172_v27 = vadd.f32 %v8644_v60, %v2102_v24 }
 0x375   :  { %v2235_v44 = vmax.f32 %v2171_v37, 0.0 }
 0x376   :  { %v2236_v14 = vmax.f32 %v2172_v27, 0.0 }
 0x377   :  { %v8987_v48 = vpack.c.bf16 %v2235_v44, %v2233_v10 }
 0x378   :  { %v8989_v45 = vpack.c.bf16 %v2236_v14, %v2234_v61  ;;  %v1948_v39 = vpop.f32.mrf.mxu0  ;;  %v6219_v61 = vld [vmem:[%s10434_s4 + $0xd0] sm:$0xf]  ;;  %v7012_v14 = vld [vmem:[%s10434_s4 + $0xd4] sm:$0xf0] }
 0x379   :  { %v2037_v53 = vpop.f32.mrf.mxu1  ;;  %2487 = vmatmul.bf16.gmra.mxu2 %v8987_v48  ;;  %v2103_v32 = vadd.f32 %v1948_v39, %v1704_v59  ;;  %v6220_v47 = vor.u32 %v7012_v14, %v6219_v61 }
 0x37a   :  { %6057 = vmatmul.msk.bf16.gmra.mxu3 %vm2361_vm6, %v8989_v45  ;;  %v2104_v23 = vadd.f32 %v2037_v53, %v10651_v50  ;;  %v9039_v39 = vpop.f32.mrf.mxu2  ;;  %v10658_v53 = vld [vmem:[#allocation59_spill] sm:$0xff] }
 0x37b   :  { %2723 = vmatmul.bf16.gmra.mxu0 %v8821_v35  ;;  %v2173_v6 = vadd.f32 %v8641_v51, %v2103_v32  ;;  %v1711_v0 = vadd.f32 %v10658_v53, %v10657_v38  ;;  %3277 = vmatpush.bf16.msrb.mxu2 %v6220_v47  ;;  %v2523_v47 = vadd.f32 %v9005_v20, %v9002_v21  ;;  %v7007_v21 = vld [vmem:[%s10434_s4 + $0xb4] sm:$0xf]  ;;  %v6203_v20 = vld [vmem:[%s10434_s4 + $0xb0] sm:$0xf] }
 0x37c   :  { %6127 = vmatmul.msk.bf16.gmra.mxu1 %vm2361_vm6, %v8802_v63  ;;  %v2174_v19 = vadd.f32 %v8644_v60, %v2104_v23 }
 0x37d   :  { %v2237_v15 = vmax.f32 %v2173_v6, 0.0 }
 0x37e   :  { %v2238_v4 = vmax.f32 %v2174_v19, 0.0 }
 0x380   :  { %v1950_v17 = vpop.f32.mrf.mxu0 }
 0x381   :  { %v2105_v54 = vadd.f32 %v1950_v17, %v1706_v58  ;;  %v2039_v35 = vpop.f32.mrf.mxu1 }
 0x382   :  { %v2106_v7 = vadd.f32 %v2039_v35, %v1707_v40  ;;  %v9049_v58 = vpop.f32.mrf.mxu2  ;;  %v2515_v35 = vadd.f32 %v8941_v30, %v8939_v46  ;;  %v2518_v46 = vadd.f32 %v8956_v3, %v8952_v49 }
 0x383   :  { %v2175_v57 = vadd.f32 %v8641_v51, %v2105_v54  ;;  %v10656_v51 = vld [vmem:[#allocation31_spill] sm:$0xff] }
 0x384   :  { %v2176_v63 = vadd.f32 %v8644_v60, %v2106_v7 }
 0x385   :  { %v2239_v33 = vmax.f32 %v2175_v57, 0.0 }
 0x386   :  { %v2240_v62 = vmax.f32 %v2176_v63, 0.0 }
 0x387   :  { %v9022_v24 = vpack.c.bf16 %v2239_v33, %v2237_v15 }
 0x388   :  { %v9024_v37 = vpack.c.bf16 %v2240_v62, %v2238_v4  ;;  %v2689_v27 = vpop.f32.mrf.mxu0  ;;  %v6211_v4 = vld [vmem:[%s10434_s4 + $0xc0] sm:$0xf]  ;;  %v7010_v62 = vld [vmem:[%s10434_s4 + $0xc4] sm:$0xf0] }
 0x389   :  { %v2042_v10 = vpop.f32.mrf.mxu1  ;;  %2492 = vmatmul.bf16.gmra.mxu2 %v9022_v24 }
 0x38a   :  { %6058 = vmatmul.msk.bf16.gmra.mxu3 %vm2361_vm6, %v9024_v37  ;;  %v2108_v44 = vadd.f32 %v2042_v10, %v10656_v51 }
 0x38b   :  { %2728 = vmatmul.bf16.gmra.mxu0 %v8842_v55  ;;  %v9043_v55 = vpop.f32.mrf.mxu3 }
 0x38c   :  { %6128 = vmatmul.msk.bf16.gmra.mxu1 %vm2361_vm6, %v8823_v16  ;;  %v2178_v36 = vadd.f32 %v8644_v60, %v2108_v44 }
 0x38e   :  { %v2242_v50 = vmax.f32 %v2178_v36, 0.0 }
 0x390   :  { %v2691_v12 = vpop.f32.mrf.mxu0 }
 0x391   :  { %v2044_v16 = vpop.f32.mrf.mxu1 }
 0x392   :  { %v2110_v59 = vadd.f32 %v2044_v16, %v1711_v0 }
 0x393   :  { %v9054_v40 = vpop.f32.mrf.mxu3 }
 0x394   :  { %v2180_v32 = vadd.f32 %v8644_v60, %v2110_v59 }
 0x396   :  { %v2244_v23 = vmax.f32 %v2180_v32, 0.0 }
 0x398   :  { %v9047_v22 = vpack.c.bf16 %v2244_v23, %v2242_v50  ;;  %v2694_v18 = vpop.f32.mrf.mxu0 }
 0x399   :  { %v2778_v29 = vpop.f32.mrf.mxu1  ;;  %2497 = vmatmul.bf16.gmra.mxu2 %v8675_v9 }
 0x39a   :  { %v2779_v17 = vadd.f32 %v2778_v29, %v2689_v27  ;;  %6059 = vmatmul.msk.bf16.gmra.mxu3 %vm2361_vm6, %v9047_v22  ;;  %v6212_v27 = vor.u32 %v7010_v62, %v6211_v4 }
 0x39b   :  { %2733 = vmatmul.bf16.gmra.mxu0 %v8863_v11  ;;  %v6216_v11 = vor.u32 %v7009_v52, %v6213_v5  ;;  %v9071_v63 = vpop.f32.mrf.mxu3 }
 0x39c   :  { %v2858_v60 = vmax.f32 %v2513_v26, %v2779_v17  ;;  %6129 = vmatmul.msk.bf16.gmra.mxu1 %vm2361_vm6, %v8844_v34  ;;  %v9069_v34 = vpop.f32.mrf.mxu2  ;;  %3278 = vmatpush.bf16.msrb.mxu2 %v6212_v27  ;;  %v2525_v17 = vadd.f32 %v9020_v31, %v9018_v28  ;;  %v6197_v28 = vld [vmem:[%s10434_s4 + $0xa8] sm:$0xf0]  ;;  %v2528_v27 = vadd.f32 %v9043_v55, %v9039_v39  ;;  %v7001_v55 = vld [vmem:[%s10434_s4 + $0x84] sm:$0xf] }
 0x39d   :  { %3327 = vmatpush.bf16.msra.mxu3 %v6216_v11 }
 0x39e   :  { %2890 = vst [vmem:[#allocation2] sm:$0xff] %v2858_v60 }
 0x3a0   :  { %v2696_v6 = vpop.f32.mrf.mxu0 }
 0x3a1   :  { %v2780_v54 = vpop.f32.mrf.mxu1 }
 0x3a2   :  { %v2781_v19 = vadd.f32 %v2780_v54, %v2691_v12  ;;  %v7006_v54 = vld [vmem:[%s10434_s4 + $0xa4] sm:$0xf0] }
 0x3a4   :  { %v2859_v7 = vmax.f32 %v2515_v35, %v2781_v19  ;;  %v9086_v49 = vpop.f32.mrf.mxu2  ;;  %v7005_v35 = vld [vmem:[%s10434_s4 + $0xa4] sm:$0xf] }
 0x3a5   :  { %v6200_v31 = vor.u32 %v7005_v35, %v6197_v28 }
 0x3a6   :  { %2891 = vst [vmem:[#allocation2 + $0x8] sm:$0xff] %v2859_v7  ;;  %v6187_v7 = vld [vmem:[%s10434_s4 + $0x90] sm:$0xf] }
 0x3a8   :  { %v2699_v57 = vpop.f32.mrf.mxu0 }
 0x3a9   :  { %v2783_v15 = vpop.f32.mrf.mxu1 }
 0x3aa   :  { %v2784_v30 = vadd.f32 %v2783_v15, %v2694_v18  ;;  %v7008_v18 = vld [vmem:[%s10434_s4 + $0xb4] sm:$0xf0]  ;;  %v7003_v15 = vld [vmem:[%s10434_s4 + $0x94] sm:$0xf] }
 0x3ab   :  { %2738 = vmatmul.bf16.gmra.mxu0 %v8890_v8  ;;  %v2520_v8 = vadd.f32 %v8982_v25, %v8979_v41  ;;  %v6204_v26 = vor.u32 %v7008_v18, %v6203_v20  ;;  %v7028_v18 = vld [vmem:[%s10434_s4 + $0x154] sm:$0xf0] }
 0x3ac   :  { %v2860_v33 = vmax.f32 %v2518_v46, %v2784_v30  ;;  %6130 = vmatmul.msk.bf16.gmra.mxu1 %vm2361_vm6, %v8865_v56  ;;  %v9088_v56 = vpop.f32.mrf.mxu3  ;;  %v9093_v12 = vpop.f32.mrf.mxu2 }
 0x3ad   :  { %v2923_v53 = vld [vmem:[#allocation2] ss:$2 sm:$0xff]  ;;  %v2955_v0 = vld [vmem:[#allocation2 + $0x1] ss:$2 sm:$0xff]  ;;  %3279 = vmatpush.bf16.msrb.mxu2 %v6204_v26 }
 0x3ae   :  { %2892 = vst [vmem:[#allocation2 + $0x10] sm:$0xff] %v2860_v33  ;;  %v2986_v59 = vmax.f32 %v2923_v53, %v2955_v0  ;;  %v6189_v33 = vld [vmem:[%s10434_s4 + $0x98] sm:$0xf0]  ;;  %v6371_v0 = vld [vmem:[%s10434_s4 + $0x160] sm:$0xf] }
 0x3af   :  { %v6192_v62 = vor.u32 %v7003_v15, %v6189_v33 }
 0x3b0   :  { %v2701_v10 = vpop.f32.mrf.mxu0 }
 0x3b1   :  { %v2785_v51 = vpop.f32.mrf.mxu1 }
 0x3b2   :  { %v2786_v3 = vadd.f32 %v2785_v51, %v2696_v6  ;;  %v6195_v6 = vld [vmem:[%s10434_s4 + $0xa0] sm:$0xf]  ;;  %v6379_v51 = vld [vmem:[%s10434_s4 + $0x170] sm:$0xf] }
 0x3b3   :  { %v6196_v52 = vor.u32 %v7006_v54, %v6195_v6  ;;  %v2533_v6 = vadd.f32 %v9071_v63, %v9069_v34 }
 0x3b4   :  { %v2861_v44 = vmax.f32 %v2520_v8, %v2786_v3  ;;  %v9097_v25 = vpop.f32.mrf.mxu3  ;;  %v9128_v5 = vpop.f32.mrf.mxu2  ;;  %v7032_v8 = vld [vmem:[%s10434_s4 + $0x174] sm:$0xf0]  ;;  %v6179_v3 = vld [vmem:[%s10434_s4 + $0x80] sm:$0xf] }
 0x3b5   :  { %3280 = vmatpush.bf16.msrb.mxu2 %v6196_v52  ;;  %v6380_v39 = vor.u32 %v7032_v8, %v6379_v51  ;;  %v6373_v8 = vld [vmem:[%s10434_s4 + $0x168] sm:$0xf0] }
 0x3b6   :  { %2893 = vst [vmem:[#allocation2 + $0x18] sm:$0xff] %v2861_v44 }
 0x3b7   :  { %3686 = vmatpush.bf16.msra.mxu0 %v6380_v39 }
 0x3b8   :  { %v2704_v61 = vpop.f32.mrf.mxu0 }
 0x3b9   :  { %v2788_v14 = vpop.f32.mrf.mxu1 }
 0x3ba   :  { %v2789_v38 = vadd.f32 %v2788_v14, %v2699_v57  ;;  %v7004_v57 = vld [vmem:[%s10434_s4 + $0x94] sm:$0xf0] }
 0x3bb   :  { %2743 = vmatmul.bf16.gmra.mxu0 %v8921_v13  ;;  %v6205_v13 = vld [vmem:[%s10434_s4 + $0xb8] sm:$0xf0]  ;;  %v6188_v30 = vor.u32 %v7004_v57, %v6187_v7  ;;  %v6347_v7 = vld [vmem:[%s10434_s4 + $0x130] sm:$0xf]  ;;  %v7024_v57 = vld [vmem:[%s10434_s4 + $0x134] sm:$0xf0] }
 0x3bc   :  { %v2862_v41 = vmax.f32 %v2523_v47, %v2789_v38  ;;  %6131 = vmatmul.msk.bf16.gmra.mxu1 %vm2361_vm6, %v8892_v2  ;;  %v6208_v23 = vor.u32 %v7007_v21, %v6205_v13  ;;  %v9130_v11 = vpop.f32.mrf.mxu3  ;;  %v6381_v38 = vld [vmem:[%s10434_s4 + $0x178] sm:$0xf0]  ;;  %v2530_v13 = vadd.f32 %v9054_v40, %v9049_v58  ;;  %v7026_v58 = vld [vmem:[%s10434_s4 + $0x144] sm:$0xf0]  ;;  %v6348_v63 = vor.u32 %v7024_v57, %v6347_v7 }
 0x3bd   :  { %v2925_v16 = vld [vmem:[#allocation2 + $0x10] ss:$2 sm:$0xff]  ;;  %v2957_v36 = vld [vmem:[#allocation2 + $0x11] ss:$2 sm:$0xff]  ;;  %3281 = vmatpush.bf16.msrb.mxu2 %v6188_v30 }
 0x3be   :  { %v2987_v32 = vmax.f32 %v2925_v16, %v2957_v36  ;;  %2894 = vst [vmem:[#allocation2 + $0x20] sm:$0xff] %v2862_v41  ;;  %3328 = vmatpush.bf16.msra.mxu3 %v6208_v23  ;;  %v7030_v41 = vld [vmem:[%s10434_s4 + $0x164] sm:$0xf0]  ;;  %v9179_v16 = vpop.f32.mrf.mxu2  ;;  %v6363_v23 = vld [vmem:[%s10434_s4 + $0x150] sm:$0xf] }
 0x3bf   :  { %v6364_v26 = vor.u32 %v7028_v18, %v6363_v23  ;;  %v6349_v7 = vld [vmem:[%s10434_s4 + $0x138] sm:$0xf0] }
 0x3c0   :  { %v9108_v2 = vpack.c.bf16 %v2987_v32, %v2986_v59  ;;  %v2706_v50 = vpop.f32.mrf.mxu0  ;;  %v6372_v59 = vor.u32 %v7030_v41, %v6371_v0 }
 0x3c1   :  { %v2790_v29 = vpop.f32.mrf.mxu1 }
 0x3c2   :  { %7149 = vst [vmem:[#allocation3] sm:$0xff] %v9108_v2   ;;  %v2791_v60 = vadd.f32 %v2790_v29, %v2701_v10  ;;  %3329 = vmatpush.bf16.msra.mxu3 %v6200_v31  ;;  %3687 = vmatpush.bf16.msra.mxu0 %v6372_v59  ;;  %v3127_v41 = vshll.u32 %v9108_v2, 16 }
 0x3c4   :  { %v2863_v19 = vmax.f32 %v2525_v17, %v2791_v60  ;;  %v9181_v32 = vpop.f32.mrf.mxu3  ;;  %v6355_v17 = vld [vmem:[%s10434_s4 + $0x140] sm:$0xf] }
 0x3c6   :  { %2895 = vst [vmem:[#allocation2 + $0x28] sm:$0xff] %v2863_v19  ;;  %3330 = vmatpush.bf16.msra.mxu3 %v6192_v62  ;;  %3688 = vmatpush.bf16.msra.mxu0 %v6364_v26  ;;  %v9201_v54 = vpop.f32.mrf.mxu2  ;;  %v7022_v62 = vld [vmem:[%s10434_s4 + $0x124] sm:$0xf0] }
 0x3c8   :  { %v2709_v46 = vpop.f32.mrf.mxu0 }
 0x3c9   :  { %v2793_v4 = vpop.f32.mrf.mxu1  ;;  %v3562_v52 = vld [vmem:[#allocation3] sm:$0xe] }
 0x3ca   :  { %v2794_v10 = vadd.f32 %v2793_v4, %v2704_v61  ;;  %v6181_v61 = vld [vmem:[%s10434_s4 + $0x88] sm:$0xf0]  ;;  %v6339_v4 = vld [vmem:[%s10434_s4 + $0x120] sm:$0xf] }
 0x3cb   :  { %2748 = vmatmul.bf16.gmra.mxu0 %v8954_v42  ;;  %v7002_v42 = vld [vmem:[%s10434_s4 + $0x84] sm:$0xf0]  ;;  %v6184_v47 = vor.u32 %v7001_v55, %v6181_v61  ;;  %v6340_v51 = vor.u32 %v7022_v62, %v6339_v4  ;;  %v6341_v4 = vld [vmem:[%s10434_s4 + $0x128] sm:$0xf0] }
 0x3cc   :  { %v2864_v44 = vmax.f32 %v2528_v27, %v2794_v10  ;;  %6132 = vmatmul.msk.bf16.gmra.mxu1 %vm2361_vm6, %v8923_v43  ;;  %v6180_v14 = vor.u32 %v7002_v42, %v6179_v3  ;;  %v7031_v43 = vld [vmem:[%s10434_s4 + $0x174] sm:$0xf]  ;;  %v9203_v28 = vpop.f32.mrf.mxu3  ;;  %v7188_v3 = vunpack.c.h.b16 %v9108_v2  ;;  %v2535_v42 = vadd.f32 %v9088_v56, %v9086_v49 }
 0x3cd   :  { %v6384_v53 = vor.u32 %v7031_v43, %v6381_v38  ;;  %3331 = vmatpush.bf16.msra.mxu3 %v6184_v47  ;;  %v2927_v35 = vld [vmem:[#allocation2 + $0x20] ss:$2 sm:$0xff]  ;;  %v2959_v31 = vld [vmem:[#allocation2 + $0x21] ss:$2 sm:$0xff]  ;;  %v7020_v47 = vld [vmem:[%s10434_s4 + $0x114] sm:$0xf0] }
 0x3ce   :  { %2896 = vst [vmem:[#allocation2 + $0x30] sm:$0xff] %v2864_v44  ;;  %3282 = vmatpush.bf16.msrb.mxu2 %v6180_v14  ;;  %v2988_v30 = vmax.f32 %v2927_v35, %v2959_v31  ;;  %v6331_v14 = vld [vmem:[%s10434_s4 + $0x110] sm:$0xf]  ;;  %v7027_v49 = vld [vmem:[%s10434_s4 + $0x154] sm:$0xf]  ;;  %v9244_v56 = vpop.f32.mrf.mxu2 }
 0x3cf   :  { %3735 = vmatpush.bf16.msra.mxu1 %v6384_v53  ;;  %v6332_v38 = vor.u32 %v7020_v47, %v6331_v14  ;;  %v6365_v53 = vld [vmem:[%s10434_s4 + $0x158] sm:$0xf0]  ;;  %v7023_v31 = vld [vmem:[%s10434_s4 + $0x134] sm:$0xf] }
 0x3d0   :  { %v2711_v36 = vpop.f32.mrf.mxu0  ;;  %v6333_v14 = vld [vmem:[%s10434_s4 + $0x118] sm:$0xf0] }
 0x3d1   :  { %v2795_v21 = vpop.f32.mrf.mxu1 }
 0x3d2   :  { %v2796_v20 = vadd.f32 %v2795_v21, %v2706_v50  ;;  %v6356_v50 = vor.u32 %v7026_v58, %v6355_v17  ;;  %v6323_v21 = vld [vmem:[%s10434_s4 + $0x100] sm:$0xf] }
 0x3d4   :  { %v2865_v29 = vmax.f32 %v2530_v13, %v2796_v20  ;;  %3689 = vmatpush.bf16.msra.mxu0 %v6356_v50  ;;  %v9249_v0 = vpop.f32.mrf.mxu3  ;;  %v7018_v13 = vld [vmem:[%s10434_s4 + $0x104] sm:$0xf0]  ;;  %v7025_v20 = vld [vmem:[%s10434_s4 + $0x144] sm:$0xf]  ;;  %v3129_v50 = vrot.slane %v3127_v41, 1 }
 0x3d5   :  { %v6324_v18 = vor.u32 %v7018_v13, %v6323_v21 }
 0x3d6   :  { %2897 = vst [vmem:[#allocation2 + $0x38] sm:$0xff] %v2865_v29  ;;  %v6357_v29 = vld [vmem:[%s10434_s4 + $0x148] sm:$0xf0] }
 0x3d8   :  { %v9197_v40 = vpop.f32.mrf.mxu0  ;;  %3690 = vmatpush.bf16.msra.mxu0 %v6348_v63 }
 0x3d9   :  { %v2798_v60 = vpop.f32.mrf.mxu1 }
 0x3da   :  { %v2799_v19 = vadd.f32 %v2798_v60, %v2709_v46  ;;  %v6360_v60 = vor.u32 %v7025_v20, %v6357_v29 }
 0x3db   :  { %2753 = vmatmul.bf16.gmra.mxu0 %v8987_v48  ;;  %v3581_v48 = vunpack.c.l.b16 %v3562_v52 }
 0x3dc   :  { %v2866_v34 = vmax.f32 %v2533_v6, %v2799_v19  ;;  %6133 = vmatmul.msk.bf16.gmra.mxu1 %vm2361_vm6, %v8958_v1  ;;  %v7029_v1 = vld [vmem:[%s10434_s4 + $0x164] sm:$0xf]  ;;  %3691 = vmatpush.bf16.msra.mxu0 %v6340_v51  ;;  %v2538_v6 = vadd.f32 %v9097_v25, %v9093_v12  ;;  %v3125_v19 = vshrl.u32 %v9108_v2, 16  ;;  %v6352_v25 = vor.u32 %v7023_v31, %v6349_v7  ;;  %v7043_v2 = vld [vmem:[%s10434_s4 + $0x1d4] sm:$0xf] }
 0x3dd   :  { %v2929_v15 = vld [vmem:[#allocation2 + $0x30] ss:$2 sm:$0xff]  ;;  %v2961_v46 = vld [vmem:[#allocation2 + $0x31] ss:$2 sm:$0xff]  ;;  %v6376_v39 = vor.u32 %v7029_v1, %v6373_v8  ;;  %v9233_v61 = vpack.c.b16 %v7188_v3, %v3581_v48 }
 0x3de   :  { %v2989_v33 = vmax.f32 %v2929_v15, %v2961_v46  ;;  %2898 = vst [vmem:[#allocation2 + $0x40] sm:$0xff] %v2866_v34  ;;  %v3130_v34 = vor.u32 %v3129_v50, %v3125_v19  ;;  %v9285_v46 = vpop.f32.mrf.mxu2 }
 0x3df   :  { %3736 = vmatpush.bf16.msra.mxu1 %v6376_v39  ;;  %v3838_v59 = vshrl.u32 %v9233_v61, 16  ;;  %v3841_v26 = vshll.u32 %v9233_v61, 16 }
 0x3e0   :  { %v7153_v27 = vpack.c.bf16 %v2989_v33, %v2988_v30  ;;  %v9223_v10 = vpop.f32.mrf.mxu0  ;;  %3692 = vmatpush.bf16.msra.mxu0 %v6332_v38  ;;  %v9289_v33 = vpop.f32.mrf.mxu3 }
 0x3e1   :  { %v2800_v44 = vpop.f32.mrf.mxu1  ;;  %v3840_v57 = vrot.slane %v3838_v59, 1 }
 0x3e2   :  { %7189 = vst [vmem:[#allocation3 + $0x8] sm:$0xff] %v7153_v27   ;;  %v2801_v55 = vadd.f32 %v2800_v44, %v2711_v36  ;;  %v6368_v36 = vor.u32 %v7027_v49, %v6365_v53  ;;  %v2540_v44 = vadd.f32 %v9130_v11, %v9128_v5  ;;  %v7017_v5 = vld [vmem:[%s10434_s4 + $0x104] sm:$0xf]  ;;  %v6325_v11 = vld [vmem:[%s10434_s4 + $0x108] sm:$0xf0] }
 0x3e3   :  { %v6328_v38 = vor.u32 %v7017_v5, %v6325_v11 }
 0x3e4   :  { %v2867_v43 = vmax.f32 %v2535_v42, %v2801_v55  ;;  %3737 = vmatpush.bf16.msra.mxu1 %v6368_v36  ;;  %3693 = vmatpush.bf16.msra.mxu0 %v6324_v18  ;;  %v7019_v55 = vld [vmem:[%s10434_s4 + $0x114] sm:$0xf]  ;;  %v2543_v36 = vadd.f32 %v9181_v32, %v9179_v16  ;;  %v2545_v16 = vadd.f32 %v9203_v28, %v9201_v54 }
 0x3e5   :  { %v6336_v49 = vor.u32 %v7019_v55, %v6333_v14 }
 0x3e6   :  { %2899 = vst [vmem:[#allocation2 + $0x48] sm:$0xff] %v2867_v43 }
 0x3e8   :  { %v2719_v23 = vpop.f32.mrf.mxu0  ;;  %3738 = vmatpush.bf16.msra.mxu1 %v6360_v60  ;;  %v2552_v53 = vpop.f32.mrf.mxu3 }
 0x3e9   :  { %v2803_v17 = vpop.f32.mrf.mxu1  ;;  %v9266_v58 = vld [vmem:[#allocation3 + $0x8] sm:$0xff] }
 0x3ea   :  { %v2804_v35 = vadd.f32 %v2803_v17, %v9197_v40  ;;  %v3132_v52 = vshll.u32 %v9266_v58, 16  ;;  %v3136_v40 = vshrl.u32 %v9266_v58, 16  ;;  %v3584_v19 = vrot.slane %v9266_v58, 1 }
 0x3eb   :  { %2758 = vmatmul.bf16.gmra.mxu0 %v9022_v24  ;;  %v3843_v24 = vrot.slane %v3841_v26, 2 }
 0x3ec   :  { %v2868_v12 = vmax.f32 %v2538_v6, %v2804_v35  ;;  %6134 = vmatmul.msk.bf16.gmra.mxu1 %vm2361_vm6, %v8989_v45  ;;  %v9283_v63 = vrot.slane %v3132_v52, 1  ;;  %v3846_v15 = vrot.slane %v3132_v52, 2  ;;  %v3845_v30 = vrot.slane %v3136_v40, 1  ;;  %v7021_v45 = vld [vmem:[%s10434_s4 + $0x124] sm:$0xf] }
 0x3ed   :  { %3739 = vmatpush.bf16.msra.mxu1 %v6352_v25  ;;  %v6344_v1 = vor.u32 %v7021_v45, %v6341_v4  ;;  %v3844_v27 = vor.u32 %v3843_v24, %v3840_v57  ;;  %v2931_v21 = vld [vmem:[#allocation2 + $0x40] ss:$2 sm:$0xff]  ;;  %v2963_v13 = vld [vmem:[#allocation2 + $0x41] ss:$2 sm:$0xff]  ;;  %v3583_v52 = vrot.slane %v9233_v61, 1  ;;  %v2548_v57 = vadd.f32 %v9249_v0, %v9244_v56 }
 0x3ee   :  { %2900 = vst [vmem:[#allocation2 + $0x50] sm:$0xff] %v2868_v12  ;;  %v3135_v48 = vsel %vm183_vm0, %v3130_v34, %v9283_v63  ;;  %v9299_v51 = vor.u32 %v3846_v15, %v3845_v30  ;;  %v2990_v26 = vmax.f32 %v2931_v21, %v2963_v13  ;;  %v3138_v15 = vor.u32 %v3136_v40, %v9283_v63 }
 0x3ef   :  { %3283 = vmatmul.bf16.vlgmr.msrb.gmra.mxu2 %v3135_v48  ;;  %3332 = vmatmul.bf16.vlgmr.msra.gmra.mxu3 %v3135_v48  ;;  %v3585_v54 = vsel %vm889_vm2, %v3583_v52, %v3584_v19 }
 0x3f0   :  { %v2721_v62 = vpop.f32.mrf.mxu0  ;;  %v9306_v42 = vsel %vm1288_vm3, %v3844_v27, %v9299_v51 }
 0x3f1   :  { %v2805_v8 = vpop.f32.mrf.mxu1  ;;  %3740 = vmatpush.bf16.msra.mxu1 %v6344_v1 }
 0x3f2   :  { %v2806_v39 = vadd.f32 %v2805_v8, %v9223_v10  ;;  %v9320_v10 = vpop.f32.mrf.mxu2 }
 0x3f3   :  { %v2553_v55 = vadd.f32 %v2552_v53, %v9320_v10 }
 0x3f4   :  { %v2869_v47 = vmax.f32 %v2540_v44, %v2806_v39 }
 0x3f5   :  { %3741 = vmatpush.bf16.msra.mxu1 %v6336_v49 }
 0x3f6   :  { %2901 = vst [vmem:[#allocation2 + $0x58] sm:$0xff] %v2869_v47 }
 0x3f8   :  { %v2724_v43 = vpop.f32.mrf.mxu0 }
 0x3f9   :  { %v2808_v41 = vpop.f32.mrf.mxu1  ;;  %3742 = vmatpush.bf16.msra.mxu1 %v6328_v38 }
 0x3fa   :  { %v2809_v59 = vadd.f32 %v2808_v41, %v2719_v23  ;;  %v2465_v32 = vpop.f32.mrf.mxu2 }
 0x3fb   :  { %2763 = vmatmul.bf16.gmra.mxu0 %v8675_v9  ;;  %v2554_v9 = vpop.f32.mrf.mxu3 }
 0x3fc   :  { %v2870_v20 = vmax.f32 %v2543_v36, %v2809_v59  ;;  %6135 = vmatmul.msk.bf16.gmra.mxu1 %vm2361_vm6, %v9024_v37  ;;  %v2555_v13 = vadd.f32 %v2554_v9, %v2465_v32 }
 0x3fd   :  { %v2933_v18 = vld [vmem:[#allocation2 + $0x50] ss:$2 sm:$0xff]  ;;  %v2965_v29 = vld [vmem:[#allocation2 + $0x51] ss:$2 sm:$0xff] }
 0x3fe   :  { %v2991_v17 = vmax.f32 %v2933_v18, %v2965_v29  ;;  %2902 = vst [vmem:[#allocation2 + $0x60] sm:$0xff] %v2870_v20 }
 0x400   :  { %v7158_v50 = vpack.c.bf16 %v2991_v17, %v2990_v26  ;;  %v2726_v60 = vpop.f32.mrf.mxu0 }
 0x401   :  { %v2810_v6 = vpop.f32.mrf.mxu1 }
 0x402   :  { %7190 = vst [vmem:[#allocation3 + $0x10] sm:$0xff] %v7158_v50   ;;  %v2811_v23 = vadd.f32 %v2810_v6, %v2721_v62  ;;  %v2468_v24 = vpop.f32.mrf.mxu2 }
 0x403   :  { %v2557_v61 = vpop.f32.mrf.mxu3 }
 0x404   :  { %v2871_v35 = vmax.f32 %v2545_v16, %v2811_v23  ;;  %v2558_v26 = vadd.f32 %v2557_v61, %v2468_v24 }
 0x406   :  { %2903 = vst [vmem:[#allocation2 + $0x68] sm:$0xff] %v2871_v35 }
 0x408   :  { %v2729_v37 = vpop.f32.mrf.mxu0 }
 0x409   :  { %v2813_v31 = vpop.f32.mrf.mxu1  ;;  %v9331_v7 = vld [vmem:[#allocation3 + $0x10] sm:$0xff] }
 0x40a   :  { %v2814_v12 = vadd.f32 %v2813_v31, %v2724_v43  ;;  %v3140_v28 = vshll.u32 %v9331_v7, 16  ;;  %v3144_v25 = vshrl.u32 %v9331_v7, 16  ;;  %v2470_v63 = vpop.f32.mrf.mxu2  ;;  %v3586_v27 = vrot.slane %v9331_v7, 1 }
 0x40b   :  { %3694 = vmatmul.bf16.vlgmr.msra.gmra.mxu0 %v3585_v54  ;;  %v2559_v8 = vpop.f32.mrf.mxu3 }
 0x40c   :  { %v2872_v34 = vmax.f32 %v2548_v57, %v2814_v12  ;;  %6136 = vmatmul.msk.bf16.gmra.mxu1 %vm2361_vm6, %v9047_v22  ;;  %v3142_v30 = vrot.slane %v3140_v28, 1  ;;  %v3849_v56 = vrot.slane %v3144_v25, 1  ;;  %v3850_v0 = vrot.slane %v3140_v28, 2 }
 0x40d   :  { %v2550_v22 = vadd.f32 %v9289_v33, %v9285_v46  ;;  %v3587_v47 = vsel %vm889_vm2, %v3584_v19, %v3586_v27  ;;  %v2935_v46 = vld [vmem:[#allocation2 + $0x60] ss:$2 sm:$0xff]  ;;  %v2967_v33 = vld [vmem:[#allocation2 + $0x61] ss:$2 sm:$0xff]  ;;  %v2560_v28 = vadd.f32 %v2559_v8, %v2470_v63 }
 0x40e   :  { %2904 = vst [vmem:[#allocation2 + $0x70] sm:$0xff] %v2872_v34  ;;  %v3143_v48 = vsel %vm183_vm0, %v3138_v15, %v3142_v30  ;;  %v9346_v4 = vor.u32 %v3850_v0, %v3849_v56  ;;  %v2992_v11 = vmax.f32 %v2935_v46, %v2967_v33  ;;  %v3146_v9 = vor.u32 %v3144_v25, %v3142_v30  ;;  %v6999_v46 = vld [vmem:[%s10434_s4 + $0x74] sm:$0xf]  ;;  %v6301_v33 = vld [vmem:[%s10434_s4 + $0x78] sm:$0xf0] }
 0x40f   :  { %3288 = vmatmul.bf16.gmra.mxu2 %v3143_v48  ;;  %3337 = vmatmul.bf16.gmra.mxu3 %v3143_v48 }
 0x410   :  { %v2731_v45 = vpop.f32.mrf.mxu0  ;;  %v9353_v58 = vsel %vm1288_vm3, %v9299_v51, %v9346_v4 }
 0x411   :  { %v2815_v62 = vpop.f32.mrf.mxu1 }
 0x412   :  { %v2816_v1 = vadd.f32 %v2815_v62, %v2726_v60  ;;  %v2473_v38 = vpop.f32.mrf.mxu2 }
 0x413   :  { %v2562_v59 = vpop.f32.mrf.mxu3 }
 0x414   :  { %v2873_v40 = vmax.f32 %v2550_v22, %v2816_v1  ;;  %v2563_v0 = vadd.f32 %v2562_v59, %v2473_v38 }
 0x416   :  { %2905 = vst [vmem:[#allocation2 + $0x78] sm:$0xff] %v2873_v40 }
 0x418   :  { %v2734_v44 = vpop.f32.mrf.mxu0 }
 0x419   :  { %v2818_v39 = vpop.f32.mrf.mxu1 }
 0x41a   :  { %v2819_v14 = vadd.f32 %v2818_v39, %v2729_v37  ;;  %v2475_v17 = vpop.f32.mrf.mxu2 }
 0x41b   :  { %3699 = vmatmul.bf16.gmra.mxu0 %v3587_v47  ;;  %v2564_v60 = vpop.f32.mrf.mxu3 }
 0x41c   :  { %v2874_v49 = vmax.f32 %v2553_v55, %v2819_v14  ;;  %3743 = vmatmul.bf16.vlgmr.msra.gmra.mxu1 %v3585_v54  ;;  %v2565_v14 = vadd.f32 %v2564_v60, %v2475_v17  ;;  %v7000_v60 = vld [vmem:[%s10434_s4 + $0x74] sm:$0xf0] }
 0x41d   :  { %v2937_v51 = vld [vmem:[#allocation2 + $0x70] ss:$2 sm:$0xff]  ;;  %v2969_v5 = vld [vmem:[#allocation2 + $0x71] ss:$2 sm:$0xff] }
 0x41e   :  { %v2993_v43 = vmax.f32 %v2937_v51, %v2969_v5  ;;  %2906 = vst [vmem:[#allocation2 + $0x80] sm:$0xff] %v2874_v49  ;;  %v6304_v49 = vor.u32 %v6999_v46, %v6301_v33  ;;  %v6285_v46 = vld [vmem:[%s10434_s4 + $0x58] sm:$0xf0] }
 0x420   :  { %v7163_v41 = vpack.c.bf16 %v2993_v43, %v2992_v11  ;;  %v2736_v36 = vpop.f32.mrf.mxu0  ;;  %3513 = vmatpush.bf16.msrb.mxu3 %v6304_v49 }
 0x421   :  { %v2820_v21 = vpop.f32.mrf.mxu1 }
 0x422   :  { %7191 = vst [vmem:[#allocation3 + $0x18] sm:$0xff] %v7163_v41   ;;  %v2821_v10 = vadd.f32 %v2820_v21, %v2731_v45  ;;  %v2478_v34 = vpop.f32.mrf.mxu2 }
 0x423   :  { %v2567_v15 = vpop.f32.mrf.mxu3 }
 0x424   :  { %v2875_v53 = vmax.f32 %v2555_v13, %v2821_v10  ;;  %v2568_v41 = vadd.f32 %v2567_v15, %v2478_v34 }
 0x426   :  { %2907 = vst [vmem:[#allocation2 + $0x88] sm:$0xff] %v2875_v53 }
 0x428   :  { %v2739_v20 = vpop.f32.mrf.mxu0 }
 0x429   :  { %v2823_v18 = vpop.f32.mrf.mxu1  ;;  %v9358_v29 = vld [vmem:[#allocation3 + $0x18] sm:$0xff] }
 0x42a   :  { %v2824_v50 = vadd.f32 %v2823_v18, %v2734_v44  ;;  %v3588_v6 = vrot.slane %v9358_v29, 1  ;;  %v3148_v16 = vshll.u32 %v9358_v29, 16  ;;  %v3152_v23 = vshrl.u32 %v9358_v29, 16  ;;  %v2480_v63 = vpop.f32.mrf.mxu2 }
 0x42c   :  { %v2876_v35 = vmax.f32 %v2558_v26, %v2824_v50  ;;  %3748 = vmatmul.bf16.gmra.mxu1 %v3587_v47  ;;  %v3589_v32 = vsel %vm889_vm2, %v3586_v27, %v3588_v6  ;;  %v3150_v19 = vrot.slane %v3148_v16, 1  ;;  %v3853_v37 = vrot.slane %v3152_v23, 1  ;;  %v6299_v50 = vld [vmem:[%s10434_s4 + $0x70] sm:$0xf] }
 0x42d   :  { %3704 = vmatmul.bf16.gmra.mxu0 %v3589_v32  ;;  %v3854_v52 = vrot.slane %v3148_v16, 2  ;;  %v2939_v45 = vld [vmem:[#allocation2 + $0x80] ss:$2 sm:$0xff]  ;;  %v2971_v62 = vld [vmem:[#allocation2 + $0x81] ss:$2 sm:$0xff] }
 0x42e   :  { %2908 = vst [vmem:[#allocation2 + $0x90] sm:$0xff] %v2876_v35  ;;  %v3151_v31 = vsel %vm183_vm0, %v3146_v9, %v3150_v19  ;;  %v2994_v27 = vmax.f32 %v2939_v45, %v2971_v62  ;;  %v3154_v18 = vor.u32 %v3152_v23, %v3150_v19  ;;  %v6300_v23 = vor.u32 %v7000_v60, %v6299_v50  ;;  %v6997_v35 = vld [vmem:[%s10434_s4 + $0x64] sm:$0xf] }
 0x42f   :  { %3293 = vmatmul.bf16.gmra.mxu2 %v3151_v31  ;;  %3342 = vmatmul.bf16.gmra.mxu3 %v3151_v31  ;;  %v9371_v12 = vor.u32 %v3854_v52, %v3853_v37 }
 0x430   :  { %v2741_v57 = vpop.f32.mrf.mxu0  ;;  %3464 = vmatpush.bf16.msra.mxu2 %v6300_v23 }
 0x431   :  { %v2825_v54 = vpop.f32.mrf.mxu1  ;;  %v9376_v25 = vsel %vm1288_vm3, %v9346_v4, %v9371_v12  ;;  %v2569_v4 = vpop.f32.mrf.mxu3 }
 0x432   :  { %v2826_v24 = vadd.f32 %v2825_v54, %v2736_v36  ;;  %v2483_v5 = vpop.f32.mrf.mxu2  ;;  %v2570_v52 = vadd.f32 %v2569_v4, %v2480_v63 }
 0x434   :  { %v2877_v61 = vmax.f32 %v2560_v28, %v2826_v24 }
 0x436   :  { %2909 = vst [vmem:[#allocation2 + $0x98] sm:$0xff] %v2877_v61 }
 0x438   :  { %v2744_v30 = vpop.f32.mrf.mxu0 }
 0x439   :  { %v2828_v56 = vpop.f32.mrf.mxu1  ;;  %v2572_v11 = vpop.f32.mrf.mxu3 }
 0x43a   :  { %v2829_v48 = vadd.f32 %v2828_v56, %v2739_v20  ;;  %v2485_v31 = vpop.f32.mrf.mxu2  ;;  %v2573_v15 = vadd.f32 %v2572_v11, %v2483_v5 }
 0x43c   :  { %v2878_v22 = vmax.f32 %v2563_v0, %v2829_v48  ;;  %3753 = vmatmul.bf16.gmra.mxu1 %v3589_v32  ;;  %v6293_v32 = vld [vmem:[%s10434_s4 + $0x68] sm:$0xf0] }
 0x43d   :  { %v2941_v1 = vld [vmem:[#allocation2 + $0x90] ss:$2 sm:$0xff]  ;;  %v2973_v40 = vld [vmem:[#allocation2 + $0x91] ss:$2 sm:$0xff]  ;;  %v6296_v9 = vor.u32 %v6997_v35, %v6293_v32  ;;  %v6993_v35 = vld [vmem:[%s10434_s4 + $0x44] sm:$0xf] }
 0x43e   :  { %v2995_v8 = vmax.f32 %v2941_v1, %v2973_v40  ;;  %2910 = vst [vmem:[#allocation2 + $0xa0] sm:$0xff] %v2878_v22  ;;  %v6277_v32 = vld [vmem:[%s10434_s4 + $0x48] sm:$0xf0] }
 0x43f   :  { %3514 = vmatpush.bf16.msrb.mxu3 %v6296_v9 }
 0x440   :  { %v7168_v44 = vpack.c.bf16 %v2995_v8, %v2994_v27  ;;  %v2746_v39 = vpop.f32.mrf.mxu0 }
 0x441   :  { %v2830_v55 = vpop.f32.mrf.mxu1  ;;  %v2574_v28 = vpop.f32.mrf.mxu3 }
 0x442   :  { %7192 = vst [vmem:[#allocation3 + $0x20] sm:$0xff] %v7168_v44   ;;  %v2831_v47 = vadd.f32 %v2830_v55, %v2741_v57  ;;  %v2488_v48 = vpop.f32.mrf.mxu2  ;;  %v2575_v4 = vadd.f32 %v2574_v28, %v2485_v31  ;;  %v6998_v55 = vld [vmem:[%s10434_s4 + $0x64] sm:$0xf0] }
 0x444   :  { %v2879_v51 = vmax.f32 %v2565_v14, %v2831_v47  ;;  %v6995_v47 = vld [vmem:[%s10434_s4 + $0x54] sm:$0xf] }
 0x445   :  { %v6288_v49 = vor.u32 %v6995_v47, %v6285_v46  ;;  %v6994_v47 = vld [vmem:[%s10434_s4 + $0x44] sm:$0xf0] }
 0x446   :  { %2911 = vst [vmem:[#allocation2 + $0xa8] sm:$0xff] %v2879_v51 }
 0x447   :  { %3515 = vmatpush.bf16.msrb.mxu3 %v6288_v49  ;;  %v6269_v49 = vld [vmem:[%s10434_s4 + $0x38] sm:$0xf0] }
 0x448   :  { %v2749_v59 = vpop.f32.mrf.mxu0 }
 0x449   :  { %v2833_v43 = vpop.f32.mrf.mxu1  ;;  %v9384_v38 = vld [vmem:[#allocation3 + $0x20] sm:$0xff]  ;;  %v2577_v62 = vpop.f32.mrf.mxu3 }
 0x44a   :  { %v2834_v36 = vadd.f32 %v2833_v43, %v2744_v30  ;;  %v3590_v21 = vrot.slane %v9384_v38, 1  ;;  %v3156_v13 = vshll.u32 %v9384_v38, 16  ;;  %v3160_v10 = vshrl.u32 %v9384_v38, 16  ;;  %v2490_v51 = vpop.f32.mrf.mxu2 }
 0x44c   :  { %v2880_v53 = vmax.f32 %v2568_v41, %v2834_v36  ;;  %v3591_v20 = vsel %vm889_vm2, %v3588_v6, %v3590_v21  ;;  %v9396_v26 = vrot.slane %v3156_v13, 1  ;;  %v3857_v17 = vrot.slane %v3160_v10, 1 }
 0x44d   :  { %3709 = vmatmul.bf16.gmra.mxu0 %v3591_v20  ;;  %3758 = vmatmul.bf16.gmra.mxu1 %v3591_v20  ;;  %v3858_v6 = vrot.slane %v3156_v13, 2  ;;  %v2943_v56 = vld [vmem:[#allocation2 + $0xa0] ss:$2 sm:$0xff]  ;;  %v2975_v0 = vld [vmem:[#allocation2 + $0xa1] ss:$2 sm:$0xff]  ;;  %v2578_v36 = vadd.f32 %v2577_v62, %v2488_v48 }
 0x44e   :  { %2912 = vst [vmem:[#allocation2 + $0xb0] sm:$0xff] %v2880_v53  ;;  %v3159_v16 = vsel %vm183_vm0, %v3154_v18, %v9396_v26  ;;  %v2996_v40 = vmax.f32 %v2943_v56, %v2975_v0  ;;  %v3162_v50 = vor.u32 %v3160_v10, %v9396_v26 }
 0x44f   :  { %3298 = vmatmul.bf16.gmra.mxu2 %v3159_v16  ;;  %3347 = vmatmul.bf16.gmra.mxu3 %v3159_v16  ;;  %v9414_v19 = vor.u32 %v3858_v6, %v3857_v17  ;;  %v6283_v16 = vld [vmem:[%s10434_s4 + $0x50] sm:$0xf] }
 0x450   :  { %v2751_v34 = vpop.f32.mrf.mxu0 }
 0x451   :  { %v2835_v37 = vpop.f32.mrf.mxu1  ;;  %v9419_v54 = vsel %vm1288_vm3, %v9371_v12, %v9414_v19  ;;  %v2579_v5 = vpop.f32.mrf.mxu3 }
 0x452   :  { %v2836_v57 = vadd.f32 %v2835_v37, %v2746_v39  ;;  %v6291_v39 = vld [vmem:[%s10434_s4 + $0x60] sm:$0xf]  ;;  %v2493_v9 = vpop.f32.mrf.mxu2  ;;  %v6280_v37 = vor.u32 %v6993_v35, %v6277_v32  ;;  %v2580_v28 = vadd.f32 %v2579_v5, %v2490_v51  ;;  %v6267_v51 = vld [vmem:[%s10434_s4 + $0x30] sm:$0xf] }
 0x453   :  { %v6292_v14 = vor.u32 %v6998_v55, %v6291_v39  ;;  %v6259_v32 = vld [vmem:[%s10434_s4 + $0x20] sm:$0xf] }
 0x454   :  { %v2881_v24 = vmax.f32 %v2570_v52, %v2836_v57  ;;  %3516 = vmatpush.bf16.msrb.mxu3 %v6280_v37 }
 0x455   :  { %3465 = vmatpush.bf16.msra.mxu2 %v6292_v14  ;;  %v6275_v14 = vld [vmem:[%s10434_s4 + $0x40] sm:$0xf] }
 0x456   :  { %2913 = vst [vmem:[#allocation2 + $0xb8] sm:$0xff] %v2881_v24  ;;  %v6276_v46 = vor.u32 %v6994_v47, %v6275_v14  ;;  %v7061_v14 = vld [vmem:[%s10434_s4 + $0x264] sm:$0xf] }
 0x458   :  { %v2754_v27 = vpop.f32.mrf.mxu0 }
 0x459   :  { %v2838_v61 = vpop.f32.mrf.mxu1  ;;  %v2582_v31 = vpop.f32.mrf.mxu3 }
 0x45a   :  { %v2839_v30 = vadd.f32 %v2838_v61, %v2749_v59  ;;  %v2583_v0 = vadd.f32 %v2582_v31, %v2493_v9  ;;  %v6990_v9 = vld [vmem:[%s10434_s4 + $0x24] sm:$0xf0] }
 0x45b   :  { %v6260_v31 = vor.u32 %v6990_v9, %v6259_v32 }
 0x45c   :  { %v2882_v45 = vmax.f32 %v2573_v15, %v2839_v30  ;;  %v7234_v30 = vmov 0.0  }
 0x45d   :  { %v2945_v22 = vld [vmem:[#allocation2 + $0xb0] ss:$2 sm:$0xff]  ;;  %v2977_v1 = vld [vmem:[#allocation2 + $0xb1] ss:$2 sm:$0xff]  ;;  %2922 = vst [vmem:[#allocation2 + $0xfc] sm:$0xf] %v7234_v30 }
 0x45e   :  { %v2997_v63 = vmax.f32 %v2945_v22, %v2977_v1  ;;  %2914 = vst [vmem:[#allocation2 + $0xc0] sm:$0xff] %v2882_v45  ;;  %v2495_v45 = vpop.f32.mrf.mxu2 }
 0x45f   :  { %4850 = vst [vmem:[#allocation4 + $0x7c] sm:$0xf] %v7234_v30 }
 0x460   :  { %v7173_v12 = vpack.c.bf16 %v2997_v63, %v2996_v40  ;;  %v2756_v11 = vpop.f32.mrf.mxu0 }
 0x461   :  { %v2840_v8 = vpop.f32.mrf.mxu1  ;;  %v2584_v62 = vpop.f32.mrf.mxu3 }
 0x462   :  { %7193 = vst [vmem:[#allocation3 + $0x28] sm:$0xff] %v7173_v12   ;;  %v2841_v44 = vadd.f32 %v2840_v8, %v2751_v34  ;;  %v2585_v39 = vadd.f32 %v2584_v62, %v2495_v45 }
 0x464   :  { %v2883_v33 = vmax.f32 %v2575_v4, %v2841_v44 }
 0x466   :  { %2915 = vst [vmem:[#allocation2 + $0xc8] sm:$0xff] %v2883_v33  ;;  %v6991_v33 = vld [vmem:[%s10434_s4 + $0x34] sm:$0xf] }
 0x468   :  { %v2759_v61 = vpop.f32.mrf.mxu0 }
 0x469   :  { %v2843_v43 = vpop.f32.mrf.mxu1  ;;  %v9433_v41 = vld [vmem:[#allocation3 + $0x28] sm:$0xff] }
 0x46a   :  { %v2844_v59 = vadd.f32 %v2843_v43, %v2754_v27  ;;  %v3592_v13 = vrot.slane %v9433_v41, 1  ;;  %v3164_v53 = vshll.u32 %v9433_v41, 16  ;;  %v3168_v20 = vshrl.u32 %v9433_v41, 16  ;;  %v6992_v43 = vld [vmem:[%s10434_s4 + $0x34] sm:$0xf0] }
 0x46c   :  { %v2884_v18 = vmax.f32 %v2578_v36, %v2844_v59  ;;  %v3593_v17 = vsel %vm889_vm2, %v3590_v21, %v3592_v13  ;;  %v9446_v60 = vrot.slane %v3164_v53, 1  ;;  %v3861_v6 = vrot.slane %v3168_v20, 1  ;;  %v6996_v21 = vld [vmem:[%s10434_s4 + $0x54] sm:$0xf0]  ;;  %v6989_v36 = vld [vmem:[%s10434_s4 + $0x24] sm:$0xf] }
 0x46d   :  { %3714 = vmatmul.bf16.gmra.mxu0 %v3593_v17  ;;  %3763 = vmatmul.bf16.gmra.mxu1 %v3593_v17  ;;  %v3862_v23 = vrot.slane %v3164_v53, 2  ;;  %v6284_v26 = vor.u32 %v6996_v21, %v6283_v16  ;;  %v2947_v22 = vld [vmem:[#allocation2 + $0xc0] ss:$2 sm:$0xff]  ;;  %v2979_v1 = vld [vmem:[#allocation2 + $0xc1] ss:$2 sm:$0xff]  ;;  %v2498_v53 = vpop.f32.mrf.mxu2  ;;  %v6268_v17 = vor.u32 %v6992_v43, %v6267_v51 }
 0x46e   :  { %2916 = vst [vmem:[#allocation2 + $0xd0] sm:$0xff] %v2884_v18  ;;  %v3167_v10 = vsel %vm183_vm0, %v3162_v50, %v9446_v60  ;;  %v2998_v8 = vmax.f32 %v2947_v22, %v2979_v1  ;;  %v6261_v59 = vld [vmem:[%s10434_s4 + $0x28] sm:$0xf0]  ;;  %v2587_v18 = vpop.f32.mrf.mxu3  ;;  %v7060_v51 = vld [vmem:[%s10434_s4 + $0x254] sm:$0xf0] }
 0x46f   :  { %3303 = vmatmul.bf16.gmra.mxu2 %v3167_v10  ;;  %3352 = vmatmul.bf16.gmra.mxu3 %v3167_v10  ;;  %v9464_v52 = vor.u32 %v3862_v23, %v3861_v6  ;;  %v6264_v50 = vor.u32 %v6989_v36, %v6261_v59  ;;  %v2588_v23 = vadd.f32 %v2587_v18, %v2498_v53  ;;  %v6525_v43 = vld [vmem:[%s10434_s4 + $0x258] sm:$0xf0]  ;;  %v6515_v18 = vld [vmem:[%s10434_s4 + $0x240] sm:$0xf] }
 0x470   :  { %3466 = vmatpush.bf16.msra.mxu2 %v6284_v26  ;;  %v2761_v63 = vpop.f32.mrf.mxu0 }
 0x471   :  { %v2845_v57 = vpop.f32.mrf.mxu1  ;;  %v9469_v34 = vsel %vm1288_vm3, %v9414_v19, %v9464_v52 }
 0x472   :  { %v2846_v24 = vadd.f32 %v2845_v57, %v2756_v11  ;;  %v6272_v11 = vor.u32 %v6991_v33, %v6269_v49  ;;  %v6523_v49 = vld [vmem:[%s10434_s4 + $0x250] sm:$0xf] }
 0x474   :  { %v2885_v15 = vmax.f32 %v2580_v28, %v2846_v24  ;;  %3467 = vmatpush.bf16.msra.mxu2 %v6276_v46  ;;  %3517 = vmatpush.bf16.msrb.mxu3 %v6272_v11  ;;  %v3170_v24 = vor.u32 %v3168_v20, %v9446_v60  ;;  %v7064_v20 = vld [vmem:[%s10434_s4 + $0x274] sm:$0xf0]  ;;  %v7063_v60 = vld [vmem:[%s10434_s4 + $0x274] sm:$0xf]  ;;  %v6533_v46 = vld [vmem:[%s10434_s4 + $0x268] sm:$0xf0]  ;;  %v6524_v11 = vor.u32 %v7060_v51, %v6523_v49 }
 0x475   :  { %v9560_v33 = vor.u32 %v7061_v14, %v6533_v46 }
 0x476   :  { %2917 = vst [vmem:[#allocation2 + $0xd8] sm:$0xff] %v2885_v15 }
 0x478   :  { %v2764_v6 = vpop.f32.mrf.mxu0  ;;  %3468 = vmatpush.bf16.msra.mxu2 %v6268_v17  ;;  %3518 = vmatpush.bf16.msrb.mxu3 %v6264_v50  ;;  %v7058_v17 = vld [vmem:[%s10434_s4 + $0x244] sm:$0xf0]  ;;  %v7057_v50 = vld [vmem:[%s10434_s4 + $0x244] sm:$0xf] }
 0x479   :  { %v2848_v56 = vpop.f32.mrf.mxu1 }
 0x47a   :  { %v2849_v48 = vadd.f32 %v2848_v56, %v2759_v61  ;;  %v2500_v56 = vpop.f32.mrf.mxu2 }
 0x47c   :  { %v2886_v40 = vmax.f32 %v2583_v0, %v2849_v48  ;;  %v2589_v0 = vpop.f32.mrf.mxu3  ;;  %3469 = vmatpush.bf16.msra.mxu2 %v6260_v31 }
 0x47d   :  { %v2949_v27 = vld [vmem:[#allocation2 + $0xd0] ss:$2 sm:$0xff]  ;;  %v2981_v12 = vld [vmem:[#allocation2 + $0xd1] ss:$2 sm:$0xff] }
 0x47e   :  { %v2999_v19 = vmax.f32 %v2949_v27, %v2981_v12  ;;  %2918 = vst [vmem:[#allocation2 + $0xe0] sm:$0xff] %v2886_v40  ;;  %v6541_v40 = vld [vmem:[%s10434_s4 + $0x278] sm:$0xf0] }
 0x47f   :  { %v9534_v12 = vor.u32 %v7063_v60, %v6541_v40  ;;  %v6245_v60 = vld [vmem:[%s10434_s4 + $0x8] sm:$0xf0]  ;;  %v7053_v40 = vld [vmem:[%s10434_s4 + $0x224] sm:$0xf] }
 0x480   :  { %v7178_v4 = vpack.c.bf16 %v2999_v19, %v2998_v8  ;;  %v2766_v62 = vpop.f32.mrf.mxu0  ;;  %v6987_v19 = vld [vmem:[%s10434_s4 + $0x14] sm:$0xf] }
 0x481   :  { %v2850_v44 = vpop.f32.mrf.mxu1  ;;  %4269 = vmatpush.bf16.msrb.mxu1 %v9534_v12 }
 0x482   :  { %7194 = vst [vmem:[#allocation3 + $0x30] sm:$0xff] %v7178_v4   ;;  %v2851_v55 = vadd.f32 %v2850_v44, %v2761_v63  ;;  %v2590_v63 = vadd.f32 %v2589_v0, %v2500_v56  ;;  %v6253_v4 = vld [vmem:[%s10434_s4 + $0x18] sm:$0xf0]  ;;  %v7055_v56 = vld [vmem:[%s10434_s4 + $0x234] sm:$0xf] }
 0x484   :  { %v2887_v5 = vmax.f32 %v2585_v39, %v2851_v55  ;;  %v6256_v39 = vor.u32 %v6987_v19, %v6253_v4  ;;  %v6531_v55 = vld [vmem:[%s10434_s4 + $0x260] sm:$0xf]  ;;  %v6491_v4 = vld [vmem:[%s10434_s4 + $0x210] sm:$0xf] }
 0x485   :  { %4270 = vmatpush.bf16.msrb.mxu1 %v9560_v33 }
 0x486   :  { %2919 = vst [vmem:[#allocation2 + $0xe8] sm:$0xff] %v2887_v5  ;;  %3519 = vmatpush.bf16.msrb.mxu3 %v6256_v39  ;;  %v7059_v5 = vld [vmem:[%s10434_s4 + $0x254] sm:$0xf] }
 0x487   :  { %v9575_v53 = vor.u32 %v7059_v5, %v6525_v43  ;;  %v7051_v39 = vld [vmem:[%s10434_s4 + $0x214] sm:$0xf]  ;;  %v6483_v5 = vld [vmem:[%s10434_s4 + $0x200] sm:$0xf]  ;;  %v7049_v43 = vld [vmem:[%s10434_s4 + $0x204] sm:$0xf] }
 0x489   :  { %v2853_v16 = vpop.f32.mrf.mxu1  ;;  %v9495_v21 = vld [vmem:[#allocation3 + $0x30] sm:$0xff]  ;;  %4271 = vmatpush.bf16.msrb.mxu1 %v9575_v53 }
 0x48a   :  { %v2854_v10 = vadd.f32 %v2853_v16, %v2764_v6  ;;  %v3594_v26 = vrot.slane %v9495_v21, 1  ;;  %v3172_v35 = vshll.u32 %v9495_v21, 16  ;;  %v3176_v57 = vshrl.u32 %v9495_v21, 16  ;;  %v6517_v16 = vld [vmem:[%s10434_s4 + $0x248] sm:$0xf0] }
 0x48b   :  { %v6516_v6 = vor.u32 %v7058_v17, %v6515_v18  ;;  %v9596_v9 = vor.u32 %v7057_v50, %v6517_v16  ;;  %v6485_v18 = vld [vmem:[%s10434_s4 + $0x208] sm:$0xf0]  ;;  %v6243_v17 = vld [vmem:[%s10434_s4] sm:$0xf]  ;;  %v6986_v50 = vld [vmem:[%s10434_s4 + $0x4] sm:$0xf0] }
 0x48c   :  { %v2888_v37 = vmax.f32 %v2588_v23, %v2854_v10  ;;  %v3595_v28 = vsel %vm889_vm2, %v3592_v13, %v3594_v26  ;;  %v9514_v61 = vrot.slane %v3172_v35, 1  ;;  %v3866_v15 = vrot.slane %v3172_v35, 2  ;;  %v6539_v13 = vld [vmem:[%s10434_s4 + $0x270] sm:$0xf]  ;;  %v6988_v10 = vld [vmem:[%s10434_s4 + $0x14] sm:$0xf0] }
 0x48d   :  { %3719 = vmatmul.bf16.gmra.mxu0 %v3595_v28  ;;  %3768 = vmatmul.bf16.gmra.mxu1 %v3595_v28  ;;  %v3865_v30 = vrot.slane %v3176_v57, 1  ;;  %v6540_v1 = vor.u32 %v7064_v20, %v6539_v13  ;;  %v2951_v36 = vld [vmem:[#allocation2 + $0xe0] ss:$2 sm:$0xff]  ;;  %v2983_v59 = vld [vmem:[#allocation2 + $0xe1] ss:$2 sm:$0xff]  ;;  %v6244_v16 = vor.u32 %v6986_v50, %v6243_v17 }
 0x48e   :  { %2920 = vst [vmem:[#allocation2 + $0xf0] sm:$0xff] %v2888_v37  ;;  %v3175_v48 = vsel %vm183_vm0, %v3170_v24, %v9514_v61  ;;  %v6251_v23 = vld [vmem:[%s10434_s4 + $0x10] sm:$0xf]  ;;  %v3000_v31 = vmax.f32 %v2951_v36, %v2983_v59  ;;  %4272 = vmatpush.bf16.msrb.mxu1 %v9596_v9  ;;  %v6985_v20 = vld [vmem:[%s10434_s4 + $0x4] sm:$0xf] }
 0x48f   :  { %3308 = vmatmul.bf16.gmra.mxu2 %v3175_v48  ;;  %3357 = vmatmul.bf16.gmra.mxu3 %v3175_v48  ;;  %v9529_v45 = vor.u32 %v3866_v15, %v3865_v30  ;;  %v6252_v37 = vor.u32 %v6988_v10, %v6251_v23  ;;  %v6507_v15 = vld [vmem:[%s10434_s4 + $0x230] sm:$0xf]  ;;  %v7056_v30 = vld [vmem:[%s10434_s4 + $0x234] sm:$0xf0]  ;;  %v6509_v48 = vld [vmem:[%s10434_s4 + $0x238] sm:$0xf0] }
 0x490   :  { %4220 = vmatpush.bf16.msrb.mxu0 %v6540_v1  ;;  %v6508_v0 = vor.u32 %v7056_v30, %v6507_v15  ;;  %v9611_v13 = vor.u32 %v7055_v56, %v6509_v48  ;;  %v7054_v1 = vld [vmem:[%s10434_s4 + $0x224] sm:$0xf0]  ;;  %v7047_v56 = vld [vmem:[%s10434_s4 + $0x1f4] sm:$0xf]  ;;  %v6459_v48 = vld [vmem:[%s10434_s4 + $0x1f0] sm:$0xf] }
 0x491   :  { %v2855_v22 = vpop.f32.mrf.mxu1  ;;  %v9539_v8 = vsel %vm1288_vm3, %v9464_v52, %v9529_v45  ;;  %v7062_v52 = vld [vmem:[%s10434_s4 + $0x264] sm:$0xf0]  ;;  %3470 = vmatpush.bf16.msra.mxu2 %v6252_v37  ;;  %v6443_v50 = vld [vmem:[%s10434_s4 + $0x1d0] sm:$0xf] }
 0x492   :  { %v2856_v27 = vadd.f32 %v2855_v22, %v2766_v62  ;;  %v6532_v47 = vor.u32 %v7062_v52, %v6531_v55  ;;  %v6499_v62 = vld [vmem:[%s10434_s4 + $0x220] sm:$0xf]  ;;  %4273 = vmatpush.bf16.msrb.mxu1 %v9611_v13  ;;  %v6248_v22 = vor.u32 %v6985_v20, %v6245_v60  ;;  %v6493_v55 = vld [vmem:[%s10434_s4 + $0x218] sm:$0xf0]  ;;  %v7048_v20 = vld [vmem:[%s10434_s4 + $0x1f4] sm:$0xf0] }
 0x493   :  { %v9647_v14 = vor.u32 %v7051_v39, %v6493_v55  ;;  %v6460_v60 = vor.u32 %v7048_v20, %v6459_v48  ;;  %v6451_v55 = vld [vmem:[%s10434_s4 + $0x1e0] sm:$0xf] }
 0x494   :  { %v2889_v44 = vmax.f32 %v2590_v63, %v2856_v27  ;;  %4221 = vmatpush.bf16.msrb.mxu0 %v6532_v47  ;;  %v6501_v63 = vld [vmem:[%s10434_s4 + $0x228] sm:$0xf0]  ;;  %v6500_v27 = vor.u32 %v7054_v1, %v6499_v62  ;;  %3520 = vmatpush.bf16.msrb.mxu3 %v6248_v22  ;;  %v4096_v1 = vld [vmem:[#allocation3] sm:$0xc] }
 0x495   :  { %v9632_v19 = vor.u32 %v7053_v40, %v6501_v63  ;;  %3471 = vmatpush.bf16.msra.mxu2 %v6244_v16  ;;  %v6453_v40 = vld [vmem:[%s10434_s4 + $0x1e8] sm:$0xf0]  ;;  %v7044_v16 = vld [vmem:[%s10434_s4 + $0x1d4] sm:$0xf0] }
 0x496   :  { %2921 = vst [vmem:[#allocation2 + $0xf8] sm:$0xf] %v2889_v44  ;;  %v7052_v44 = vld [vmem:[%s10434_s4 + $0x214] sm:$0xf0] }
 0x497   :  { %v6492_v52 = vor.u32 %v7052_v44, %v6491_v4  ;;  %4274 = vmatpush.bf16.msrb.mxu1 %v9632_v19  ;;  %v9710_v4 = vpop.f32.mrf.mxu2  ;;  %v9712_v44 = vpop.f32.mrf.mxu3 }
 0x498   :  { %4222 = vmatpush.bf16.msrb.mxu0 %v6524_v11  ;;  %v7050_v11 = vld [vmem:[%s10434_s4 + $0x204] sm:$0xf0] }
 0x499   :  { %v6484_v59 = vor.u32 %v7050_v11, %v6483_v5  ;;  %3966 = vmatpush.bf16.msrb.mxu2 %v6460_v60 }
 0x49b   :  { %4275 = vmatpush.bf16.msrb.mxu1 %v9647_v14 }
 0x49c   :  { %4223 = vmatpush.bf16.msrb.mxu0 %v6516_v6  ;;  %v9673_v6 = vor.u32 %v7049_v43, %v6485_v18 }
 0x49d   :  { %v2953_v35 = vld [vmem:[#allocation2 + $0xf0] ss:$2 sm:$0xff]  ;;  %v2985_v32 = vld [vmem:[#allocation2 + $0xf1] ss:$2 sm:$0xff] }
 0x49e   :  { %v3001_v28 = vmax.f32 %v2953_v35, %v2985_v32 }
 0x49f   :  { %4276 = vmatpush.bf16.msrb.mxu1 %v9673_v6  ;;  %v9731_v18 = vpop.f32.mrf.mxu3 }
 0x4a0   :  { %v7183_v24 = vpack.c.bf16 %v3001_v28, %v3000_v31  ;;  %4224 = vmatpush.bf16.msrb.mxu0 %v6508_v0  ;;  %v3178_v31 = vor.u32 %v3176_v57, %v9514_v61 }
 0x4a2   :  { %7195 = vst [vmem:[#allocation3 + $0x38] sm:$0xff] %v7183_v24  }
 0x4a4   :  { %4225 = vmatpush.bf16.msrb.mxu0 %v6500_v27  ;;  %v4115_v27 = vunpack.c.l.b16 %v4096_v1  ;;  %v6429_v1 = vld [vmem:[%s10434_s4 + $0x1b8] sm:$0xf0] }
 0x4a6   :  { %v4116_v39 = vpack.c.b16 %v7188_v3, %v4115_v27  ;;  %v6445_v3 = vld [vmem:[%s10434_s4 + $0x1d8] sm:$0xf0]  ;;  %v6427_v27 = vld [vmem:[%s10434_s4 + $0x1b0] sm:$0xf] }
 0x4a7   :  { %v6448_v17 = vor.u32 %v7043_v2, %v6445_v3 }
 0x4a8   :  { %4226 = vmatpush.bf16.msrb.mxu0 %v6492_v52  ;;  %v7046_v52 = vld [vmem:[%s10434_s4 + $0x1e4] sm:$0xf0]  ;;  %v4117_v11 = vrot.slane %v4116_v39, 2  ;;  %v4124_v39 = vrot.slane %v9384_v38, 2 }
 0x4a9   :  { %v9649_v47 = vld [vmem:[#allocation3 + $0x38] sm:$0xff]   ;;  %v6452_v5 = vor.u32 %v7046_v52, %v6451_v55  ;;  %v9786_v52 = vpop.f32.mrf.mxu0 }
 0x4aa   :  { %v3066_v46 = vld [vmem:[#allocation3 + $0x3c] sm:$0x7]  ;;  %v3114_v49 = vunpack.c.l.b16 %v9649_v47  ;;  %v3870_v35 = vshrl.u32 %v9649_v47, 16  ;;  %v3873_v32 = vshll.u32 %v9649_v47, 16 }
 0x4ab   :  { %v3115_v51 = vunpack.c.l.b16 %v3066_v46  ;;  %v7232_v46 = vld [vmem:[#allocation3 + $0x8] sm:$0xff]  ;;  %3967 = vmatpush.bf16.msrb.mxu2 %v6452_v5 }
 0x4ac   :  { %4227 = vmatpush.bf16.msrb.mxu0 %v6484_v59  ;;  %v3872_v24 = vrot.slane %v3870_v35, 1  ;;  %v3875_v15 = vrot.slane %v3873_v32, 2  ;;  %v9729_v59 = vpop.f32.mrf.mxu2  ;;  %v4120_v35 = vrot.slane %v9331_v7, 2  ;;  %v6444_v32 = vor.u32 %v7044_v16, %v6443_v50 }
 0x4ad   :  { %v3123_v36 = vpack.c.b16 %v3115_v51, %v3114_v49  ;;  %v4118_v51 = vrot.slane %v7232_v46, 2 }
 0x4ae   :  { %v9691_v57 = vor.u32 %v3875_v15, %v3872_v24 }
 0x4af   :  { %v3596_v23 = vrot.slane %v3123_v36, 1  ;;  %v3180_v10 = vshll.u32 %v3123_v36, 16  ;;  %v3184_v62 = vshrl.u32 %v3123_v36, 16  ;;  %v4119_v43 = vsel %vm1729_vm5, %v4117_v11, %v4118_v51  ;;  %v7233_v36 = vld [vmem:[#allocation3] sm:$0xff]  ;;  %3968 = vmatpush.bf16.msrb.mxu2 %v6444_v32  ;;  %v7038_v32 = vld [vmem:[%s10434_s4 + $0x1a4] sm:$0xf0] }
 0x4b0   :  { %v9696_v0 = vsel %vm1288_vm3, %v9529_v45, %v9691_v57  ;;  %v7045_v45 = vld [vmem:[%s10434_s4 + $0x1e4] sm:$0xf] }
 0x4b1   :  { %v3597_v37 = vsel %vm889_vm2, %v3594_v26, %v3596_v23  ;;  %v3182_v28 = vrot.slane %v3180_v10, 1  ;;  %v6461_v26 = vld [vmem:[%s10434_s4 + $0x1f8] sm:$0xf0]  ;;  %v6456_v63 = vor.u32 %v7045_v45, %v6453_v40  ;;  %v9741_v10 = vpop.f32.mrf.mxu3  ;;  %v9803_v3 = vpop.f32.mrf.mxu0 }
 0x4b2   :  { %3724 = vmatmul.bf16.gmra.mxu0 %v3597_v37  ;;  %3773 = vmatmul.bf16.gmra.mxu1 %v3597_v37  ;;  %v6464_v61 = vor.u32 %v7047_v56, %v6461_v26  ;;  %v4121_v37 = vsel %vm1729_vm5, %v4118_v51, %v4120_v35  ;;  %v6435_v56 = vld [vmem:[%s10434_s4 + $0x1c0] sm:$0xf]  ;;  %v7042_v26 = vld [vmem:[%s10434_s4 + $0x1c4] sm:$0xf0] }
 0x4b3   :  { %v3183_v30 = vsel %vm183_vm0, %v3178_v31, %v3182_v28  ;;  %v3186_v22 = vor.u32 %v3184_v62, %v3182_v28  ;;  %v7041_v31 = vld [vmem:[%s10434_s4 + $0x1c4] sm:$0xf]  ;;  %v6437_v28 = vld [vmem:[%s10434_s4 + $0x1c8] sm:$0xf0]  ;;  %v6436_v48 = vor.u32 %v7042_v26, %v6435_v56 }
 0x4b4   :  { %3313 = vmatmul.bf16.gmra.mxu2 %v3183_v30  ;;  %3362 = vmatmul.bf16.gmra.mxu3 %v3183_v30  ;;  %v6440_v24 = vor.u32 %v7041_v31, %v6437_v28 }
 0x4b5   :  { %4015 = vmatpush.bf16.msra.mxu3 %v6464_v61  ;;  %v4122_v61 = vrot.slane %v9358_v29, 2  ;;  %3969 = vmatpush.bf16.msrb.mxu2 %v6436_v48  ;;  %v6413_v48 = vld [vmem:[%s10434_s4 + $0x198] sm:$0xf0] }
 0x4b7   :  { %v4123_v62 = vsel %vm1729_vm5, %v4120_v35, %v4122_v61  ;;  %v4125_v11 = vsel %vm1729_vm5, %v4122_v61, %v4124_v39  ;;  %v6419_v35 = vld [vmem:[%s10434_s4 + $0x1a0] sm:$0xf]  ;;  %v7035_v61 = vld [vmem:[%s10434_s4 + $0x194] sm:$0xf] }
 0x4b9   :  { %4016 = vmatpush.bf16.msra.mxu3 %v6456_v63  ;;  %v9753_v30 = vpop.f32.mrf.mxu3  ;;  %v9823_v56 = vpop.f32.mrf.mxu0 }
 0x4bd   :  { %4017 = vmatpush.bf16.msra.mxu3 %v6448_v17 }
 0x4c1   :  { %4018 = vmatpush.bf16.msra.mxu3 %v6440_v24  ;;  %v9764_v60 = vpop.f32.mrf.mxu3 }
 0x4c2   :  { %3729 = vmatmul.bf16.gmra.mxu0 %v3596_v23  ;;  %3778 = vmatmul.bf16.gmra.mxu1 %v3596_v23  ;;  %v9739_v23 = vpop.f32.mrf.mxu2 }
 0x4c4   :  { %3318 = vmatmul.bf16.gmra.mxu2 %v3186_v22  ;;  %3367 = vmatmul.bf16.gmra.mxu3 %v3186_v22  ;;  %v7039_v22 = vld [vmem:[%s10434_s4 + $0x1b4] sm:$0xf] }
 0x4c5   :  { %v6432_v45 = vor.u32 %v7039_v22, %v6429_v1 }
 0x4c7   :  { %4019 = vmatpush.bf16.msra.mxu3 %v6432_v45  ;;  %v4128_v45 = vrot.slane %v9495_v21, 2 }
 0x4c9   :  { %v9777_v63 = vpop.f32.mrf.mxu3 }
 0x4ca   :  { %v9751_v15 = vpop.f32.mrf.mxu2 }
 0x4d2   :  { %4228 = vmatmul.bf16.vlgmr.msrb.gmra.mxu0 %v4119_v43  ;;  %4277 = vmatmul.bf16.vlgmr.msrb.gmra.mxu1 %v4119_v43  ;;  %v9762_v20 = vpop.f32.mrf.mxu2  ;;  %v9792_v5 = vpop.f32.mrf.mxu3  ;;  %v7037_v43 = vld [vmem:[%s10434_s4 + $0x1a4] sm:$0xf] }
 0x4d4   :  { %3472 = vmatmul.bf16.vlgmr.msra.gmra.mxu2 %v7233_v36  ;;  %3521 = vmatmul.bf16.vlgmr.msrb.gmra.mxu3 %v7233_v36  ;;  %v6421_v36 = vld [vmem:[%s10434_s4 + $0x1a8] sm:$0xf0] }
 0x4d5   :  { %v6424_v2 = vor.u32 %v7037_v43, %v6421_v36  ;;  %v7033_v43 = vld [vmem:[%s10434_s4 + $0x184] sm:$0xf]  ;;  %v6405_v36 = vld [vmem:[%s10434_s4 + $0x188] sm:$0xf0] }
 0x4d7   :  { %4020 = vmatpush.bf16.msra.mxu3 %v6424_v2 }
 0x4da   :  { %v9775_v40 = vpop.f32.mrf.mxu2  ;;  %v9809_v16 = vpop.f32.mrf.mxu3 }
 0x4e2   :  { %4233 = vmatmul.bf16.gmra.mxu0 %v4121_v37  ;;  %4282 = vmatmul.bf16.gmra.mxu1 %v4121_v37  ;;  %v9790_v51 = vpop.f32.mrf.mxu2  ;;  %v6420_v37 = vor.u32 %v7038_v32, %v6419_v35 }
 0x4e4   :  { %3477 = vmatmul.bf16.gmra.mxu2 %v7232_v46  ;;  %3526 = vmatmul.bf16.gmra.mxu3 %v7232_v46  ;;  %v9788_v46 = vpop.f32.mrf.mxu1 }
 0x4ea   :  { %v9807_v50 = vpop.f32.mrf.mxu2 }
 0x4ec   :  { %v9805_v17 = vpop.f32.mrf.mxu1 }
 0x4f2   :  { %4238 = vmatmul.bf16.gmra.mxu0 %v4123_v62  ;;  %4287 = vmatmul.bf16.gmra.mxu1 %v4123_v62  ;;  %v9819_v28 = vpop.f32.mrf.mxu2  ;;  %v9821_v24 = vpop.f32.mrf.mxu3  ;;  %v6416_v62 = vor.u32 %v7035_v61, %v6413_v48  ;;  %v6403_v48 = vld [vmem:[%s10434_s4 + $0x180] sm:$0xf] }
 0x4f3   :  { %10659 = vst [vmem:[#allocation8_spill] sm:$0xff] %v9819_v28 }
 0x4f4   :  { %3482 = vmatmul.bf16.gmra.mxu2 %v9331_v7  ;;  %3531 = vmatmul.bf16.gmra.mxu3 %v9331_v7  ;;  %v7040_v7 = vld [vmem:[%s10434_s4 + $0x1b4] sm:$0xf0]  ;;  %10660 = vst [vmem:[#allocation7_spill] sm:$0xff] %v9821_v24  ;;  %v9825_v26 = vpop.f32.mrf.mxu1 }
 0x4f5   :  { %v6428_v55 = vor.u32 %v7040_v7, %v6427_v27  ;;  %4021 = vmatpush.bf16.msra.mxu3 %v6416_v62  ;;  %v9840_v27 = vpop.f32.mrf.mxu0  ;;  %v7034_v62 = vld [vmem:[%s10434_s4 + $0x184] sm:$0xf0] }
 0x4f7   :  { %3970 = vmatpush.bf16.msrb.mxu2 %v6428_v55 }
 0x4fa   :  { %v9835_v22 = vpop.f32.mrf.mxu2  ;;  %v9837_v1 = vpop.f32.mrf.mxu3 }
 0x4fb   :  { %3971 = vmatpush.bf16.msrb.mxu2 %v6420_v37  ;;  %10661 = vst [vmem:[#allocation6_spill] sm:$0xff] %v9835_v22 }
 0x4fc   :  { %10662 = vst [vmem:[#allocation9_spill] sm:$0xff] %v9837_v1  ;;  %v9842_v7 = vpop.f32.mrf.mxu1 }
 0x4fd   :  { %v9863_v32 = vpop.f32.mrf.mxu0 }
 0x502   :  { %4243 = vmatmul.bf16.gmra.mxu0 %v4125_v11  ;;  %4292 = vmatmul.bf16.gmra.mxu1 %v4125_v11 }
 0x504   :  { %3487 = vmatmul.bf16.gmra.mxu2 %v9358_v29  ;;  %3536 = vmatmul.bf16.gmra.mxu3 %v9358_v29  ;;  %v4126_v29 = vrot.slane %v9433_v41, 2  ;;  %v9865_v37 = vpop.f32.mrf.mxu1 }
 0x506   :  { %v4127_v31 = vsel %vm1729_vm5, %v4124_v39, %v4126_v29  ;;  %v7036_v39 = vld [vmem:[%s10434_s4 + $0x194] sm:$0xf0]  ;;  %v4129_v55 = vsel %vm1729_vm5, %v4126_v29, %v4128_v45  ;;  %v6408_v29 = vor.u32 %v7033_v43, %v6405_v36 }
 0x508   :  { %4022 = vmatpush.bf16.msra.mxu3 %v6408_v29 }
 0x50c   :  { %7202 = vmatpush.bf16.msrb.mxu3 %v9534_v12  ;;  %v6404_v12 = vor.u32 %v7034_v62, %v6403_v48 }
 0x510   :  { %7203 = vmatpush.bf16.msrb.mxu3 %v9560_v33 }
 0x512   :  { %4248 = vmatmul.bf16.gmra.mxu0 %v4127_v31  ;;  %4297 = vmatmul.bf16.gmra.mxu1 %v4127_v31  ;;  %v9859_v2 = vpop.f32.mrf.mxu2  ;;  %v9861_v35 = vpop.f32.mrf.mxu3 }
 0x513   :  { %10663 = vst [vmem:[#allocation32_spill] sm:$0xff] %v9859_v2 }
 0x514   :  { %3492 = vmatmul.bf16.gmra.mxu2 %v9384_v38  ;;  %3541 = vmatmul.bf16.gmra.mxu3 %v9384_v38  ;;  %v6411_v38 = vld [vmem:[%s10434_s4 + $0x190] sm:$0xf]  ;;  %10664 = vst [vmem:[#allocation33_spill] sm:$0xff] %v9861_v35 }
 0x515   :  { %v6412_v11 = vor.u32 %v7036_v39, %v6411_v38  ;;  %v9882_v38 = vpop.f32.mrf.mxu0  ;;  %7204 = vmatpush.bf16.msrb.mxu3 %v9575_v53  ;;  %v9887_v39 = vpop.f32.mrf.mxu1  ;;  %v3049_v53 = vld [vmem:[#allocation3 + $0x3c] sm:$0x3] }
 0x517   :  { %3972 = vmatpush.bf16.msrb.mxu2 %v6412_v11 }
 0x519   :  { %7205 = vmatpush.bf16.msrb.mxu3 %v9596_v9 }
 0x51a   :  { %v9872_v31 = vpop.f32.mrf.mxu2  ;;  %v9874_v61 = vpop.f32.mrf.mxu3 }
 0x51b   :  { %10665 = vst [vmem:[#allocation11_spill] sm:$0xff] %v9872_v31  ;;  %3973 = vmatpush.bf16.msrb.mxu2 %v6404_v12 }
 0x51c   :  { %10666 = vst [vmem:[#allocation10_spill] sm:$0xff] %v9874_v61 }
 0x51d   :  { %v9896_v43 = vpop.f32.mrf.mxu0  ;;  %7206 = vmatpush.bf16.msrb.mxu3 %v9611_v13 }
 0x521   :  { %7207 = vmatpush.bf16.msrb.mxu3 %v9632_v19 }
 0x522   :  { %4253 = vmatmul.bf16.gmra.mxu0 %v4129_v55  ;;  %4302 = vmatmul.bf16.gmra.mxu1 %v4129_v55 }
 0x524   :  { %3497 = vmatmul.bf16.gmra.mxu2 %v9433_v41  ;;  %3546 = vmatmul.bf16.gmra.mxu3 %v9433_v41  ;;  %v9870_v41 = vrot.slane %v9649_v47, 2 }
 0x525   :  { %7208 = vmatpush.bf16.msrb.mxu3 %v9647_v14 }
 0x526   :  { %v4131_v33 = vsel %vm1729_vm5, %v4128_v45, %v9870_v41  ;;  %v3374_v45 = vunpack.c.l.b16 %v3049_v53  ;;  %v9935_v53 = vpop.f32.mrf.mxu1 }
 0x528   :  { %v3375_v9 = vpack.c.b16 %v3374_v45, %v3114_v49  ;;  %v7072_v49 = vld [vmem:[%s10435_s6 + $0x38] sm:$0xff] }
 0x529   :  { %7209 = vmatpush.bf16.msrb.mxu3 %v9673_v6  ;;  %v7082_v6 = vld [vmem:[%s10435_s6 + $0x88] sm:$0xff]  ;;  %4541 = vmatpush.bf16.msra.mxu2 %v7072_v49  ;;  %v7081_v49 = vld [vmem:[%s10435_s6 + $0x80] sm:$0xff] }
 0x52a   :  { %4720 = vmatpush.bf16.msra.mxu0 %v7082_v6  ;;  %v7084_v6 = vld [vmem:[%s10435_s6 + $0x98] sm:$0xff] }
 0x52b   :  { %4775 = vmatpush.bf16.msra.mxu1 %v7084_v6 }
 0x52e   :  { %4721 = vmatpush.bf16.msra.mxu0 %v7081_v49  ;;  %v7080_v49 = vld [vmem:[%s10435_s6 + $0x78] sm:$0xff] }
 0x532   :  { %4258 = vmatmul.bf16.gmra.mxu0 %v4131_v33  ;;  %4307 = vmatmul.bf16.gmra.mxu1 %v4131_v33 }
 0x533   :  { %4722 = vmatpush.bf16.msra.mxu0 %v7080_v49  ;;  %v7079_v49 = vld [vmem:[%s10435_s6 + $0x70] sm:$0xff] }
 0x534   :  { %3502 = vmatmul.bf16.gmra.mxu2 %v9495_v21  ;;  %3551 = vmatmul.bf16.gmra.mxu3 %v9495_v21  ;;  %v9905_v21 = vpop.f32.mrf.mxu0 }
 0x537   :  { %v9892_v55 = vpop.f32.mrf.mxu2  ;;  %v9894_v11 = vpop.f32.mrf.mxu3  ;;  %4723 = vmatpush.bf16.msra.mxu0 %v7079_v49  ;;  %v7078_v49 = vld [vmem:[%s10435_s6 + $0x68] sm:$0xff] }
 0x538   :  { %10667 = vst [vmem:[#allocation34_spill] sm:$0xff] %v9892_v55 }
 0x539   :  { %10668 = vst [vmem:[#allocation12_spill] sm:$0xff] %v9894_v11 }
 0x53b   :  { %4724 = vmatpush.bf16.msra.mxu0 %v7078_v49 }
 0x53f   :  { %v9900_v36 = vpop.f32.mrf.mxu2  ;;  %v9902_v29 = vpop.f32.mrf.mxu3 }
 0x540   :  { %10669 = vst [vmem:[#allocation35_spill] sm:$0xff] %v9900_v36 }
 0x541   :  { %10670 = vst [vmem:[#allocation36_spill] sm:$0xff] %v9902_v29 }
 0x542   :  { %4263 = vmatmul.bf16.gmra.mxu0 %v9870_v41 }
 0x544   :  { %3507 = vmatmul.bf16.gmra.mxu2 %v3375_v9  ;;  %3556 = vmatmul.bf16.gmra.mxu3 %v3375_v9  ;;  %v7071_v9 = vld [vmem:[%s10435_s6 + $0x30] sm:$0xff] }
 0x545   :  { %4542 = vmatpush.bf16.msra.mxu2 %v7071_v9  ;;  %v7070_v9 = vld [vmem:[%s10435_s6 + $0x28] sm:$0xff] }
 0x547   :  { %v9911_v13 = vpop.f32.mrf.mxu2  ;;  %v9913_v19 = vpop.f32.mrf.mxu3 }
 0x548   :  { %10671 = vst [vmem:[#allocation13_spill] sm:$0xff] %v9911_v13 }
 0x549   :  { %10672 = vst [vmem:[#allocation37_spill] sm:$0xff] %v9913_v19  ;;  %4543 = vmatpush.bf16.msra.mxu2 %v7070_v9  ;;  %v7069_v9 = vld [vmem:[%s10435_s6 + $0x20] sm:$0xff] }
 0x54d   :  { %4544 = vmatpush.bf16.msra.mxu2 %v7069_v9  ;;  %v7068_v9 = vld [vmem:[%s10435_s6 + $0x18] sm:$0xff] }
 0x54f   :  { %v9915_v48 = vpop.f32.mrf.mxu2  ;;  %v9917_v62 = vpop.f32.mrf.mxu3 }
 0x550   :  { %10673 = vst [vmem:[#allocation14_spill] sm:$0xff] %v9915_v48 }
 0x551   :  { %10674 = vst [vmem:[#allocation38_spill] sm:$0xff] %v9917_v62  ;;  %v9952_v62 = vpop.f32.mrf.mxu1  ;;  %4545 = vmatpush.bf16.msra.mxu2 %v7068_v9 }
 0x552   :  { %10675 = vst [vmem:[#allocation15_spill] sm:$0xff] %v9952_v62 }
 0x554   :  { %3974 = vmatmul.bf16.vlgmr.msrb.gmra.mxu2 %v9306_v42  ;;  %4023 = vmatmul.bf16.vlgmr.msra.gmra.mxu3 %v9306_v42 }
 0x557   :  { %v9921_v14 = vpop.f32.mrf.mxu2  ;;  %v9923_v47 = vpop.f32.mrf.mxu3 }
 0x558   :  { %v3523_v24 = vadd.f32 %v9923_v47, %v9712_v44  ;;  %v4350_v44 = vld [vmem:[%s10436_s5] sm:$0x3] }
 0x559   :  { %v9960_v13 = vpop.f32.mrf.mxu1 }
 0x55a   :  { %10677 = vst [vmem:[#allocation40_spill] sm:$0xff] %v9960_v13 }
 0x55f   :  { %v9931_v12 = vpop.f32.mrf.mxu2  ;;  %v9933_v33 = vpop.f32.mrf.mxu3 }
 0x561   :  { %v9976_v6 = vpop.f32.mrf.mxu1 }
 0x562   :  { %10679 = vst [vmem:[#allocation41_spill] sm:$0xff] %v9976_v6 }
 0x564   :  { %3979 = vmatmul.bf16.gmra.mxu2 %v9353_v58  ;;  %4028 = vmatmul.bf16.gmra.mxu3 %v9353_v58  ;;  %v9954_v58 = vpop.f32.mrf.mxu0 }
 0x565   :  { %10676 = vst [vmem:[#allocation39_spill] sm:$0xff] %v9954_v58 }
 0x567   :  { %v9939_v42 = vpop.f32.mrf.mxu2  ;;  %v9941_v45 = vpop.f32.mrf.mxu3 }
 0x569   :  { %v9984_v31 = vpop.f32.mrf.mxu1 }
 0x56a   :  { %10681 = vst [vmem:[#allocation42_spill] sm:$0xff] %v9984_v31 }
 0x56c   :  { %v9968_v11 = vpop.f32.mrf.mxu0 }
 0x56d   :  { %10678 = vst [vmem:[#allocation16_spill] sm:$0xff] %v9968_v11 }
 0x56f   :  { %v9956_v19 = vpop.f32.mrf.mxu2  ;;  %v9958_v48 = vpop.f32.mrf.mxu3 }
 0x571   :  { %v10000_v31 = vpop.f32.mrf.mxu1 }
 0x572   :  { %10683 = vst [vmem:[#allocation19_spill] sm:$0xff] %v10000_v31 }
 0x574   :  { %3984 = vmatmul.bf16.gmra.mxu2 %v9376_v25  ;;  %4033 = vmatmul.bf16.gmra.mxu3 %v9376_v25  ;;  %v9982_v61 = vpop.f32.mrf.mxu0 }
 0x575   :  { %10680 = vst [vmem:[#allocation17_spill] sm:$0xff] %v9982_v61 }
 0x577   :  { %v9964_v29 = vpop.f32.mrf.mxu2  ;;  %v9966_v36 = vpop.f32.mrf.mxu3 }
 0x579   :  { %v10010_v1 = vpop.f32.mrf.mxu1 }
 0x57a   :  { %10685 = vst [vmem:[#allocation44_spill] sm:$0xff] %v10010_v1 }
 0x57c   :  { %v9998_v6 = vpop.f32.mrf.mxu0 }
 0x57d   :  { %10682 = vst [vmem:[#allocation18_spill] sm:$0xff] %v9998_v6  ;;  %v7083_v6 = vld [vmem:[%s10435_s6 + $0x90] sm:$0xff] }
 0x57e   :  { %4776 = vmatpush.bf16.msra.mxu1 %v7083_v6 }
 0x57f   :  { %v9978_v55 = vpop.f32.mrf.mxu2  ;;  %v9980_v25 = vpop.f32.mrf.mxu3 }
 0x581   :  { %v10028_v1 = vpop.f32.mrf.mxu1 }
 0x582   :  { %10691 = vst [vmem:[#allocation47_spill] sm:$0xff] %v10028_v1  ;;  %v7077_v1 = vld [vmem:[%s10435_s6 + $0x60] sm:$0xff] }
 0x583   :  { %4725 = vmatpush.bf16.msra.mxu0 %v7077_v1  ;;  %v7066_v1 = vld [vmem:[%s10435_s6 + $0x8] sm:$0xff] }
 0x584   :  { %3989 = vmatmul.bf16.gmra.mxu2 %v9419_v54  ;;  %4038 = vmatmul.bf16.gmra.mxu3 %v9419_v54  ;;  %v10006_v11 = vpop.f32.mrf.mxu0 }
 0x585   :  { %10684 = vst [vmem:[#allocation43_spill] sm:$0xff] %v10006_v11 }
 0x587   :  { %v9988_v35 = vpop.f32.mrf.mxu2  ;;  %v9990_v2 = vpop.f32.mrf.mxu3 }
 0x58c   :  { %v10022_v11 = vpop.f32.mrf.mxu0 }
 0x58d   :  { %10688 = vst [vmem:[#allocation46_spill] sm:$0xff] %v10022_v11  ;;  %v7067_v11 = vld [vmem:[%s10435_s6 + $0x10] sm:$0xff] }
 0x58e   :  { %4546 = vmatpush.bf16.msra.mxu2 %v7067_v11  ;;  %v7076_v11 = vld [vmem:[%s10435_s6 + $0x58] sm:$0xff] }
 0x58f   :  { %v10002_v61 = vpop.f32.mrf.mxu2  ;;  %v10004_v54 = vpop.f32.mrf.mxu3  ;;  %4726 = vmatpush.bf16.msra.mxu0 %v7076_v11  ;;  %v7075_v11 = vld [vmem:[%s10435_s6 + $0x50] sm:$0xff] }
 0x592   :  { %4547 = vmatpush.bf16.msra.mxu2 %v7066_v1  ;;  %v7073_v1 = vld [vmem:[%s10435_s6 + $0x40] sm:$0xff] }
 0x593   :  { %4727 = vmatpush.bf16.msra.mxu0 %v7075_v11  ;;  %v3476_v11 = vadd.f32 %v9931_v12, %v9729_v59 }
 0x594   :  { %3994 = vmatmul.bf16.gmra.mxu2 %v9469_v34  ;;  %4043 = vmatmul.bf16.gmra.mxu3 %v9469_v34  ;;  %v10035_v58 = vpop.f32.mrf.mxu0 }
 0x595   :  { %10692 = vst [vmem:[#allocation48_spill] sm:$0xff] %v10035_v58 }
 0x597   :  { %v10012_v22 = vpop.f32.mrf.mxu2  ;;  %v10014_v13 = vpop.f32.mrf.mxu3 }
 0x598   :  { %10686 = vst [vmem:[#allocation45_spill] sm:$0xff] %v10012_v22 }
 0x599   :  { %10687 = vst [vmem:[#allocation20_spill] sm:$0xff] %v10014_v13 }
 0x59c   :  { %v10053_v6 = vpop.f32.mrf.mxu0 }
 0x59d   :  { %10698 = vst [vmem:[#allocation51_spill] sm:$0xff] %v10053_v6 }
 0x59f   :  { %v10024_v31 = vpop.f32.mrf.mxu2  ;;  %v10026_v34 = vpop.f32.mrf.mxu3 }
 0x5a0   :  { %10689 = vst [vmem:[#allocation21_spill] sm:$0xff] %v10024_v31 }
 0x5a1   :  { %10690 = vst [vmem:[#allocation22_spill] sm:$0xff] %v10026_v34 }
 0x5a4   :  { %3999 = vmatmul.bf16.gmra.mxu2 %v9539_v8  ;;  %4048 = vmatmul.bf16.gmra.mxu3 %v9539_v8  ;;  %v10047_v8 = vpop.f32.mrf.mxu1  ;;  %v4229_v13 = vpop.f32.mrf.mxu0 }
 0x5a5   :  { %10695 = vst [vmem:[#allocation50_spill] sm:$0xff] %v10047_v8 }
 0x5a7   :  { %v10037_v9 = vpop.f32.mrf.mxu2  ;;  %v10039_v49 = vpop.f32.mrf.mxu3 }
 0x5a8   :  { %10693 = vst [vmem:[#allocation49_spill] sm:$0xff] %v10037_v9 }
 0x5a9   :  { %10694 = vst [vmem:[#allocation23_spill] sm:$0xff] %v10039_v49 }
 0x5ac   :  { %v10055_v9 = vpop.f32.mrf.mxu1 }
 0x5ad   :  { %10699 = vst [vmem:[#allocation26_spill] sm:$0xff] %v10055_v9 }
 0x5af   :  { %v10049_v34 = vpop.f32.mrf.mxu2  ;;  %v10051_v58 = vpop.f32.mrf.mxu3 }
 0x5b0   :  { %10696 = vst [vmem:[#allocation24_spill] sm:$0xff] %v10049_v34  ;;  %v3474_v34 = vadd.f32 %v9921_v14, %v9710_v4  ;;  %v3786_v14 = vadd.f32 %v9803_v3, %v3476_v11 }
 0x5b1   :  { %10697 = vst [vmem:[#allocation25_spill] sm:$0xff] %v10051_v58 }
 0x5b4   :  { %4004 = vmatmul.bf16.gmra.mxu2 %v9696_v0  ;;  %4053 = vmatmul.bf16.gmra.mxu3 %v9696_v0  ;;  %v4278_v8 = vpop.f32.mrf.mxu1  ;;  %v7074_v0 = vld [vmem:[%s10435_s6 + $0x48] sm:$0xff] }
 0x5b5   :  { %4596 = vmatpush.bf16.msra.mxu3 %v7074_v0 }
 0x5b7   :  { %v10059_v49 = vpop.f32.mrf.mxu2  ;;  %v10061_v31 = vpop.f32.mrf.mxu3 }
 0x5b8   :  { %10700 = vst [vmem:[#allocation54_spill] sm:$0xff] %v10059_v49 }
 0x5b9   :  { %10701 = vst [vmem:[#allocation27_spill] sm:$0xff] %v10061_v31  ;;  %v4231_v31 = vpop.f32.mrf.mxu0  ;;  %4597 = vmatpush.bf16.msra.mxu3 %v7073_v1  ;;  %v3785_v1 = vadd.f32 %v9788_v46, %v3523_v24  ;;  %v10113_v24 = vperm.slane %v4350_v44, 1 }
 0x5bf   :  { %v10069_v6 = vpop.f32.mrf.mxu2  ;;  %v10071_v9 = vpop.f32.mrf.mxu3 }
 0x5c0   :  { %10702 = vst [vmem:[#allocation52_spill] sm:$0xff] %v10069_v6  ;;  %v4280_v6 = vpop.f32.mrf.mxu1 }
 0x5c1   :  { %10703 = vst [vmem:[#allocation53_spill] sm:$0xff] %v10071_v9  ;;  %v7065_v9 = vld [vmem:[%s10435_s6] sm:$0xff] }
 0x5c2   :  { %4548 = vmatpush.bf16.msra.mxu2 %v7065_v9  ;;  %v3784_v9 = vadd.f32 %v9786_v52, %v3474_v34  ;;  %v10111_v34 = vperm.slane %v4350_v44, 0 }
 0x5c4   :  { %4009 = vmatmul.bf16.gmra.mxu2 %v9691_v57  ;;  %4058 = vmatmul.bf16.gmra.mxu3 %v9691_v57  ;;  %v4234_v57 = vpop.f32.mrf.mxu0 }
 0x5c7   :  { %v10078_v49 = vpop.f32.mrf.mxu2  ;;  %v10080_v58 = vpop.f32.mrf.mxu3 }
 0x5c8   :  { %10704 = vst [vmem:[#allocation56_spill] sm:$0xff] %v10078_v49  ;;  %v4283_v49 = vpop.f32.mrf.mxu1 }
 0x5c9   :  { %10705 = vst [vmem:[#allocation55_spill] sm:$0xff] %v10080_v58 }
 0x5cc   :  { %v4236_v62 = vpop.f32.mrf.mxu0 }
 0x5cf   :  { %v10091_v0 = vpop.f32.mrf.mxu2  ;;  %v10093_v58 = vpop.f32.mrf.mxu3 }
 0x5d0   :  { %10706 = vst [vmem:[#allocation28_spill] sm:$0xff] %v10091_v0 }
 0x5d1   :  { %10707 = vst [vmem:[#allocation30_spill] sm:$0xff] %v10093_v58  ;;  %v3525_v58 = vadd.f32 %v9933_v33, %v9731_v18 }
 0x5d3   :  { %v3787_v47 = vadd.f32 %v9805_v17, %v3525_v58  ;;  %v3479_v17 = vadd.f32 %v9939_v42, %v9739_v23  ;;  %v3530_v42 = vadd.f32 %v9958_v48, %v9753_v30 }
 0x5d4   :  { %4312 = vmatmul.bf16.vlgmr.msrb.gmra.mxu3 %v9870_v41  ;;  %v4285_v41 = vpop.f32.mrf.mxu1 }
 0x5d7   :  { %v3975_v22 = vpop.f32.mrf.mxu2  ;;  %v4024_v28 = vpop.f32.mrf.mxu3 }
 0x5d8   :  { %v4064_v0 = vadd.f32 %v3975_v22, %v3784_v9  ;;  %v4065_v4 = vadd.f32 %v4024_v28, %v3785_v1  ;;  %v10115_v28 = vpop.f32.mrf.mxu0 }
 0x5da   :  { %v4318_v52 = vadd.f32 %v4229_v13, %v4064_v0  ;;  %v4319_v46 = vadd.f32 %v4278_v8, %v4065_v4  ;;  %v3528_v13 = vadd.f32 %v9941_v45, %v9741_v10  ;;  %v3481_v10 = vadd.f32 %v9956_v19, %v9751_v15 }
 0x5dc   :  { %v4356_v33 = vadd.f32 %v10111_v34, %v4318_v52  ;;  %v4357_v9 = vadd.f32 %v10113_v24, %v4319_v46  ;;  %v4288_v0 = vpop.f32.mrf.mxu1  ;;  %v3788_v46 = vadd.f32 %v9823_v56, %v3479_v17  ;;  %v3789_v23 = vadd.f32 %v9825_v26, %v3528_v13 }
 0x5dd   :  { %v3790_v56 = vadd.f32 %v9840_v27, %v3481_v10  ;;  %v3791_v26 = vadd.f32 %v9842_v7, %v3530_v42  ;;  %v3484_v13 = vadd.f32 %v9964_v29, %v9762_v20 }
 0x5de   :  { %v4388_v11 = vmax.f32 %v4356_v33, 0.0  ;;  %v4389_v4 = vmax.f32 %v4357_v9, 0.0 }
 0x5df   :  { %v3977_v59 = vpop.f32.mrf.mxu2  ;;  %v4026_v12 = vpop.f32.mrf.mxu3 }
 0x5e0   :  { %v4066_v18 = vadd.f32 %v3977_v59, %v3786_v14  ;;  %v4067_v22 = vadd.f32 %v4026_v12, %v3787_v47  ;;  %v4241_v12 = vpop.f32.mrf.mxu0 }
 0x5e2   :  { %v4320_v1 = vadd.f32 %v4231_v31, %v4066_v18  ;;  %v4321_v3 = vadd.f32 %v4280_v6, %v4067_v22 }
 0x5e4   :  { %v4358_v58 = vadd.f32 %v10111_v34, %v4320_v1  ;;  %v4359_v8 = vadd.f32 %v10113_v24, %v4321_v3  ;;  %v4290_v19 = vpop.f32.mrf.mxu1 }
 0x5e6   :  { %v4390_v44 = vmax.f32 %v4358_v58, 0.0  ;;  %v4391_v14 = vmax.f32 %v4359_v8, 0.0 }
 0x5e7   :  { %v3980_v47 = vpop.f32.mrf.mxu2  ;;  %v4029_v52 = vpop.f32.mrf.mxu3 }
 0x5e8   :  { %v4420_v31 = vpack.c.bf16 %v4390_v44, %v4388_v11  ;;  %v4421_v6 = vpack.c.bf16 %v4391_v14, %v4389_v4  ;;  %v4068_v45 = vadd.f32 %v3980_v47, %v3788_v46  ;;  %v4069_v59 = vadd.f32 %v4029_v52, %v3789_v23 }
 0x5ea   :  { %4549 = vmatmul.bf16.vlgmr.msra.gmra.mxu2 %v4420_v31  ;;  %6585 = vmatmul.msk.bf16.vlgmr.msra.gmra.mxu3 %vm4516_vm7, %v4421_v6  ;;  %v4322_v18 = vadd.f32 %v4234_v57, %v4068_v45  ;;  %v4323_v22 = vadd.f32 %v4283_v49, %v4069_v59  ;;  %v3533_v49 = vadd.f32 %v9966_v36, %v9764_v60  ;;  %v4244_v57 = vpop.f32.mrf.mxu0 }
 0x5eb   :  { %4728 = vmatmul.bf16.vlgmr.msra.gmra.mxu0 %v4420_v31  ;;  %6653 = vmatmul.msk.bf16.vlgmr.msra.gmra.mxu1 %vm4516_vm7, %v4421_v6  ;;  %v3486_v60 = vadd.f32 %v9978_v55, %v9775_v40  ;;  %v3535_v36 = vadd.f32 %v9980_v25, %v9777_v63 }
 0x5ec   :  { %v4360_v48 = vadd.f32 %v10111_v34, %v4322_v18  ;;  %v4361_v1 = vadd.f32 %v10113_v24, %v4323_v22  ;;  %v4293_v29 = vpop.f32.mrf.mxu1  ;;  %v3489_v18 = vadd.f32 %v9988_v35, %v9790_v51 }
 0x5ed   :  { %v3794_v6 = vadd.f32 %v9882_v38, %v3486_v60  ;;  %v3795_v46 = vadd.f32 %v9887_v39, %v3535_v36 }
 0x5ee   :  { %v4392_v58 = vmax.f32 %v4360_v48, 0.0  ;;  %v4393_v8 = vmax.f32 %v4361_v1, 0.0 }
 0x5ef   :  { %v3982_v33 = vpop.f32.mrf.mxu2  ;;  %v4031_v15 = vpop.f32.mrf.mxu3 }
 0x5f0   :  { %v4070_v9 = vadd.f32 %v3982_v33, %v3790_v56  ;;  %v4071_v30 = vadd.f32 %v4031_v15, %v3791_v26 }
 0x5f2   :  { %v4324_v3 = vadd.f32 %v4236_v62, %v4070_v9  ;;  %v4325_v17 = vadd.f32 %v4285_v41, %v4071_v30  ;;  %v3792_v62 = vadd.f32 %v9863_v32, %v3484_v13  ;;  %v3793_v41 = vadd.f32 %v9865_v37, %v3533_v49  ;;  %v4246_v23 = vpop.f32.mrf.mxu0  ;;  %v10708_v13 = vld [vmem:[#allocation15_spill] sm:$0xff] }
 0x5f4   :  { %v4362_v27 = vadd.f32 %v10111_v34, %v4324_v3  ;;  %v4363_v7 = vadd.f32 %v10113_v24, %v4325_v17  ;;  %v4295_v38 = vpop.f32.mrf.mxu1 }
 0x5f6   :  { %v4395_v11 = vmax.f32 %v4363_v7, 0.0  ;;  %v4394_v4 = vmax.f32 %v4362_v27, 0.0 }
 0x5f7   :  { %v3985_v44 = vpop.f32.mrf.mxu2  ;;  %v4034_v14 = vpop.f32.mrf.mxu3 }
 0x5f8   :  { %v4422_v47 = vpack.c.bf16 %v4394_v4, %v4392_v58  ;;  %v4423_v20 = vpack.c.bf16 %v4395_v11, %v4393_v8  ;;  %v4072_v52 = vadd.f32 %v3985_v44, %v3792_v62  ;;  %v4073_v31 = vadd.f32 %v4034_v14, %v3793_v41  ;;  %v10709_v11 = vld [vmem:[#allocation8_spill] sm:$0xff]  ;;  %v10710_v4 = vld [vmem:[#allocation45_spill] sm:$0xff]  ;;  %v10711_v14 = vld [vmem:[#allocation7_spill] sm:$0xff] }
 0x5f9   :  { %v3494_v44 = vadd.f32 %v10710_v4, %v10709_v11  ;;  %v10726_v4 = vld [vmem:[#allocation42_spill] sm:$0xff] }
 0x5fa   :  { %4554 = vmatmul.bf16.gmra.mxu2 %v4422_v47  ;;  %6586 = vmatmul.msk.bf16.gmra.mxu3 %vm4516_vm7, %v4423_v20  ;;  %v4326_v32 = vadd.f32 %v10115_v28, %v4072_v52  ;;  %v4327_v37 = vadd.f32 %v4288_v0, %v4073_v31  ;;  %v3538_v28 = vadd.f32 %v9990_v2, %v9792_v5  ;;  %v4249_v35 = vpop.f32.mrf.mxu0 }
 0x5fb   :  { %4733 = vmatmul.bf16.gmra.mxu0 %v4422_v47  ;;  %6654 = vmatmul.msk.bf16.gmra.mxu1 %vm4516_vm7, %v4423_v20  ;;  %v3491_v5 = vadd.f32 %v10002_v61, %v9807_v50  ;;  %v3540_v2 = vadd.f32 %v10004_v54, %v9809_v16 }
 0x5fc   :  { %v4364_v10 = vadd.f32 %v10111_v34, %v4326_v32  ;;  %v4365_v42 = vadd.f32 %v10113_v24, %v4327_v37  ;;  %v10713_v37 = vld [vmem:[#allocation39_spill] sm:$0xff] }
 0x5fd   :  { %v3798_v17 = vadd.f32 %v9905_v21, %v3491_v5  ;;  %v3799_v49 = vadd.f32 %v10708_v13, %v3540_v2 }
 0x5fe   :  { %v4396_v22 = vmax.f32 %v4364_v10, 0.0  ;;  %v4397_v56 = vmax.f32 %v4365_v42, 0.0  ;;  %v10717_v42 = vld [vmem:[#allocation9_spill] sm:$0xff] }
 0x5ff   :  { %v3987_v40 = vpop.f32.mrf.mxu2  ;;  %v4036_v55 = vpop.f32.mrf.mxu3 }
 0x600   :  { %v4074_v63 = vadd.f32 %v3987_v40, %v3794_v6  ;;  %v4075_v25 = vadd.f32 %v4036_v55, %v3795_v46  ;;  %v3800_v6 = vadd.f32 %v10713_v37, %v3494_v44  ;;  %v10714_v46 = vld [vmem:[#allocation40_spill] sm:$0xff]  ;;  %v10731_v37 = vld [vmem:[#allocation18_spill] sm:$0xff] }
 0x602   :  { %v4328_v45 = vadd.f32 %v4241_v12, %v4074_v63  ;;  %v4329_v59 = vadd.f32 %v4290_v19, %v4075_v25  ;;  %v3796_v12 = vadd.f32 %v9896_v43, %v3489_v18  ;;  %v3797_v19 = vadd.f32 %v9935_v53, %v3538_v28  ;;  %v4298_v43 = vpop.f32.mrf.mxu1  ;;  %v4251_v41 = vpop.f32.mrf.mxu0  ;;  %v10715_v63 = vld [vmem:[#allocation6_spill] sm:$0xff]  ;;  %v10716_v25 = vld [vmem:[#allocation21_spill] sm:$0xff] }
 0x603   :  { %v3496_v10 = vadd.f32 %v10716_v25, %v10715_v63 }
 0x604   :  { %v4366_v39 = vadd.f32 %v10111_v34, %v4328_v45  ;;  %v4367_v0 = vadd.f32 %v10113_v24, %v4329_v59  ;;  %v10718_v45 = vld [vmem:[#allocation22_spill] sm:$0xff] }
 0x605   :  { %v3545_v59 = vadd.f32 %v10718_v45, %v10717_v42 }
 0x606   :  { %v4399_v26 = vmax.f32 %v4367_v0, 0.0  ;;  %v4398_v33 = vmax.f32 %v4366_v39, 0.0 }
 0x607   :  { %v3990_v15 = vpop.f32.mrf.mxu2  ;;  %v4039_v9 = vpop.f32.mrf.mxu3 }
 0x608   :  { %v4424_v30 = vpack.c.bf16 %v4398_v33, %v4396_v22  ;;  %v4425_v51 = vpack.c.bf16 %v4399_v26, %v4397_v56  ;;  %v4076_v48 = vadd.f32 %v3990_v15, %v3796_v12  ;;  %v4077_v1 = vadd.f32 %v4039_v9, %v3797_v19  ;;  %v10719_v22 = vld [vmem:[#allocation16_spill] sm:$0xff]  ;;  %v10720_v26 = vld [vmem:[#allocation41_spill] sm:$0xff] }
 0x609   :  { %v3802_v56 = vadd.f32 %v10719_v22, %v3496_v10  ;;  %v3803_v33 = vadd.f32 %v10720_v26, %v3545_v59  ;;  %v10736_v22 = vld [vmem:[#allocation27_spill] sm:$0xff] }
 0x60a   :  { %4559 = vmatmul.bf16.gmra.mxu2 %v4424_v30  ;;  %6587 = vmatmul.msk.bf16.gmra.mxu3 %vm4516_vm7, %v4425_v51  ;;  %v4330_v3 = vadd.f32 %v4244_v57, %v4076_v48  ;;  %v4331_v53 = vadd.f32 %v4293_v29, %v4077_v1  ;;  %v10712_v57 = vld [vmem:[#allocation20_spill] sm:$0xff]  ;;  %v4300_v32 = vpop.f32.mrf.mxu1 }
 0x60b   :  { %4738 = vmatmul.bf16.gmra.mxu0 %v4424_v30  ;;  %6655 = vmatmul.msk.bf16.gmra.mxu1 %vm4516_vm7, %v4425_v51  ;;  %v3543_v62 = vadd.f32 %v10712_v57, %v10711_v14  ;;  %v10721_v1 = vld [vmem:[#allocation32_spill] sm:$0xff] }
 0x60c   :  { %v4368_v54 = vadd.f32 %v10111_v34, %v4330_v3  ;;  %v4369_v7 = vadd.f32 %v10113_v24, %v4331_v53  ;;  %v10722_v3 = vld [vmem:[#allocation49_spill] sm:$0xff] }
 0x60d   :  { %v3801_v40 = vadd.f32 %v10714_v46, %v3543_v62  ;;  %v3499_v53 = vadd.f32 %v10722_v3, %v10721_v1  ;;  %v10727_v62 = vld [vmem:[#allocation11_spill] sm:$0xff]  ;;  %v10738_v1 = vld [vmem:[#allocation44_spill] sm:$0xff] }
 0x60e   :  { %v4400_v20 = vmax.f32 %v4368_v54, 0.0  ;;  %v4401_v60 = vmax.f32 %v4369_v7, 0.0  ;;  %v10732_v46 = vld [vmem:[#allocation19_spill] sm:$0xff] }
 0x60f   :  { %v3992_v50 = vpop.f32.mrf.mxu2  ;;  %v4041_v61 = vpop.f32.mrf.mxu3 }
 0x610   :  { %v4078_v27 = vadd.f32 %v3992_v50, %v3798_v17  ;;  %v4079_v16 = vadd.f32 %v4041_v61, %v3799_v49 }
 0x612   :  { %v4332_v58 = vadd.f32 %v4246_v23, %v4078_v27  ;;  %v4333_v8 = vadd.f32 %v4295_v38, %v4079_v16  ;;  %v4254_v38 = vpop.f32.mrf.mxu0  ;;  %v4303_v30 = vpop.f32.mrf.mxu1 }
 0x614   :  { %v4370_v21 = vadd.f32 %v10111_v34, %v4332_v58  ;;  %v4371_v47 = vadd.f32 %v10113_v24, %v4333_v8  ;;  %v10725_v8 = vld [vmem:[#allocation17_spill] sm:$0xff] }
 0x615   :  { %v3804_v11 = vadd.f32 %v10725_v8, %v3499_v53  ;;  %v10743_v8 = vld [vmem:[#allocation46_spill] sm:$0xff] }
 0x616   :  { %v4403_v36 = vmax.f32 %v4371_v47, 0.0  ;;  %v4402_v29 = vmax.f32 %v4370_v21, 0.0  ;;  %v10729_v47 = vld [vmem:[#allocation10_spill] sm:$0xff] }
 0x617   :  { %v3995_v52 = vpop.f32.mrf.mxu2  ;;  %v4044_v31 = vpop.f32.mrf.mxu3 }
 0x618   :  { %v4426_v55 = vpack.c.bf16 %v4402_v29, %v4400_v20  ;;  %v4427_v23 = vpack.c.bf16 %v4403_v36, %v4401_v60  ;;  %v4080_v18 = vadd.f32 %v3995_v52, %v3800_v6  ;;  %v4081_v28 = vadd.f32 %v4044_v31, %v3801_v40  ;;  %v10730_v20 = vld [vmem:[#allocation25_spill] sm:$0xff] }
 0x619   :  { %v3550_v60 = vadd.f32 %v10730_v20, %v10729_v47 }
 0x61a   :  { %4564 = vmatmul.bf16.gmra.mxu2 %v4426_v55  ;;  %6588 = vmatmul.msk.bf16.gmra.mxu3 %vm4516_vm7, %v4427_v23  ;;  %v4334_v39 = vadd.f32 %v4249_v35, %v4080_v18  ;;  %v4335_v0 = vadd.f32 %v4298_v43, %v4081_v28  ;;  %v10723_v35 = vld [vmem:[#allocation33_spill] sm:$0xff]  ;;  %v10724_v43 = vld [vmem:[#allocation23_spill] sm:$0xff]  ;;  %v4256_v58 = vpop.f32.mrf.mxu0  ;;  %v4305_v52 = vpop.f32.mrf.mxu1  ;;  %v10733_v28 = vld [vmem:[#allocation34_spill] sm:$0xff] }
 0x61b   :  { %4743 = vmatmul.bf16.gmra.mxu0 %v4426_v55  ;;  %6656 = vmatmul.msk.bf16.gmra.mxu1 %vm4516_vm7, %v4427_v23  ;;  %v3548_v17 = vadd.f32 %v10724_v43, %v10723_v35  ;;  %v3807_v40 = vadd.f32 %v10732_v46, %v3550_v60  ;;  %v10739_v43 = vld [vmem:[#allocation35_spill] sm:$0xff] }
 0x61c   :  { %v4372_v51 = vadd.f32 %v10111_v34, %v4334_v39  ;;  %v4373_v5 = vadd.f32 %v10113_v24, %v4335_v0  ;;  %v10734_v39 = vld [vmem:[#allocation54_spill] sm:$0xff] }
 0x61d   :  { %v3805_v44 = vadd.f32 %v10726_v4, %v3548_v17  ;;  %v3504_v0 = vadd.f32 %v10734_v39, %v10733_v28  ;;  %v10740_v17 = vld [vmem:[#allocation52_spill] sm:$0xff]  ;;  %v10744_v4 = vld [vmem:[#allocation47_spill] sm:$0xff] }
 0x61e   :  { %v4404_v50 = vmax.f32 %v4372_v51, 0.0  ;;  %v4405_v61 = vmax.f32 %v4373_v5, 0.0  ;;  %v10749_v28 = vld [vmem:[#allocation28_spill] sm:$0xff] }
 0x61f   :  { %v3997_v15 = vpop.f32.mrf.mxu2  ;;  %v4046_v9 = vpop.f32.mrf.mxu3 }
 0x620   :  { %v4082_v12 = vadd.f32 %v3997_v15, %v3802_v56  ;;  %v4083_v19 = vadd.f32 %v4046_v9, %v3803_v33 }
 0x622   :  { %v4336_v2 = vadd.f32 %v4251_v41, %v4082_v12  ;;  %v4337_v48 = vadd.f32 %v4300_v32, %v4083_v19  ;;  %v10728_v41 = vld [vmem:[#allocation24_spill] sm:$0xff]  ;;  %v4259_v10 = vpop.f32.mrf.mxu0  ;;  %v4308_v15 = vpop.f32.mrf.mxu1 }
 0x623   :  { %v3501_v21 = vadd.f32 %v10728_v41, %v10727_v62 }
 0x624   :  { %v4374_v13 = vadd.f32 %v10111_v34, %v4336_v2  ;;  %v4375_v49 = vadd.f32 %v10113_v24, %v4337_v48  ;;  %v10737_v2 = vld [vmem:[#allocation43_spill] sm:$0xff] }
 0x625   :  { %v3806_v6 = vadd.f32 %v10731_v37, %v3501_v21  ;;  %v3808_v48 = vadd.f32 %v10737_v2, %v3504_v0 }
 0x626   :  { %v4407_v27 = vmax.f32 %v4375_v49, 0.0  ;;  %v4406_v16 = vmax.f32 %v4374_v13, 0.0  ;;  %v3506_v13 = vadd.f32 %v10740_v17, %v10739_v43  ;;  %v10741_v49 = vld [vmem:[#allocation36_spill] sm:$0xff]  ;;  %v10755_v17 = vld [vmem:[#allocation50_spill] sm:$0xff] }
 0x627   :  { %v4000_v54 = vpop.f32.mrf.mxu2  ;;  %v4049_v7 = vpop.f32.mrf.mxu3 }
 0x628   :  { %v4428_v14 = vpack.c.bf16 %v4406_v16, %v4404_v50  ;;  %v4429_v57 = vpack.c.bf16 %v4407_v27, %v4405_v61  ;;  %v4084_v36 = vadd.f32 %v4000_v54, %v3804_v11  ;;  %v4085_v29 = vadd.f32 %v4049_v7, %v3805_v44  ;;  %v10742_v50 = vld [vmem:[#allocation53_spill] sm:$0xff] }
 0x629   :  { %v3555_v61 = vadd.f32 %v10742_v50, %v10741_v49  ;;  %v3810_v11 = vadd.f32 %v10743_v8, %v3506_v13 }
 0x62a   :  { %4569 = vmatmul.bf16.gmra.mxu2 %v4428_v14  ;;  %6589 = vmatmul.msk.bf16.gmra.mxu3 %vm4516_vm7, %v4429_v57  ;;  %v4338_v31 = vadd.f32 %v4254_v38, %v4084_v36  ;;  %v4339_v32 = vadd.f32 %v4303_v30, %v4085_v29  ;;  %v10735_v38 = vld [vmem:[#allocation12_spill] sm:$0xff]  ;;  %v4261_v54 = vpop.f32.mrf.mxu0  ;;  %v4310_v21 = vpop.f32.mrf.mxu1  ;;  %v10745_v29 = vld [vmem:[#allocation13_spill] sm:$0xff] }
 0x62b   :  { %4748 = vmatmul.bf16.gmra.mxu0 %v4428_v14  ;;  %6657 = vmatmul.msk.bf16.gmra.mxu1 %vm4516_vm7, %v4429_v57  ;;  %v3553_v56 = vadd.f32 %v10736_v22, %v10735_v38  ;;  %v3811_v44 = vadd.f32 %v10744_v4, %v3555_v61  ;;  %v10750_v22 = vld [vmem:[#allocation51_spill] sm:$0xff]  ;;  %v10756_v61 = vld [vmem:[#allocation26_spill] sm:$0xff] }
 0x62c   :  { %v4376_v42 = vadd.f32 %v10111_v34, %v4338_v31  ;;  %v4377_v45 = vadd.f32 %v10113_v24, %v4339_v32 }
 0x62d   :  { %v3809_v3 = vadd.f32 %v10738_v1, %v3553_v56 }
 0x62e   :  { %v4408_v9 = vmax.f32 %v4376_v42, 0.0  ;;  %v4409_v12 = vmax.f32 %v4377_v45, 0.0 }
 0x62f   :  { %v4002_v55 = vpop.f32.mrf.mxu2  ;;  %v4051_v23 = vpop.f32.mrf.mxu3 }
 0x630   :  { %v4086_v63 = vadd.f32 %v4002_v55, %v3806_v6  ;;  %v4087_v25 = vadd.f32 %v4051_v23, %v3807_v40 }
 0x632   :  { %v4340_v59 = vadd.f32 %v4256_v58, %v4086_v63  ;;  %v4341_v18 = vadd.f32 %v4305_v52, %v4087_v25  ;;  %v10746_v52 = vld [vmem:[#allocation56_spill] sm:$0xff]  ;;  %v4264_v6 = vpop.f32.mrf.mxu0 }
 0x633   :  { %v3509_v31 = vadd.f32 %v10746_v52, %v10745_v29 }
 0x634   :  { %v4378_v26 = vadd.f32 %v10111_v34, %v4340_v59  ;;  %v4379_v33 = vadd.f32 %v10113_v24, %v4341_v18  ;;  %v10748_v18 = vld [vmem:[#allocation14_spill] sm:$0xff] }
 0x635   :  { %v3511_v39 = vadd.f32 %v10749_v28, %v10748_v18  ;;  %v7092_v28 = vld [vmem:[%s10437_s7 + $0x38] sm:$0xff] }
 0x636   :  { %v4411_v19 = vmax.f32 %v4379_v33, 0.0  ;;  %v4410_v30 = vmax.f32 %v4378_v26, 0.0  ;;  %5048 = vmatpush.bf16.msrb.mxu3 %v7092_v28 }
 0x637   :  { %v4005_v51 = vpop.f32.mrf.mxu2  ;;  %v4054_v5 = vpop.f32.mrf.mxu3  ;;  %v3814_v56 = vadd.f32 %v10750_v22, %v3511_v39  ;;  %v7099_v39 = vld [vmem:[%s10437_s7 + $0x70] sm:$0xff] }
 0x638   :  { %v4430_v53 = vpack.c.bf16 %v4410_v30, %v4408_v9  ;;  %v4431_v35 = vpack.c.bf16 %v4411_v19, %v4409_v12  ;;  %v4088_v27 = vadd.f32 %v4005_v51, %v3808_v48  ;;  %v4089_v16 = vadd.f32 %v4054_v5, %v3809_v3  ;;  %v10751_v30 = vld [vmem:[#allocation37_spill] sm:$0xff]  ;;  %v10752_v51 = vld [vmem:[#allocation55_spill] sm:$0xff] }
 0x639   :  { %v3558_v5 = vadd.f32 %v10752_v51, %v10751_v30 }
 0x63a   :  { %4574 = vmatmul.bf16.gmra.mxu2 %v4430_v53  ;;  %6590 = vmatmul.msk.bf16.gmra.mxu3 %vm4516_vm7, %v4431_v35  ;;  %v4342_v7 = vadd.f32 %v4259_v10, %v4088_v27  ;;  %v4343_v58 = vadd.f32 %v4308_v15, %v4089_v16  ;;  %v10747_v10 = vld [vmem:[#allocation48_spill] sm:$0xff]  ;;  %v4266_v9 = vpop.f32.mrf.mxu0 }
 0x63b   :  { %4753 = vmatmul.bf16.gmra.mxu0 %v4430_v53  ;;  %6658 = vmatmul.msk.bf16.gmra.mxu1 %vm4516_vm7, %v4431_v35  ;;  %v3812_v42 = vadd.f32 %v10747_v10, %v3509_v31  ;;  %v10753_v53 = vld [vmem:[#allocation38_spill] sm:$0xff]  ;;  %v3813_v13 = vadd.f32 %v10755_v17, %v3558_v5 }
 0x63c   :  { %v4380_v47 = vadd.f32 %v10111_v34, %v4342_v7  ;;  %v4381_v20 = vadd.f32 %v10113_v24, %v4343_v58  ;;  %v10754_v35 = vld [vmem:[#allocation30_spill] sm:$0xff] }
 0x63d   :  { %v3560_v43 = vadd.f32 %v10754_v35, %v10753_v53  ;;  %v7091_v53 = vld [vmem:[%s10437_s7 + $0x30] sm:$0xff]  ;;  %v7098_v35 = vld [vmem:[%s10437_s7 + $0x68] sm:$0xff] }
 0x63e   :  { %v4412_v46 = vmax.f32 %v4380_v47, 0.0  ;;  %v4413_v40 = vmax.f32 %v4381_v20, 0.0  ;;  %5049 = vmatpush.bf16.msrb.mxu3 %v7091_v53 }
 0x63f   :  { %v4007_v14 = vpop.f32.mrf.mxu2  ;;  %v4056_v57 = vpop.f32.mrf.mxu3  ;;  %v3815_v27 = vadd.f32 %v10756_v61, %v3560_v43 }
 0x640   :  { %v4090_v62 = vadd.f32 %v4007_v14, %v3810_v11  ;;  %v4091_v41 = vadd.f32 %v4056_v57, %v3811_v44 }
 0x642   :  { %v4344_v60 = vadd.f32 %v4261_v54, %v4090_v62  ;;  %v4345_v36 = vadd.f32 %v4310_v21, %v4091_v41 }
 0x644   :  { %v4382_v32 = vadd.f32 %v10111_v34, %v4344_v60  ;;  %v4383_v37 = vadd.f32 %v10113_v24, %v4345_v36 }
 0x646   :  { %v4415_v55 = vmax.f32 %v4383_v37, 0.0  ;;  %v4414_v23 = vmax.f32 %v4382_v32, 0.0 }
 0x647   :  { %v4010_v63 = vpop.f32.mrf.mxu2  ;;  %v4059_v25 = vpop.f32.mrf.mxu3 }
 0x648   :  { %v4432_v45 = vpack.c.bf16 %v4414_v23, %v4412_v46  ;;  %v4433_v59 = vpack.c.bf16 %v4415_v55, %v4413_v40  ;;  %v4092_v0 = vadd.f32 %v4010_v63, %v3812_v42  ;;  %v4093_v50 = vadd.f32 %v4059_v25, %v3813_v13 }
 0x64a   :  { %4579 = vmatmul.bf16.gmra.mxu2 %v4432_v45  ;;  %6591 = vmatmul.msk.bf16.gmra.mxu3 %vm4516_vm7, %v4433_v59  ;;  %v4346_v38 = vadd.f32 %v4264_v6, %v4092_v0 }
 0x64b   :  { %4758 = vmatmul.bf16.gmra.mxu0 %v4432_v45  ;;  %6659 = vmatmul.msk.bf16.gmra.mxu1 %vm4516_vm7, %v4433_v59 }
 0x64c   :  { %v4384_v12 = vadd.f32 %v10111_v34, %v4346_v38 }
 0x64e   :  { %v4416_v48 = vmax.f32 %v4384_v12, 0.0 }
 0x64f   :  { %v4012_v26 = vpop.f32.mrf.mxu2  ;;  %v4061_v33 = vpop.f32.mrf.mxu3 }
 0x650   :  { %v4094_v15 = vadd.f32 %v4012_v26, %v3814_v56  ;;  %v4095_v54 = vadd.f32 %v4061_v33, %v3815_v27 }
 0x652   :  { %v4348_v19 = vadd.f32 %v4266_v9, %v4094_v15 }
 0x654   :  { %v4386_v2 = vadd.f32 %v10111_v34, %v4348_v19 }
 0x656   :  { %v4418_v1 = vmax.f32 %v4386_v2, 0.0 }
 0x657   :  { %v4313_v3 = vpop.f32.mrf.mxu3 }
 0x658   :  { %v4434_v49 = vpack.c.bf16 %v4418_v1, %v4416_v48  ;;  %v4347_v16 = vadd.f32 %v4313_v3, %v4093_v50 }
 0x65a   :  { %4584 = vmatmul.bf16.gmra.mxu2 %v4434_v49  ;;  %v4385_v58 = vadd.f32 %v10113_v24, %v4347_v16 }
 0x65b   :  { %4763 = vmatmul.bf16.gmra.mxu0 %v4434_v49 }
 0x65c   :  { %v4417_v11 = vmax.f32 %v4385_v58, 0.0 }
 0x65f   :  { %v4315_v7 = vpop.f32.mrf.mxu3 }
 0x660   :  { %v4349_v34 = vadd.f32 %v4315_v7, %v4095_v54 }
 0x662   :  { %v4387_v8 = vadd.f32 %v10113_v24, %v4349_v34  ;;  %v7100_v24 = vld [vmem:[%s10437_s7 + $0x78] sm:$0xff] }
 0x663   :  { %4987 = vmatpush.bf16.msrb.mxu2 %v7100_v24 }
 0x664   :  { %v4419_v4 = vmax.f32 %v4387_v8, 0.0 }
 0x666   :  { %v4435_v44 = vpack.c.bf16 %v4419_v4, %v4417_v11 }
 0x667   :  { %4988 = vmatpush.bf16.msrb.mxu2 %v7099_v39 }
 0x668   :  { %v4729_v14 = vpop.f32.mrf.mxu0  ;;  %v4778_v57 = vpop.f32.mrf.mxu1  ;;  %6592 = vmatmul.msk.bf16.gmra.mxu3 %vm4516_vm7, %v4435_v44  ;;  %6660 = vmatmul.msk.bf16.gmra.mxu1 %vm4516_vm7, %v4435_v44 }
 0x669   :  { %v4779_v21 = vadd.f32 %v4778_v57, %v4729_v14  ;;  %v7090_v57 = vld [vmem:[%s10437_s7 + $0x28] sm:$0xff] }
 0x66a   :  { %5050 = vmatpush.bf16.msrb.mxu3 %v7090_v57 }
 0x66b   :  { %4989 = vmatpush.bf16.msrb.mxu2 %v7098_v35 }
 0x66d   :  { %v4550_v62 = vpop.f32.mrf.mxu2  ;;  %v4599_v41 = vpop.f32.mrf.mxu3 }
 0x66e   :  { %v4600_v47 = vadd.f32 %v4599_v41, %v4550_v62  ;;  %v7097_v62 = vld [vmem:[%s10437_s7 + $0x60] sm:$0xff] }
 0x66f   :  { %4990 = vmatpush.bf16.msrb.mxu2 %v7097_v62  ;;  %v7107_v62 = vld [vmem:[%s10437_s7 + $0xb0] sm:$0xff] }
 0x670   :  { %v4818_v20 = vmax.f32 %v4600_v47, %v4779_v21  ;;  %v4731_v60 = vpop.f32.mrf.mxu0  ;;  %v4780_v36 = vpop.f32.mrf.mxu1 }
 0x671   :  { %v4781_v31 = vadd.f32 %v4780_v36, %v4731_v60 }
 0x672   :  { %4834 = vst [vmem:[#allocation4] sm:$0xff] %v4818_v20 }
 0x675   :  { %v4552_v29 = vpop.f32.mrf.mxu2  ;;  %v4601_v52 = vpop.f32.mrf.mxu3 }
 0x676   :  { %v4602_v32 = vadd.f32 %v4601_v52, %v4552_v29 }
 0x678   :  { %v4819_v37 = vmax.f32 %v4602_v32, %v4781_v31  ;;  %v4734_v6 = vpop.f32.mrf.mxu0  ;;  %v4783_v46 = vpop.f32.mrf.mxu1 }
 0x679   :  { %v4784_v23 = vadd.f32 %v4783_v46, %v4734_v6 }
 0x67a   :  { %4835 = vst [vmem:[#allocation4 + $0x8] sm:$0xff] %v4819_v37 }
 0x67d   :  { %v4555_v40 = vpop.f32.mrf.mxu2  ;;  %v4604_v55 = vpop.f32.mrf.mxu3 }
 0x67e   :  { %v4605_v63 = vadd.f32 %v4604_v55, %v4555_v40 }
 0x680   :  { %v4820_v25 = vmax.f32 %v4605_v63, %v4784_v23  ;;  %v4736_v10 = vpop.f32.mrf.mxu0  ;;  %v4785_v42 = vpop.f32.mrf.mxu1  ;;  %v7089_v63 = vld [vmem:[%s10437_s7 + $0x20] sm:$0xff] }
 0x681   :  { %v4851_v45 = vld [vmem:[#allocation4] ss:$2 sm:$0xff]  ;;  %v4867_v59 = vld [vmem:[#allocation4 + $0x1] ss:$2 sm:$0xff]  ;;  %v4786_v22 = vadd.f32 %v4785_v42, %v4736_v10  ;;  %5051 = vmatpush.bf16.msrb.mxu3 %v7089_v63 }
 0x682   :  { %v4882_v18 = vmax.f32 %v4851_v45, %v4867_v59  ;;  %4836 = vst [vmem:[#allocation4 + $0x10] sm:$0xff] %v4820_v25  ;;  %v7096_v25 = vld [vmem:[%s10437_s7 + $0x58] sm:$0xff]  ;;  %v7113_v63 = vld [vmem:[%s10437_s7 + $0xe0] sm:$0xff] }
 0x683   :  { %4991 = vmatpush.bf16.msrb.mxu2 %v7096_v25 }
 0x684   :  { %4890 = vst [vmem:[#allocation5] sm:$0xff] %v4882_v18 }
 0x685   :  { %v4557_v0 = vpop.f32.mrf.mxu2  ;;  %v4606_v38 = vpop.f32.mrf.mxu3 }
 0x686   :  { %v4607_v56 = vadd.f32 %v4606_v38, %v4557_v0 }
 0x688   :  { %v4821_v26 = vmax.f32 %v4607_v56, %v4786_v22  ;;  %v4739_v33 = vpop.f32.mrf.mxu0  ;;  %v4788_v15 = vpop.f32.mrf.mxu1 }
 0x689   :  { %v4789_v19 = vadd.f32 %v4788_v15, %v4739_v33 }
 0x68a   :  { %4837 = vst [vmem:[#allocation4 + $0x18] sm:$0xff] %v4821_v26 }
 0x68d   :  { %v4560_v9 = vpop.f32.mrf.mxu2  ;;  %v4609_v12 = vpop.f32.mrf.mxu3 }
 0x68e   :  { %v4610_v30 = vadd.f32 %v4609_v12, %v4560_v9 }
 0x690   :  { %v4822_v51 = vmax.f32 %v4610_v30, %v4789_v19  ;;  %v4741_v5 = vpop.f32.mrf.mxu0  ;;  %v4790_v2 = vpop.f32.mrf.mxu1  ;;  %v7088_v30 = vld [vmem:[%s10437_s7 + $0x18] sm:$0xff] }
 0x691   :  { %v4853_v48 = vld [vmem:[#allocation4 + $0x10] ss:$2 sm:$0xff]  ;;  %v4869_v1 = vld [vmem:[#allocation4 + $0x11] ss:$2 sm:$0xff]  ;;  %v4791_v13 = vadd.f32 %v4790_v2, %v4741_v5  ;;  %5052 = vmatpush.bf16.msrb.mxu3 %v7088_v30 }
 0x692   :  { %v4883_v3 = vmax.f32 %v4853_v48, %v4869_v1  ;;  %4838 = vst [vmem:[#allocation4 + $0x20] sm:$0xff] %v4822_v51  ;;  %v7095_v51 = vld [vmem:[%s10437_s7 + $0x50] sm:$0xff] }
 0x693   :  { %4992 = vmatpush.bf16.msrb.mxu2 %v7095_v51 }
 0x694   :  { %4891 = vst [vmem:[#allocation5 + $0x8] sm:$0xff] %v4883_v3 }
 0x695   :  { %v4562_v43 = vpop.f32.mrf.mxu2  ;;  %v4611_v17 = vpop.f32.mrf.mxu3 }
 0x696   :  { %v4612_v49 = vadd.f32 %v4611_v17, %v4562_v43 }
 0x698   :  { %v4823_v50 = vmax.f32 %v4612_v49, %v4791_v13  ;;  %v4744_v61 = vpop.f32.mrf.mxu0  ;;  %v4793_v27 = vpop.f32.mrf.mxu1  ;;  %v7094_v13 = vld [vmem:[%s10437_s7 + $0x48] sm:$0xff] }
 0x699   :  { %v4794_v7 = vadd.f32 %v4793_v27, %v4744_v61  ;;  %4993 = vmatpush.bf16.msrb.mxu2 %v7094_v13  ;;  %v7087_v27 = vld [vmem:[%s10437_s7 + $0x10] sm:$0xff]  ;;  %v7122_v13 = vld [vmem:[%s10437_s7 + $0x128] sm:$0xff] }
 0x69a   :  { %4839 = vst [vmem:[#allocation4 + $0x28] sm:$0xff] %v4823_v50  ;;  %5053 = vmatpush.bf16.msrb.mxu3 %v7087_v27  ;;  %v7121_v27 = vld [vmem:[%s10437_s7 + $0x120] sm:$0xff] }
 0x69d   :  { %v4565_v16 = vpop.f32.mrf.mxu2  ;;  %v4614_v54 = vpop.f32.mrf.mxu3 }
 0x69e   :  { %v4615_v58 = vadd.f32 %v4614_v54, %v4565_v16  ;;  %v7093_v16 = vld [vmem:[%s10437_s7 + $0x40] sm:$0xff]  ;;  %v7108_v54 = vld [vmem:[%s10437_s7 + $0xb8] sm:$0xff] }
 0x69f   :  { %4994 = vmatpush.bf16.msrb.mxu2 %v7093_v16 }
 0x6a0   :  { %v4824_v34 = vmax.f32 %v4615_v58, %v4794_v7  ;;  %v4746_v8 = vpop.f32.mrf.mxu0  ;;  %v4795_v11 = vpop.f32.mrf.mxu1 }
 0x6a1   :  { %v4855_v4 = vld [vmem:[#allocation4 + $0x20] ss:$2 sm:$0xff]  ;;  %v4871_v44 = vld [vmem:[#allocation4 + $0x21] ss:$2 sm:$0xff]  ;;  %v4796_v47 = vadd.f32 %v4795_v11, %v4746_v8 }
 0x6a2   :  { %v4884_v14 = vmax.f32 %v4855_v4, %v4871_v44  ;;  %4840 = vst [vmem:[#allocation4 + $0x30] sm:$0xff] %v4824_v34 }
 0x6a3   :  { %5130 = vmatpush.bf16.msra.mxu2 %v7108_v54 }
 0x6a4   :  { %4892 = vst [vmem:[#allocation5 + $0x10] sm:$0xff] %v4884_v14 }
 0x6a5   :  { %v4567_v41 = vpop.f32.mrf.mxu2  ;;  %v4616_v21 = vpop.f32.mrf.mxu3 }
 0x6a6   :  { %v4617_v20 = vadd.f32 %v4616_v21, %v4567_v41  ;;  %v7086_v21 = vld [vmem:[%s10437_s7 + $0x8] sm:$0xff] }
 0x6a7   :  { %5131 = vmatpush.bf16.msra.mxu2 %v7107_v62  ;;  %5054 = vmatpush.bf16.msrb.mxu3 %v7086_v21  ;;  %v7132_v21 = vld [vmem:[%s10440_s9 + $0x38] sm:$0xff] }
 0x6a8   :  { %v4825_v60 = vmax.f32 %v4617_v20, %v4796_v47  ;;  %v4749_v36 = vpop.f32.mrf.mxu0  ;;  %v4798_v24 = vpop.f32.mrf.mxu1  ;;  %v7106_v47 = vld [vmem:[%s10437_s7 + $0xa8] sm:$0xff]  ;;  %v7085_v20 = vld [vmem:[%s10437_s7] sm:$0xff] }
 0x6a9   :  { %v4799_v31 = vadd.f32 %v4798_v24, %v4749_v36  ;;  %v7116_v36 = vld [vmem:[%s10437_s7 + $0xf8] sm:$0xff] }
 0x6aa   :  { %4841 = vst [vmem:[#allocation4 + $0x38] sm:$0xff] %v4825_v60  ;;  %v7105_v60 = vld [vmem:[%s10437_s7 + $0xa0] sm:$0xff] }
 0x6ab   :  { %5132 = vmatpush.bf16.msra.mxu2 %v7106_v47  ;;  %5055 = vmatpush.bf16.msrb.mxu3 %v7085_v20  ;;  %v7131_v47 = vld [vmem:[%s10440_s9 + $0x30] sm:$0xff]  ;;  %v7130_v20 = vld [vmem:[%s10440_s9 + $0x28] sm:$0xff] }
 0x6ad   :  { %v4570_v29 = vpop.f32.mrf.mxu2  ;;  %v4619_v52 = vpop.f32.mrf.mxu3 }
 0x6ae   :  { %v4620_v32 = vadd.f32 %v4619_v52, %v4570_v29 }
 0x6af   :  { %5133 = vmatpush.bf16.msra.mxu2 %v7105_v60  ;;  %5213 = vmatpush.bf16.msra.mxu3 %v7116_v36  ;;  %v7129_v60 = vld [vmem:[%s10440_s9 + $0x20] sm:$0xff]  ;;  %v7128_v36 = vld [vmem:[%s10440_s9 + $0x18] sm:$0xff] }
 0x6b0   :  { %v4826_v37 = vmax.f32 %v4620_v32, %v4799_v31  ;;  %v4751_v6 = vpop.f32.mrf.mxu0  ;;  %v4800_v46 = vpop.f32.mrf.mxu1  ;;  %v7104_v31 = vld [vmem:[%s10437_s7 + $0x98] sm:$0xff]  ;;  %v7115_v32 = vld [vmem:[%s10437_s7 + $0xf0] sm:$0xff] }
 0x6b1   :  { %v4857_v40 = vld [vmem:[#allocation4 + $0x30] ss:$2 sm:$0xff]  ;;  %v4873_v55 = vld [vmem:[#allocation4 + $0x31] ss:$2 sm:$0xff]  ;;  %v4801_v45 = vadd.f32 %v4800_v46, %v4751_v6  ;;  %v7114_v6 = vld [vmem:[%s10437_s7 + $0xe8] sm:$0xff] }
 0x6b2   :  { %v4885_v23 = vmax.f32 %v4857_v40, %v4873_v55  ;;  %4842 = vst [vmem:[#allocation4 + $0x40] sm:$0xff] %v4826_v37  ;;  %v7103_v37 = vld [vmem:[%s10437_s7 + $0x90] sm:$0xff]  ;;  %v7102_v55 = vld [vmem:[%s10437_s7 + $0x88] sm:$0xff] }
 0x6b3   :  { %5134 = vmatpush.bf16.msra.mxu2 %v7104_v31  ;;  %5214 = vmatpush.bf16.msra.mxu3 %v7115_v32  ;;  %v7126_v31 = vld [vmem:[%s10440_s9 + $0x8] sm:$0xff]  ;;  %v7125_v32 = vld [vmem:[%s10440_s9] sm:$0xff] }
 0x6b4   :  { %4893 = vst [vmem:[#allocation5 + $0x18] sm:$0xff] %v4885_v23 }
 0x6b5   :  { %v4572_v10 = vpop.f32.mrf.mxu2  ;;  %v4621_v42 = vpop.f32.mrf.mxu3 }
 0x6b6   :  { %v4622_v59 = vadd.f32 %v4621_v42, %v4572_v10 }
 0x6b7   :  { %5135 = vmatpush.bf16.msra.mxu2 %v7103_v37  ;;  %5215 = vmatpush.bf16.msra.mxu3 %v7114_v6 }
 0x6b8   :  { %v4827_v18 = vmax.f32 %v4622_v59, %v4801_v45  ;;  %v4754_v28 = vpop.f32.mrf.mxu0  ;;  %v4803_v39 = vpop.f32.mrf.mxu1  ;;  %v7101_v59 = vld [vmem:[%s10437_s7 + $0x80] sm:$0xff] }
 0x6b9   :  { %v4804_v22 = vadd.f32 %v4803_v39, %v4754_v28  ;;  %v7111_v39 = vld [vmem:[%s10437_s7 + $0xd0] sm:$0xff] }
 0x6ba   :  { %4843 = vst [vmem:[#allocation4 + $0x48] sm:$0xff] %v4827_v18  ;;  %v7112_v18 = vld [vmem:[%s10437_s7 + $0xd8] sm:$0xff] }
 0x6bb   :  { %5136 = vmatpush.bf16.msra.mxu2 %v7102_v55  ;;  %5216 = vmatpush.bf16.msra.mxu3 %v7113_v63  ;;  %v4919_v51 = vld [vmem:[#allocation5 + $0x1] ss:$8 sm:$0xf]  ;;  %v5145_v16 = vld [vmem:[#allocation5 + $0x3] ss:$8 sm:$0xf] }
 0x6bc   :  { %v7138_v55 = vld [vmem:[%s10441_s11 + $0x28] sm:$0xff] }
 0x6bd   :  { %v4575_v0 = vpop.f32.mrf.mxu2  ;;  %v4624_v38 = vpop.f32.mrf.mxu3 }
 0x6be   :  { %v4625_v56 = vadd.f32 %v4624_v38, %v4575_v0 }
 0x6bf   :  { %5137 = vmatpush.bf16.msra.mxu2 %v7101_v59  ;;  %5217 = vmatpush.bf16.msra.mxu3 %v7112_v18 }
 0x6c0   :  { %v4828_v26 = vmax.f32 %v4625_v56, %v4804_v22  ;;  %v4756_v33 = vpop.f32.mrf.mxu0  ;;  %v4805_v15 = vpop.f32.mrf.mxu1 }
 0x6c1   :  { %v4859_v9 = vld [vmem:[#allocation4 + $0x40] ss:$2 sm:$0xff]  ;;  %v4875_v12 = vld [vmem:[#allocation4 + $0x41] ss:$2 sm:$0xff]  ;;  %v4806_v48 = vadd.f32 %v4805_v15, %v4756_v33 }
 0x6c2   :  { %v4886_v19 = vmax.f32 %v4859_v9, %v4875_v12  ;;  %4844 = vst [vmem:[#allocation4 + $0x50] sm:$0xff] %v4828_v26  ;;  %v7110_v33 = vld [vmem:[%s10437_s7 + $0xc8] sm:$0xff]  ;;  %v7109_v9 = vld [vmem:[%s10437_s7 + $0xc0] sm:$0xff] }
 0x6c3   :  { %5218 = vmatpush.bf16.msra.mxu3 %v7111_v39 }
 0x6c4   :  { %4894 = vst [vmem:[#allocation5 + $0x20] sm:$0xff] %v4886_v19 }
 0x6c5   :  { %v4577_v5 = vpop.f32.mrf.mxu2  ;;  %v4626_v2 = vpop.f32.mrf.mxu3 }
 0x6c6   :  { %v4627_v1 = vadd.f32 %v4626_v2, %v4577_v5  ;;  %v4898_v5 = vld [vmem:[#allocation5] ss:$8 sm:$0xf] }
 0x6c7   :  { %5219 = vmatpush.bf16.msra.mxu3 %v7110_v33 }
 0x6c8   :  { %v4829_v3 = vmax.f32 %v4627_v1, %v4806_v48  ;;  %v4759_v53 = vpop.f32.mrf.mxu0  ;;  %v4808_v35 = vpop.f32.mrf.mxu1 }
 0x6c9   :  { %v4809_v49 = vadd.f32 %v4808_v35, %v4759_v53  ;;  %v7124_v53 = vld [vmem:[%s10437_s7 + $0x138] sm:$0xff] }
 0x6ca   :  { %4845 = vst [vmem:[#allocation4 + $0x58] sm:$0xff] %v4829_v3 }
 0x6cb   :  { %5220 = vmatpush.bf16.msra.mxu3 %v7109_v9  ;;  %v7134_v9 = vld [vmem:[%s10441_s11 + $0x8] sm:$0xff] }
 0x6cd   :  { %v4580_v43 = vpop.f32.mrf.mxu2  ;;  %v4629_v17 = vpop.f32.mrf.mxu3 }
 0x6ce   :  { %v4630_v50 = vadd.f32 %v4629_v17, %v4580_v43  ;;  %v7123_v17 = vld [vmem:[%s10437_s7 + $0x130] sm:$0xff] }
 0x6d0   :  { %v4830_v61 = vmax.f32 %v4630_v50, %v4809_v49  ;;  %v4761_v8 = vpop.f32.mrf.mxu0  ;;  %v4810_v11 = vpop.f32.mrf.mxu1 }
 0x6d1   :  { %v4861_v7 = vld [vmem:[#allocation4 + $0x50] ss:$2 sm:$0xff]  ;;  %v4877_v58 = vld [vmem:[#allocation4 + $0x51] ss:$2 sm:$0xff]  ;;  %v4811_v14 = vadd.f32 %v4810_v11, %v4761_v8 }
 0x6d2   :  { %v4887_v34 = vmax.f32 %v4861_v7, %v4877_v58  ;;  %4846 = vst [vmem:[#allocation4 + $0x60] sm:$0xff] %v4830_v61  ;;  %v5062_v61 = vld [vmem:[#allocation5 + $0x2] ss:$8 sm:$0xf] }
 0x6d3   :  { %v7120_v58 = vld [vmem:[%s10437_s7 + $0x118] sm:$0xff]  ;;  %v7119_v11 = vld [vmem:[%s10437_s7 + $0x110] sm:$0xff] }
 0x6d4   :  { %4895 = vst [vmem:[#allocation5 + $0x28] sm:$0xff] %v4887_v34 }
 0x6d5   :  { %v4582_v4 = vpop.f32.mrf.mxu2  ;;  %v4631_v44 = vpop.f32.mrf.mxu3 }
 0x6d6   :  { %v4632_v57 = vadd.f32 %v4631_v44, %v4582_v4  ;;  %v7118_v4 = vld [vmem:[%s10437_s7 + $0x108] sm:$0xff] }
 0x6d8   :  { %v4831_v41 = vmax.f32 %v4632_v57, %v4811_v14  ;;  %v4764_v40 = vpop.f32.mrf.mxu0  ;;  %v7117_v14 = vld [vmem:[%s10437_s7 + $0x100] sm:$0xff] }
 0x6d9   :  { %v5228_v57 = vld [vmem:[#allocation5 + $0x4] ss:$8 sm:$0xf] }
 0x6da   :  { %4847 = vst [vmem:[#allocation4 + $0x68] sm:$0xff] %v4831_v41 }
 0x6dd   :  { %v4585_v23 = vpop.f32.mrf.mxu2 }
 0x6e0   :  { %v4766_v0 = vpop.f32.mrf.mxu0 }
 0x6e1   :  { %v4863_v24 = vld [vmem:[#allocation4 + $0x60] ss:$2 sm:$0xff]  ;;  %v4879_v29 = vld [vmem:[#allocation4 + $0x61] ss:$2 sm:$0xff] }
 0x6e2   :  { %v4888_v52 = vmax.f32 %v4863_v24, %v4879_v29  ;;  %v7127_v24 = vld [vmem:[%s10440_s9 + $0x10] sm:$0xff] }
 0x6e4   :  { %4896 = vst [vmem:[#allocation5 + $0x30] sm:$0xff] %v4888_v52 }
 0x6e5   :  { %v4813_v46 = vpop.f32.mrf.mxu1  ;;  %v4587_v38 = vpop.f32.mrf.mxu2 }
 0x6e6   :  { %v4814_v10 = vadd.f32 %v4813_v46, %v4764_v40  ;;  %v7140_v46 = vld [vmem:[%s10441_s11 + $0x38] sm:$0xff]  ;;  %v7139_v40 = vld [vmem:[%s10441_s11 + $0x30] sm:$0xff] }
 0x6eb   :  { %v4634_v25 = vpop.f32.mrf.mxu3 }
 0x6ec   :  { %v4635_v42 = vadd.f32 %v4634_v25, %v4585_v23  ;;  %v7137_v25 = vld [vmem:[%s10441_s11 + $0x20] sm:$0xff] }
 0x6ed   :  { %v4815_v28 = vpop.f32.mrf.mxu1 }
 0x6ee   :  { %v4832_v45 = vmax.f32 %v4635_v42, %v4814_v10  ;;  %v4816_v56 = vadd.f32 %v4815_v28, %v4766_v0  ;;  %v7136_v10 = vld [vmem:[%s10441_s11 + $0x18] sm:$0xff]  ;;  %v7135_v28 = vld [vmem:[%s10441_s11 + $0x10] sm:$0xff]  ;;  %v7211_v0 = vld [vmem:[%s10438_s8] ss:$0 sm:$0xff] }
 0x6f0   :  { %4848 = vst [vmem:[#allocation4 + $0x70] sm:$0xff] %v4832_v45 }
 0x6f3   :  { %v4636_v22 = vpop.f32.mrf.mxu3 }
 0x6f4   :  { %v4637_v26 = vadd.f32 %v4636_v22, %v4587_v38 }
 0x6f6   :  { %v4833_v15 = vmax.f32 %v4637_v26, %v4816_v56 }
 0x6f8   :  { %4849 = vst [vmem:[#allocation4 + $0x78] sm:$0xf] %v4833_v15 }
 0x6ff   :  { %v4865_v12 = vld [vmem:[#allocation4 + $0x70] ss:$2 sm:$0xff]  ;;  %v4881_v19 = vld [vmem:[#allocation4 + $0x71] ss:$2 sm:$0xff] }
 0x700   :  { %v4889_v30 = vmax.f32 %v4865_v12, %v4881_v19  ;;  %v7133_v12 = vld [vmem:[%s10441_s11] sm:$0xff] }
 0x701   :  { %v7212_v19 = vld [vmem:[%s10439_s10] ss:$0 sm:$0xff] }
 0x702   :  { %4897 = vst [vmem:[#allocation5 + $0x38] sm:$0xff] %v4889_v30 }
 0x709   :  { %v4920_v2 = vld [vmem:[#allocation5 + $0x1] ss:$8 sm:$0xf0]  ;;  %v4899_v48 = vld [vmem:[#allocation5] ss:$8 sm:$0xf0] }
 0x70a   :  { %v4921_v1 = vor.u32 %v4920_v2, %v4919_v51  ;;  %v4900_v3 = vor.u32 %v4899_v48, %v4898_v5  ;;  %v5063_v49 = vld [vmem:[#allocation5 + $0x2] ss:$8 sm:$0xf0]  ;;  %v5146_v50 = vld [vmem:[#allocation5 + $0x3] ss:$8 sm:$0xf0] }
 0x70b   :  { %v5064_v54 = vor.u32 %v5063_v49, %v5062_v61  ;;  %v5147_v7 = vor.u32 %v5146_v50, %v5145_v16  ;;  %v5229_v44 = vld [vmem:[#allocation5 + $0x4] ss:$8 sm:$0xf0] }
 0x70c   :  { %v4922_v35 = vpack.c.bf16 %v4921_v1, %v4921_v1  ;;  %v4901_v43 = vpack.c.bf16 %v4900_v3, %v4900_v3  ;;  %v5230_v62 = vor.u32 %v5229_v44, %v5228_v57  ;;  %v5481_v1 = vlaneseq }
 0x70d   :  { %v5065_v34 = vpack.c.bf16 %v5064_v54, %v5064_v54  ;;  %v5148_v8 = vpack.c.bf16 %v5147_v7, %v5147_v7 }
 0x70e   :  { %4995 = vmatmul.bf16.vlgmr.msrb.gmra.mxu2 %v4922_v35  ;;  %5056 = vmatmul.bf16.vlgmr.msrb.gmra.mxu3 %v4901_v43  ;;  %v5231_v41 = vpack.c.bf16 %v5230_v62, %v5230_v62  ;;  %v5482_v3 = vand.u32 127, %v5481_v1 }
 0x70f   :  { %5296 = vmatpush.bf16.msrb.mxu2 %v7124_v53  ;;  %5385 = vmatpush.bf16.msrb.mxu3 %v7132_v21  ;;  %v7213_v53 = vld [vmem:[%s10442_s12] ss:$0 sm:$0xff] }
 0x710   :  { %vm5483_vm8 = vcmp.lt.s32.totalorder %v5482_v3, 10 }
 0x713   :  { %5297 = vmatpush.bf16.msrb.mxu2 %v7123_v17  ;;  %5386 = vmatpush.bf16.msrb.mxu3 %v7131_v47 }
 0x717   :  { %5298 = vmatpush.bf16.msrb.mxu2 %v7122_v13  ;;  %5387 = vmatpush.bf16.msrb.mxu3 %v7130_v20 }
 0x71b   :  { %5299 = vmatpush.bf16.msrb.mxu2 %v7121_v27  ;;  %5388 = vmatpush.bf16.msrb.mxu3 %v7129_v60 }
 0x71e   :  { %5138 = vmatmul.bf16.vlgmr.msra.gmra.mxu2 %v5065_v34  ;;  %5221 = vmatmul.bf16.vlgmr.msra.gmra.mxu3 %v5148_v8 }
 0x71f   :  { %5300 = vmatpush.bf16.msrb.mxu2 %v7120_v58  ;;  %5389 = vmatpush.bf16.msrb.mxu3 %v7128_v36 }
 0x723   :  { %5301 = vmatpush.bf16.msrb.mxu2 %v7119_v11  ;;  %5390 = vmatpush.bf16.msrb.mxu3 %v7127_v24 }
 0x727   :  { %5302 = vmatpush.bf16.msrb.mxu2 %v7118_v4  ;;  %5391 = vmatpush.bf16.msrb.mxu3 %v7126_v31 }
 0x72b   :  { %5303 = vmatpush.bf16.msrb.mxu2 %v7117_v14  ;;  %5392 = vmatpush.bf16.msrb.mxu3 %v7125_v32 }
 0x72e   :  { %5304 = vmatmul.bf16.vlgmr.msrb.gmra.mxu2 %v5231_v41 }
 0x72f   :  { %5468 = vmatpush.bf16.msra.mxu2 %v7140_v46 }
 0x733   :  { %5469 = vmatpush.bf16.msra.mxu2 %v7139_v40 }
 0x737   :  { %5470 = vmatpush.bf16.msra.mxu2 %v7138_v55 }
 0x73b   :  { %5471 = vmatpush.bf16.msra.mxu2 %v7137_v25 }
 0x73f   :  { %5472 = vmatpush.bf16.msra.mxu2 %v7136_v10 }
 0x743   :  { %5473 = vmatpush.bf16.msra.mxu2 %v7135_v28 }
 0x747   :  { %5474 = vmatpush.bf16.msra.mxu2 %v7134_v9 }
 0x74b   :  { %5475 = vmatpush.bf16.msra.mxu2 %v7133_v12 }
 0x791   :  { %v4996_v29 = vpop.f32.mrf.mxu2  ;;  %v5057_v52 = vpop.f32.mrf.mxu3 }
 0x792   :  { %v5058_v59 = vadd.f32 %v5057_v52, %v4996_v29 }
 0x799   :  { %v4998_v37 = vpop.f32.mrf.mxu2  ;;  %v5059_v6 = vpop.f32.mrf.mxu3 }
 0x7a1   :  { %v5139_v23 = vpop.f32.mrf.mxu2  ;;  %v5222_v63 = vpop.f32.mrf.mxu3 }
 0x7a2   :  { %v5143_v18 = vadd.f32 %v5139_v23, %v5058_v59 }
 0x7a4   :  { %v5226_v39 = vadd.f32 %v5222_v63, %v5143_v18 }
 0x7a9   :  { %v5141_v42 = vpop.f32.mrf.mxu2  ;;  %v5224_v45 = vpop.f32.mrf.mxu3 }
 0x7b1   :  { %v5305_v38 = vpop.f32.mrf.mxu2 }
 0x7b2   :  { %v5309_v22 = vadd.f32 %v5305_v38, %v5226_v39 }
 0x7b4   :  { %v5314_v56 = vadd.f32 %v7211_v0, %v5309_v22 }
 0x7b6   :  { %v5315_v26 = vmax.f32 %v5314_v56, 0.0 }
 0x7b8   :  { %v5316_v33 = vpack.c.bf16 %v5315_v26, %v5315_v26 }
 0x7b9   :  { %v5307_v15 = vpop.f32.mrf.mxu2 }
 0x7ba   :  { %5393 = vmatmul.bf16.vlgmr.msrb.gmra.mxu3 %v5316_v33 }
 0x83d   :  { %v5394_v30 = vpop.f32.mrf.mxu3 }
 0x83e   :  { %v5395_v51 = vadd.f32 %v7212_v19, %v5394_v30 }
 0x840   :  { %v5398_v5 = vmax.f32 %v5395_v51, 0.0 }
 0x842   :  { %v5399_v2 = vpack.c.bf16 %v5398_v5, %v5398_v5 }
 0x844   :  { %5476 = vmatmul.bf16.vlgmr.msra.gmra.mxu2 %v5399_v2 }
 0x845   :  { %v5396_v48 = vpop.f32.mrf.mxu3 }
 0x8c7   :  { %v5477_v35 = vpop.f32.mrf.mxu2 }
 0x8c8   :  { %v5478_v43 = vadd.f32 %v7213_v53, %v5477_v35 }
 0x8ca   :  { %v5484_v17 = vsel %vm5483_vm8, %v5478_v43, -1e+30 }
 0x8cb   :  { %5485 = vmax.xlane.f32.xlu0 %v5484_v17 }
 0x8cf   :  { %v5479_v13 = vpop.f32.mrf.mxu2 }
 0x93e   :  { %v5486_v49 = vpop.xlane.xlu0 %5485 }
 0x93f   :  { %v5487_v50 = vsub.f32 %v5484_v17, %v5486_v49 }
 0x941   :  { %v5488_v61 = vmul.f32 1.442695, %v5487_v50 }
 0x943   :  { %7214 = vpow2.f32 %v5488_v61 }
 0x949   :  { %v7215_v27 = vpop.eup %7214 }
 0x94a   :  { %5490 = vadd.xlane.f32.xlu0 %v7215_v27 }
 0x9bd   :  { %v5491_v16 = vpop.xlane.xlu0 %5490 }
 0x9be   :  { %7216 = vlog2.f32 %v5491_v16 }
 0x9c4   :  { %v7217_v54 = vpop.eup %7216 }
 0x9c5   :  { %v5493_v7 = vmul.f32 0.6931472, %v7217_v54 }
 0x9c7   :  { %v5494_v58 = vsub.f32 %v5487_v50, %v5493_v7 }
 0x9c9   :  { %5495 = vst [vmem:[%s10443_s13] sm:$0xff] %v5494_v58 }

</bundles_post_ra>
